<compile_context>
chip_gen: v5e
topology: v5e:2x2
jax: 0.10.0
libtpu: 0.0.40
codegen_flags: <defaults>
</compile_context>

<pallas_src>
import jax
import jax.numpy as jnp
from jax.experimental import pallas as pl
from jax.experimental.pallas import tpu as pltpu

# ----------------------------- problem sizes -----------------------------
B = 2                         # batch_size
T = 16                        # sample_size (number of frames)
NUM_PC = 12                   # tools.NUM_PC
C_IN = 2 * NUM_PC             # cat([pc_act, bass_pc], dim=1)
E = 32                        # note-embedding width
NUM_QUALITIES = 4             # maj, min, dim, dom7 (harmony_type 'RQ')
H = NUM_PC * NUM_QUALITIES    # num_harmonies = 48
COMP_DIMS = (NUM_PC, NUM_QUALITIES)
MAX_SEG_LEN = 8
L = MAX_SEG_LEN
ACT_OUT = NUM_PC + sum(COMP_DIMS)
NEG_INF = -1e30


# ----------------------------- harmony templates -----------------------------
def build_harmony_templates():
    """harmony_pc_vector (H, 12) and component one-hots, as in compute_harmony_vector."""
    quality_intervals = [(0, 4, 7), (0, 3, 7), (0, 3, 6), (0, 4, 7, 10)]
    hpv = jnp.zeros((H, NUM_PC), jnp.float32)
    root_oh = jnp.zeros((H, NUM_PC), jnp.float32)
    qual_oh = jnp.zeros((H, NUM_QUALITIES), jnp.float32)
    for h in range(H):
        root = h // NUM_QUALITIES
        qual = h % NUM_QUALITIES
        for iv in quality_intervals[qual]:
            hpv = hpv.at[h, (root + iv) % NUM_PC].set(1.0)
        root_oh = root_oh.at[h, root].set(1.0)
        qual_oh = qual_oh.at[h, qual].set(1.0)
    return hpv, root_oh, qual_oh


# ----------------------------- fused kernel -----------------------------
def fused_note2harmony_kernel(x_ref, w1_ref, b1_ref, wc_ref, bc_ref,
                              trans_ref, tri_ref, g_ref, out_ref, *pads):
    # per-batch padded scratches, all 2D (T+L, H):
    c_pad = pads[:B]          # padded inclusive prefix sums of frame scores
    m_pad = pads[B:]          # padded incoming messages

    # ---- note encoder + constant-folded frame decoder: frame harmony scores ----
    x = x_ref[...]                                                       # (B*T, C_IN)
    h = jnp.dot(x, w1_ref[...], preferred_element_type=jnp.float32) + b1_ref[...]
    h = jnp.maximum(h, 0.0)                                              # (B*T, E)
    fs = jnp.dot(h, wc_ref[...], preferred_element_type=jnp.float32) + bc_ref[...]   # (B*T, H)

    # ---- gold-path frame emission per batch (fs stays VMEM-resident) ----
    prod = fs * g_ref[...]                                               # (B*T, H)
    em = []
    for b in range(B):
        pb = prod[b * T:(b + 1) * T, :]
        em.append(jnp.sum(jnp.sum(pb, axis=1, keepdims=True),
                          axis=0, keepdims=True))                        # (1, 1)

    # ---- inclusive prefix sums over time: one block-diagonal lower-tri matmul ----
    c_flat = jnp.dot(tri_ref[...], fs, preferred_element_type=jnp.float32)  # (B*T, H)

    # ---- transition exponentials: computed once per call, max-shifted ----
    trans = trans_ref[...]
    tmax = jnp.max(jnp.max(trans, axis=1, keepdims=True),
                   axis=0, keepdims=True)                                # (1, 1)
    exp_shift = jnp.exp(trans - tmax)                                    # (H, H)

    # ---- init padded scratches ----
    # padded row r holds data for original time index r - L; rows [0, L) are boundary:
    #   prev == -1 (row L-1): C = 0, msg = 0  (first segment, no incoming transition)
    #   prev <  -1 (rows < L-1): msg = NEG_INF (invalid lookback, masked out of the LSE)
    for b in range(B):
        c_pad[b][0:L, :] = jnp.zeros((L, H), jnp.float32)
        c_pad[b][L:L + T, :] = c_flat[b * T:(b + 1) * T, :]
        m_pad[b][0:L, :] = jnp.full((L, H), NEG_INF, jnp.float32)
        m_pad[b][L - 1:L, :] = jnp.zeros((1, H), jnp.float32)

    # ---- semi-CRF alpha recursion, statically unrolled over T (alpha carried as a value) ----
    alpha_last = None
    for t in range(T):
        rows = []
        for b in range(B):
            c_t = c_pad[b][t + L:t + L + 1, :]           # (1, H)  C[t]
            c_win = c_pad[b][t:t + L, :]                  # (L, H)  C[t-L .. t-1]
            m_win = m_pad[b][t:t + L, :]                  # (L, H)  msg[t-L .. t-1]
            # segment emission (C[t]-C[prev]) + incoming message, all lengths at once
            contrib = (c_t + m_win) - c_win               # (L, H)
            mx = jnp.max(contrib, axis=0, keepdims=True)  # (1, H)  finite (row L-1 always valid)
            alpha_b = mx + jnp.log(jnp.sum(jnp.exp(contrib - mx), axis=0, keepdims=True))
            rows.append(alpha_b)
        alpha_t = jnp.concatenate(rows, axis=0)           # (B, H)

        # message to later steps: logsumexp_{h'}(alpha[t,h'] + trans[h',h]) via exp-matmul
        amax = jnp.max(alpha_t, axis=1, keepdims=True)    # (B, 1)
        p = jnp.exp(alpha_t - amax)
        msg = (jnp.log(jnp.dot(p, exp_shift, preferred_element_type=jnp.float32))
               + amax + tmax)                             # (B, H)
        for b in range(B):
            m_pad[b][t + L:t + L + 1, :] = msg[b:b + 1, :]
        alpha_last = alpha_t

    # ---- log partition minus gold frame emission, per batch ----
    for b in range(B):
        a_b = alpha_last[b:b + 1, :]
        mb = jnp.max(a_b, axis=1, keepdims=True)
        logz_b = mb + jnp.log(jnp.sum(jnp.exp(a_b - mb), axis=1, keepdims=True))   # (1, 1)
        out_ref[b:b + 1, :] = logz_b - em[b]


# ----------------------------- full forward (loss) -----------------------------
def note2harmony_forward(pc_act, bass_pc, harmony_index_gt, params, a_mat, ai_mat,
                         transitions):
    # note_input = cat([pc_act, bass_pc], dim=1): (B, 24, T) -> channels-last (B*T, 24)
    note_input = jnp.concatenate([pc_act, bass_pc], axis=1)
    x_flat = jnp.transpose(note_input, (0, 2, 1)).reshape(B * T, C_IN)

    # constant-fold the active/inactive heads into the harmony-template projection
    wc = params["w2a"] @ a_mat + params["w2b"] @ ai_mat                 # (E, H)
    bc = params["b2a"] @ a_mat + params["b2b"] @ ai_mat                 # (1, H)

    # block-diagonal lower-triangular prefix-sum operator over the B*T frame rows
    tri_bd = jnp.kron(jnp.eye(B, dtype=jnp.float32),
                      jnp.tril(jnp.ones((T, T), jnp.float32)))          # (B*T, B*T)

    # gold harmony labels as one-hot rows (in-kernel gold frame emission)
    g_flat = jax.nn.one_hot(harmony_index_gt.reshape(B * T), H, dtype=jnp.float32)

    full = lambda shape: pl.BlockSpec(shape, lambda i: tuple(0 for _ in shape))
    out = pl.pallas_call(
        fused_note2harmony_kernel,
        out_shape=jax.ShapeDtypeStruct((B, 1), jnp.float32),
        grid=(1,),
        in_specs=[full((B * T, C_IN)),
                  full((C_IN, E)), full((1, E)),
                  full((E, H)), full((1, H)),
                  full((H, H)),
                  full((B * T, B * T)),
                  full((B * T, H))],
        out_specs=full((B, 1)),
        scratch_shapes=[pltpu.VMEM((T + L, H), jnp.float32) for _ in range(2 * B)],
        compiler_params=pltpu.CompilerParams(dimension_semantics=("arbitrary",)),
    )(x_flat, params["w1"], params["b1"], wc, bc, transitions, tri_bd, g_flat)

    logz_minus_emission = out.reshape(B)                                # (B,)

    # gold transition score at label changes (O(B*T) glue)
    gt = harmony_index_gt
    prev, cur = gt[:, :-1], gt[:, 1:]
    tr = transitions[prev, cur]
    gold_trans = jnp.sum(jnp.where(prev != cur, tr, 0.0), axis=1)

    loss = jnp.mean(logz_minus_emission - gold_trans)                   # sequence NLL
    return loss


# ----------------------------- main -----------------------------
if __name__ == "__main__":
    key = jax.random.PRNGKey(0)
    ks = jax.random.split(key, 10)

    # deterministic parameter init (shapes implied by the module, not a checkpoint load)
    params = {
        "w1": jax.random.normal(ks[0], (C_IN, E), jnp.float32) / jnp.sqrt(C_IN),
        "b1": jnp.zeros((1, E), jnp.float32),
        "w2a": jax.random.normal(ks[1], (E, ACT_OUT), jnp.float32) / jnp.sqrt(E),
        "b2a": jnp.zeros((1, ACT_OUT), jnp.float32),
        "w2b": jax.random.normal(ks[2], (E, NUM_PC), jnp.float32) / jnp.sqrt(E),
        "b2b": jnp.zeros((1, NUM_PC), jnp.float32),
    }
    transitions = 0.1 * jax.random.normal(ks[3], (H, H), jnp.float32)

    hpv, root_oh, qual_oh = build_harmony_templates()
    # active head matches pc + root + quality templates; inactive head matches absent pcs
    a_mat = jnp.concatenate([hpv.T, root_oh.T, qual_oh.T], axis=0)      # (28, H)
    ai_mat = (1.0 - hpv).T                                              # (12, H)

    # synthetic batch (PyTorch NCW layout for note features)
    pc_act = (jax.random.uniform(ks[4], (B, NUM_PC, T)) < 0.3).astype(jnp.float32)
    bass_idx = jax.random.randint(ks[5], (B, T), 0, NUM_PC)
    bass_pc = jnp.transpose(jax.nn.one_hot(bass_idx, NUM_PC, dtype=jnp.float32), (0, 2, 1))
    harmony_index_gt = jax.random.randint(ks[6], (B, T), 0, H)

    loss = jax.jit(note2harmony_forward)(pc_act, bass_pc, harmony_index_gt, params,
                                         a_mat, ai_mat, transitions)
    jax.block_until_ready(loss)
    assert jnp.isfinite(loss)
    print("KERNEL_OK")
</pallas_src>

<mosaic_0001>
module attributes {stable_mosaic.version = 11 : i64} {
  func.func @fused_note2harmony_kernel(%arg0: i32, %arg1: memref<32x24xf32, #tpu.memory_space<vmem>>, %arg2: memref<24x32xf32, #tpu.memory_space<vmem>>, %arg3: memref<1x32xf32, #tpu.memory_space<vmem>>, %arg4: memref<32x48xf32, #tpu.memory_space<vmem>>, %arg5: memref<1x48xf32, #tpu.memory_space<vmem>>, %arg6: memref<48x48xf32, #tpu.memory_space<vmem>>, %arg7: memref<32x32xf32, #tpu.memory_space<vmem>>, %arg8: memref<32x48xf32, #tpu.memory_space<vmem>>, %arg9: memref<2x1xf32, #tpu.memory_space<vmem>>, %arg10: memref<24x48xf32, #tpu.memory_space<vmem>>, %arg11: memref<24x48xf32, #tpu.memory_space<vmem>>, %arg12: memref<24x48xf32, #tpu.memory_space<vmem>>, %arg13: memref<24x48xf32, #tpu.memory_space<vmem>>) attributes {dimension_semantics = [#tpu.dimension_semantics<arbitrary>], iteration_bounds = array<i64: 1>, scalar_prefetch = 0 : i64, scratch_operands = 4 : i64, tpu.core_type = #tpu.core_type<tc>, window_params = [{pipeline_mode = #tpu.pipeline_mode<synchronous>, transform_indices = @transform_0, window_bounds = array<i64: 32, 24>}, {pipeline_mode = #tpu.pipeline_mode<synchronous>, transform_indices = @transform_1, window_bounds = array<i64: 24, 32>}, {pipeline_mode = #tpu.pipeline_mode<synchronous>, transform_indices = @transform_2, window_bounds = array<i64: 1, 32>}, {pipeline_mode = #tpu.pipeline_mode<synchronous>, transform_indices = @transform_3, window_bounds = array<i64: 32, 48>}, {pipeline_mode = #tpu.pipeline_mode<synchronous>, transform_indices = @transform_4, window_bounds = array<i64: 1, 48>}, {pipeline_mode = #tpu.pipeline_mode<synchronous>, transform_indices = @transform_5, window_bounds = array<i64: 48, 48>}, {pipeline_mode = #tpu.pipeline_mode<synchronous>, transform_indices = @transform_6, window_bounds = array<i64: 32, 32>}, {pipeline_mode = #tpu.pipeline_mode<synchronous>, transform_indices = @transform_7, window_bounds = array<i64: 32, 48>}, {pipeline_mode = #tpu.pipeline_mode<synchronous>, transform_indices = @transform_8, window_bounds = array<i64: 2, 1>}]} {
    %c0 = arith.constant 0 : index
    %c0_0 = arith.constant 0 : index
    %0 = vector.load %arg1[%c0, %c0_0] : memref<32x24xf32, #tpu.memory_space<vmem>>, vector<32x24xf32>
    %c0_1 = arith.constant 0 : index
    %c0_2 = arith.constant 0 : index
    %1 = vector.load %arg2[%c0_1, %c0_2] : memref<24x32xf32, #tpu.memory_space<vmem>>, vector<24x32xf32>
    %cst = arith.constant dense<0.000000e+00> : vector<32x32xf32>
    %2 = tpu.matmul %0, %1, %cst {dimension_numbers = #tpu.dot_dimension_numbers<[1], [0], [0], [1], [0, 0, 1, 1], [], []>} : vector<32x24xf32>, vector<24x32xf32>, vector<32x32xf32> -> vector<32x32xf32>
    %c0_3 = arith.constant 0 : index
    %c0_4 = arith.constant 0 : index
    %3 = vector.load %arg3[%c0_3, %c0_4] : memref<1x32xf32, #tpu.memory_space<vmem>>, vector<1x32xf32>
    %4 = vector.broadcast %3 : vector<1x32xf32> to vector<32x32xf32>
    %5 = arith.addf %2, %4 : vector<32x32xf32>
    %cst_5 = arith.constant 0.000000e+00 : f32
    %6 = vector.broadcast %cst_5 : f32 to vector<32x32xf32>
    %7 = arith.maximumf %5, %6 : vector<32x32xf32>
    %c0_6 = arith.constant 0 : index
    %c0_7 = arith.constant 0 : index
    %8 = vector.load %arg4[%c0_6, %c0_7] : memref<32x48xf32, #tpu.memory_space<vmem>>, vector<32x48xf32>
    %cst_8 = arith.constant dense<0.000000e+00> : vector<32x48xf32>
    %9 = tpu.matmul %7, %8, %cst_8 {dimension_numbers = #tpu.dot_dimension_numbers<[1], [0], [0], [1], [0, 0, 1, 1], [], []>} : vector<32x32xf32>, vector<32x48xf32>, vector<32x48xf32> -> vector<32x48xf32>
    %c0_9 = arith.constant 0 : index
    %c0_10 = arith.constant 0 : index
    %10 = vector.load %arg5[%c0_9, %c0_10] : memref<1x48xf32, #tpu.memory_space<vmem>>, vector<1x48xf32>
    %11 = vector.broadcast %10 : vector<1x48xf32> to vector<32x48xf32>
    %12 = arith.addf %9, %11 : vector<32x48xf32>
    %c0_11 = arith.constant 0 : index
    %c0_12 = arith.constant 0 : index
    %13 = vector.load %arg8[%c0_11, %c0_12] : memref<32x48xf32, #tpu.memory_space<vmem>>, vector<32x48xf32>
    %14 = arith.mulf %12, %13 : vector<32x48xf32>
    %15 = vector.extract_strided_slice %14 {offsets = [0, 0], sizes = [16, 48], strides = [1, 1]} : vector<32x48xf32> to vector<16x48xf32>
    %cst_13 = arith.constant dense<0.000000e+00> : vector<16xf32>
    %16 = vector.multi_reduction <add>, %15, %cst_13 [1] : vector<16x48xf32> to vector<16xf32>
    %17 = vector.shape_cast %16 : vector<16xf32> to vector<16x1xf32>
    %cst_14 = arith.constant dense<0.000000e+00> : vector<1xf32>
    %18 = vector.multi_reduction <add>, %17, %cst_14 [0] : vector<16x1xf32> to vector<1xf32>
    %19 = vector.shape_cast %18 : vector<1xf32> to vector<1x1xf32>
    %20 = vector.extract_strided_slice %14 {offsets = [16, 0], sizes = [16, 48], strides = [1, 1]} : vector<32x48xf32> to vector<16x48xf32>
    %cst_15 = arith.constant dense<0.000000e+00> : vector<16xf32>
    %21 = vector.multi_reduction <add>, %20, %cst_15 [1] : vector<16x48xf32> to vector<16xf32>
    %22 = vector.shape_cast %21 : vector<16xf32> to vector<16x1xf32>
    %cst_16 = arith.constant dense<0.000000e+00> : vector<1xf32>
    %23 = vector.multi_reduction <add>, %22, %cst_16 [0] : vector<16x1xf32> to vector<1xf32>
    %24 = vector.shape_cast %23 : vector<1xf32> to vector<1x1xf32>
    %c0_17 = arith.constant 0 : index
    %c0_18 = arith.constant 0 : index
    %25 = vector.load %arg7[%c0_17, %c0_18] : memref<32x32xf32, #tpu.memory_space<vmem>>, vector<32x32xf32>
    %cst_19 = arith.constant dense<0.000000e+00> : vector<32x48xf32>
    %26 = tpu.matmul %25, %12, %cst_19 {dimension_numbers = #tpu.dot_dimension_numbers<[1], [0], [0], [1], [0, 0, 1, 1], [], []>} : vector<32x32xf32>, vector<32x48xf32>, vector<32x48xf32> -> vector<32x48xf32>
    %c0_20 = arith.constant 0 : index
    %c0_21 = arith.constant 0 : index
    %27 = vector.load %arg6[%c0_20, %c0_21] : memref<48x48xf32, #tpu.memory_space<vmem>>, vector<48x48xf32>
    %cst_22 = arith.constant dense<0xFF800000> : vector<48xf32>
    %28 = vector.multi_reduction <maximumf>, %27, %cst_22 [1] : vector<48x48xf32> to vector<48xf32>
    %29 = vector.shape_cast %28 : vector<48xf32> to vector<48x1xf32>
    %cst_23 = arith.constant dense<0xFF800000> : vector<1xf32>
    %30 = vector.multi_reduction <maximumf>, %29, %cst_23 [0] : vector<48x1xf32> to vector<1xf32>
    %31 = vector.shape_cast %30 : vector<1xf32> to vector<1x1xf32>
    %32 = vector.broadcast %31 : vector<1x1xf32> to vector<48x48xf32>
    %33 = arith.subf %27, %32 : vector<48x48xf32>
    %34 = math.exp %33 : vector<48x48xf32>
    %cst_24 = arith.constant 0.000000e+00 : f32
    %35 = vector.broadcast %cst_24 : f32 to vector<8x48xf32>
    %c0_25 = arith.constant 0 : index
    %c0_26 = arith.constant 0 : index
    %36 = vector.load %arg10[%c0_25, %c0_26] : memref<24x48xf32, #tpu.memory_space<vmem>>, vector<8x48xf32>
    tpu.vector_store %arg10[%c0_25, %c0_26], %35 {strides = array<i32>} : memref<24x48xf32, #tpu.memory_space<vmem>>, vector<8x48xf32>,
    %37 = vector.extract_strided_slice %26 {offsets = [0, 0], sizes = [16, 48], strides = [1, 1]} : vector<32x48xf32> to vector<16x48xf32>
    %c8 = arith.constant 8 : index
    %c0_27 = arith.constant 0 : index
    %38 = vector.load %arg10[%c8, %c0_27] : memref<24x48xf32, #tpu.memory_space<vmem>>, vector<16x48xf32>
    tpu.vector_store %arg10[%c8, %c0_27], %37 {strides = array<i32>} : memref<24x48xf32, #tpu.memory_space<vmem>>, vector<16x48xf32>,
    %cst_28 = arith.constant -1.000000e+30 : f32
    %39 = vector.broadcast %cst_28 : f32 to vector<8x48xf32>
    %c0_29 = arith.constant 0 : index
    %c0_30 = arith.constant 0 : index
    %40 = vector.load %arg12[%c0_29, %c0_30] : memref<24x48xf32, #tpu.memory_space<vmem>>, vector<8x48xf32>
    tpu.vector_store %arg12[%c0_29, %c0_30], %39 {strides = array<i32>} : memref<24x48xf32, #tpu.memory_space<vmem>>, vector<8x48xf32>,
    %cst_31 = arith.constant 0.000000e+00 : f32
    %41 = vector.broadcast %cst_31 : f32 to vector<1x48xf32>
    %c7 = arith.constant 7 : index
    %c0_32 = arith.constant 0 : index
    %42 = vector.load %arg12[%c7, %c0_32] : memref<24x48xf32, #tpu.memory_space<vmem>>, vector<1x48xf32>
    tpu.vector_store %arg12[%c7, %c0_32], %41 {strides = array<i32>} : memref<24x48xf32, #tpu.memory_space<vmem>>, vector<1x48xf32>,
    %cst_33 = arith.constant 0.000000e+00 : f32
    %43 = vector.broadcast %cst_33 : f32 to vector<8x48xf32>
    %c0_34 = arith.constant 0 : index
    %c0_35 = arith.constant 0 : index
    %44 = vector.load %arg11[%c0_34, %c0_35] : memref<24x48xf32, #tpu.memory_space<vmem>>, vector<8x48xf32>
    tpu.vector_store %arg11[%c0_34, %c0_35], %43 {strides = array<i32>} : memref<24x48xf32, #tpu.memory_space<vmem>>, vector<8x48xf32>,
    %45 = vector.extract_strided_slice %26 {offsets = [16, 0], sizes = [16, 48], strides = [1, 1]} : vector<32x48xf32> to vector<16x48xf32>
    %c8_36 = arith.constant 8 : index
    %c0_37 = arith.constant 0 : index
    %46 = vector.load %arg11[%c8_36, %c0_37] : memref<24x48xf32, #tpu.memory_space<vmem>>, vector<16x48xf32>
    tpu.vector_store %arg11[%c8_36, %c0_37], %45 {strides = array<i32>} : memref<24x48xf32, #tpu.memory_space<vmem>>, vector<16x48xf32>,
    %cst_38 = arith.constant -1.000000e+30 : f32
    %47 = vector.broadcast %cst_38 : f32 to vector<8x48xf32>
    %c0_39 = arith.constant 0 : index
    %c0_40 = arith.constant 0 : index
    %48 = vector.load %arg13[%c0_39, %c0_40] : memref<24x48xf32, #tpu.memory_space<vmem>>, vector<8x48xf32>
    tpu.vector_store %arg13[%c0_39, %c0_40], %47 {strides = array<i32>} : memref<24x48xf32, #tpu.memory_space<vmem>>, vector<8x48xf32>,
    %cst_41 = arith.constant 0.000000e+00 : f32
    %49 = vector.broadcast %cst_41 : f32 to vector<1x48xf32>
    %c7_42 = arith.constant 7 : index
    %c0_43 = arith.constant 0 : index
    %50 = vector.load %arg13[%c7_42, %c0_43] : memref<24x48xf32, #tpu.memory_space<vmem>>, vector<1x48xf32>
    tpu.vector_store %arg13[%c7_42, %c0_43], %49 {strides = array<i32>} : memref<24x48xf32, #tpu.memory_space<vmem>>, vector<1x48xf32>,
    %c8_44 = arith.constant 8 : index
    %c0_45 = arith.constant 0 : index
    %51 = vector.load %arg10[%c8_44, %c0_45] : memref<24x48xf32, #tpu.memory_space<vmem>>, vector<1x48xf32>
    %c0_46 = arith.constant 0 : index
    %c0_47 = arith.constant 0 : index
    %52 = vector.load %arg10[%c0_46, %c0_47] : memref<24x48xf32, #tpu.memory_space<vmem>>, vector<8x48xf32>
    %c0_48 = arith.constant 0 : index
    %c0_49 = arith.constant 0 : index
    %53 = vector.load %arg12[%c0_48, %c0_49] : memref<24x48xf32, #tpu.memory_space<vmem>>, vector<8x48xf32>
    %54 = vector.broadcast %51 : vector<1x48xf32> to vector<8x48xf32>
    %55 = arith.addf %54, %53 : vector<8x48xf32>
    %56 = arith.subf %55, %52 : vector<8x48xf32>
    %cst_50 = arith.constant dense<0xFF800000> : vector<48xf32>
    %57 = vector.multi_reduction <maximumf>, %56, %cst_50 [0] : vector<8x48xf32> to vector<48xf32>
    %58 = vector.shape_cast %57 : vector<48xf32> to vector<1x48xf32>
    %59 = vector.broadcast %58 : vector<1x48xf32> to vector<8x48xf32>
    %60 = arith.subf %56, %59 : vector<8x48xf32>
    %61 = math.exp %60 : vector<8x48xf32>
    %cst_51 = arith.constant dense<0.000000e+00> : vector<48xf32>
    %62 = vector.multi_reduction <add>, %61, %cst_51 [0] : vector<8x48xf32> to vector<48xf32>
    %63 = vector.shape_cast %62 : vector<48xf32> to vector<1x48xf32>
    %64 = math.log %63 : vector<1x48xf32>
    %65 = arith.addf %58, %64 : vector<1x48xf32>
    %c8_52 = arith.constant 8 : index
    %c0_53 = arith.constant 0 : index
    %66 = vector.load %arg11[%c8_52, %c0_53] : memref<24x48xf32, #tpu.memory_space<vmem>>, vector<1x48xf32>
    %c0_54 = arith.constant 0 : index
    %c0_55 = arith.constant 0 : index
    %67 = vector.load %arg11[%c0_54, %c0_55] : memref<24x48xf32, #tpu.memory_space<vmem>>, vector<8x48xf32>
    %c0_56 = arith.constant 0 : index
    %c0_57 = arith.constant 0 : index
    %68 = vector.load %arg13[%c0_56, %c0_57] : memref<24x48xf32, #tpu.memory_space<vmem>>, vector<8x48xf32>
    %69 = vector.broadcast %66 : vector<1x48xf32> to vector<8x48xf32>
    %70 = arith.addf %69, %68 : vector<8x48xf32>
    %71 = arith.subf %70, %67 : vector<8x48xf32>
    %cst_58 = arith.constant dense<0xFF800000> : vector<48xf32>
    %72 = vector.multi_reduction <maximumf>, %71, %cst_58 [0] : vector<8x48xf32> to vector<48xf32>
    %73 = vector.shape_cast %72 : vector<48xf32> to vector<1x48xf32>
    %74 = vector.broadcast %73 : vector<1x48xf32> to vector<8x48xf32>
    %75 = arith.subf %71, %74 : vector<8x48xf32>
    %76 = math.exp %75 : vector<8x48xf32>
    %cst_59 = arith.constant dense<0.000000e+00> : vector<48xf32>
    %77 = vector.multi_reduction <add>, %76, %cst_59 [0] : vector<8x48xf32> to vector<48xf32>
    %78 = vector.shape_cast %77 : vector<48xf32> to vector<1x48xf32>
    %79 = math.log %78 : vector<1x48xf32>
    %80 = arith.addf %73, %79 : vector<1x48xf32>
    %81 = tpu.concatenate %65, %80 in 0 : vector<1x48xf32>, vector<1x48xf32> -> vector<2x48xf32>
    %cst_60 = arith.constant dense<0xFF800000> : vector<2xf32>
    %82 = vector.multi_reduction <maximumf>, %81, %cst_60 [1] : vector<2x48xf32> to vector<2xf32>
    %83 = vector.shape_cast %82 : vector<2xf32> to vector<2x1xf32>
    %84 = vector.broadcast %83 : vector<2x1xf32> to vector<2x48xf32>
    %85 = arith.subf %81, %84 : vector<2x48xf32>
    %86 = math.exp %85 : vector<2x48xf32>
    %cst_61 = arith.constant dense<0.000000e+00> : vector<2x48xf32>
    %87 = tpu.matmul %86, %34, %cst_61 {dimension_numbers = #tpu.dot_dimension_numbers<[1], [0], [0], [1], [0, 0, 1, 1], [], []>} : vector<2x48xf32>, vector<48x48xf32>, vector<2x48xf32> -> vector<2x48xf32>
    %88 = math.log %87 : vector<2x48xf32>
    %89 = vector.broadcast %83 : vector<2x1xf32> to vector<2x48xf32>
    %90 = arith.addf %88, %89 : vector<2x48xf32>
    %91 = vector.broadcast %31 : vector<1x1xf32> to vector<2x48xf32>
    %92 = arith.addf %90, %91 : vector<2x48xf32>
    %93 = vector.extract_strided_slice %92 {offsets = [0, 0], sizes = [1, 48], strides = [1, 1]} : vector<2x48xf32> to vector<1x48xf32>
    %c8_62 = arith.constant 8 : index
    %c0_63 = arith.constant 0 : index
    %94 = vector.load %arg12[%c8_62, %c0_63] : memref<24x48xf32, #tpu.memory_space<vmem>>, vector<1x48xf32>
    tpu.vector_store %arg12[%c8_62, %c0_63], %93 {strides = array<i32>} : memref<24x48xf32, #tpu.memory_space<vmem>>, vector<1x48xf32>,
    %95 = vector.extract_strided_slice %92 {offsets = [1, 0], sizes = [1, 48], strides = [1, 1]} : vector<2x48xf32> to vector<1x48xf32>
    %c8_64 = arith.constant 8 : index
    %c0_65 = arith.constant 0 : index
    %96 = vector.load %arg13[%c8_64, %c0_65] : memref<24x48xf32, #tpu.memory_space<vmem>>, vector<1x48xf32>
    tpu.vector_store %arg13[%c8_64, %c0_65], %95 {strides = array<i32>} : memref<24x48xf32, #tpu.memory_space<vmem>>, vector<1x48xf32>,
    %c9 = arith.constant 9 : index
    %c0_66 = arith.constant 0 : index
    %97 = vector.load %arg10[%c9, %c0_66] : memref<24x48xf32, #tpu.memory_space<vmem>>, vector<1x48xf32>
    %c1 = arith.constant 1 : index
    %c0_67 = arith.constant 0 : index
    %98 = vector.load %arg10[%c1, %c0_67] : memref<24x48xf32, #tpu.memory_space<vmem>>, vector<8x48xf32>
    %c1_68 = arith.constant 1 : index
    %c0_69 = arith.constant 0 : index
    %99 = vector.load %arg12[%c1_68, %c0_69] : memref<24x48xf32, #tpu.memory_space<vmem>>, vector<8x48xf32>
    %100 = vector.broadcast %97 : vector<1x48xf32> to vector<8x48xf32>
    %101 = arith.addf %100, %99 : vector<8x48xf32>
    %102 = arith.subf %101, %98 : vector<8x48xf32>
    %cst_70 = arith.constant dense<0xFF800000> : vector<48xf32>
    %103 = vector.multi_reduction <maximumf>, %102, %cst_70 [0] : vector<8x48xf32> to vector<48xf32>
    %104 = vector.shape_cast %103 : vector<48xf32> to vector<1x48xf32>
    %105 = vector.broadcast %104 : vector<1x48xf32> to vector<8x48xf32>
    %106 = arith.subf %102, %105 : vector<8x48xf32>
    %107 = math.exp %106 : vector<8x48xf32>
    %cst_71 = arith.constant dense<0.000000e+00> : vector<48xf32>
    %108 = vector.multi_reduction <add>, %107, %cst_71 [0] : vector<8x48xf32> to vector<48xf32>
    %109 = vector.shape_cast %108 : vector<48xf32> to vector<1x48xf32>
    %110 = math.log %109 : vector<1x48xf32>
    %111 = arith.addf %104, %110 : vector<1x48xf32>
    %c9_72 = arith.constant 9 : index
    %c0_73 = arith.constant 0 : index
    %112 = vector.load %arg11[%c9_72, %c0_73] : memref<24x48xf32, #tpu.memory_space<vmem>>, vector<1x48xf32>
    %c1_74 = arith.constant 1 : index
    %c0_75 = arith.constant 0 : index
    %113 = vector.load %arg11[%c1_74, %c0_75] : memref<24x48xf32, #tpu.memory_space<vmem>>, vector<8x48xf32>
    %c1_76 = arith.constant 1 : index
    %c0_77 = arith.constant 0 : index
    %114 = vector.load %arg13[%c1_76, %c0_77] : memref<24x48xf32, #tpu.memory_space<vmem>>, vector<8x48xf32>
    %115 = vector.broadcast %112 : vector<1x48xf32> to vector<8x48xf32>
    %116 = arith.addf %115, %114 : vector<8x48xf32>
    %117 = arith.subf %116, %113 : vector<8x48xf32>
    %cst_78 = arith.constant dense<0xFF800000> : vector<48xf32>
    %118 = vector.multi_reduction <maximumf>, %117, %cst_78 [0] : vector<8x48xf32> to vector<48xf32>
    %119 = vector.shape_cast %118 : vector<48xf32> to vector<1x48xf32>
    %120 = vector.broadcast %119 : vector<1x48xf32> to vector<8x48xf32>
    %121 = arith.subf %117, %120 : vector<8x48xf32>
    %122 = math.exp %121 : vector<8x48xf32>
    %cst_79 = arith.constant dense<0.000000e+00> : vector<48xf32>
    %123 = vector.multi_reduction <add>, %122, %cst_79 [0] : vector<8x48xf32> to vector<48xf32>
    %124 = vector.shape_cast %123 : vector<48xf32> to vector<1x48xf32>
    %125 = math.log %124 : vector<1x48xf32>
    %126 = arith.addf %119, %125 : vector<1x48xf32>
    %127 = tpu.concatenate %111, %126 in 0 : vector<1x48xf32>, vector<1x48xf32> -> vector<2x48xf32>
    %cst_80 = arith.constant dense<0xFF800000> : vector<2xf32>
    %128 = vector.multi_reduction <maximumf>, %127, %cst_80 [1] : vector<2x48xf32> to vector<2xf32>
    %129 = vector.shape_cast %128 : vector<2xf32> to vector<2x1xf32>
    %130 = vector.broadcast %129 : vector<2x1xf32> to vector<2x48xf32>
    %131 = arith.subf %127, %130 : vector<2x48xf32>
    %132 = math.exp %131 : vector<2x48xf32>
    %cst_81 = arith.constant dense<0.000000e+00> : vector<2x48xf32>
    %133 = tpu.matmul %132, %34, %cst_81 {dimension_numbers = #tpu.dot_dimension_numbers<[1], [0], [0], [1], [0, 0, 1, 1], [], []>} : vector<2x48xf32>, vector<48x48xf32>, vector<2x48xf32> -> vector<2x48xf32>
    %134 = math.log %133 : vector<2x48xf32>
    %135 = vector.broadcast %129 : vector<2x1xf32> to vector<2x48xf32>
    %136 = arith.addf %134, %135 : vector<2x48xf32>
    %137 = vector.broadcast %31 : vector<1x1xf32> to vector<2x48xf32>
    %138 = arith.addf %136, %137 : vector<2x48xf32>
    %139 = vector.extract_strided_slice %138 {offsets = [0, 0], sizes = [1, 48], strides = [1, 1]} : vector<2x48xf32> to vector<1x48xf32>
    %c9_82 = arith.constant 9 : index
    %c0_83 = arith.constant 0 : index
    %140 = vector.load %arg12[%c9_82, %c0_83] : memref<24x48xf32, #tpu.memory_space<vmem>>, vector<1x48xf32>
    tpu.vector_store %arg12[%c9_82, %c0_83], %139 {strides = array<i32>} : memref<24x48xf32, #tpu.memory_space<vmem>>, vector<1x48xf32>,
    %141 = vector.extract_strided_slice %138 {offsets = [1, 0], sizes = [1, 48], strides = [1, 1]} : vector<2x48xf32> to vector<1x48xf32>
    %c9_84 = arith.constant 9 : index
    %c0_85 = arith.constant 0 : index
    %142 = vector.load %arg13[%c9_84, %c0_85] : memref<24x48xf32, #tpu.memory_space<vmem>>, vector<1x48xf32>
    tpu.vector_store %arg13[%c9_84, %c0_85], %141 {strides = array<i32>} : memref<24x48xf32, #tpu.memory_space<vmem>>, vector<1x48xf32>,
    %c10 = arith.constant 10 : index
    %c0_86 = arith.constant 0 : index
    %143 = vector.load %arg10[%c10, %c0_86] : memref<24x48xf32, #tpu.memory_space<vmem>>, vector<1x48xf32>
    %c2 = arith.constant 2 : index
    %c0_87 = arith.constant 0 : index
    %144 = vector.load %arg10[%c2, %c0_87] : memref<24x48xf32, #tpu.memory_space<vmem>>, vector<8x48xf32>
    %c2_88 = arith.constant 2 : index
    %c0_89 = arith.constant 0 : index
    %145 = vector.load %arg12[%c2_88, %c0_89] : memref<24x48xf32, #tpu.memory_space<vmem>>, vector<8x48xf32>
    %146 = vector.broadcast %143 : vector<1x48xf32> to vector<8x48xf32>
    %147 = arith.addf %146, %145 : vector<8x48xf32>
    %148 = arith.subf %147, %144 : vector<8x48xf32>
    %cst_90 = arith.constant dense<0xFF800000> : vector<48xf32>
    %149 = vector.multi_reduction <maximumf>, %148, %cst_90 [0] : vector<8x48xf32> to vector<48xf32>
    %150 = vector.shape_cast %149 : vector<48xf32> to vector<1x48xf32>
    %151 = vector.broadcast %150 : vector<1x48xf32> to vector<8x48xf32>
    %152 = arith.subf %148, %151 : vector<8x48xf32>
    %153 = math.exp %152 : vector<8x48xf32>
    %cst_91 = arith.constant dense<0.000000e+00> : vector<48xf32>
    %154 = vector.multi_reduction <add>, %153, %cst_91 [0] : vector<8x48xf32> to vector<48xf32>
    %155 = vector.shape_cast %154 : vector<48xf32> to vector<1x48xf32>
    %156 = math.log %155 : vector<1x48xf32>
    %157 = arith.addf %150, %156 : vector<1x48xf32>
    %c10_92 = arith.constant 10 : index
    %c0_93 = arith.constant 0 : index
    %158 = vector.load %arg11[%c10_92, %c0_93] : memref<24x48xf32, #tpu.memory_space<vmem>>, vector<1x48xf32>
    %c2_94 = arith.constant 2 : index
    %c0_95 = arith.constant 0 : index
    %159 = vector.load %arg11[%c2_94, %c0_95] : memref<24x48xf32, #tpu.memory_space<vmem>>, vector<8x48xf32>
    %c2_96 = arith.constant 2 : index
    %c0_97 = arith.constant 0 : index
    %160 = vector.load %arg13[%c2_96, %c0_97] : memref<24x48xf32, #tpu.memory_space<vmem>>, vector<8x48xf32>
    %161 = vector.broadcast %158 : vector<1x48xf32> to vector<8x48xf32>
    %162 = arith.addf %161, %160 : vector<8x48xf32>
    %163 = arith.subf %162, %159 : vector<8x48xf32>
    %cst_98 = arith.constant dense<0xFF800000> : vector<48xf32>
    %164 = vector.multi_reduction <maximumf>, %163, %cst_98 [0] : vector<8x48xf32> to vector<48xf32>
    %165 = vector.shape_cast %164 : vector<48xf32> to vector<1x48xf32>
    %166 = vector.broadcast %165 : vector<1x48xf32> to vector<8x48xf32>
    %167 = arith.subf %163, %166 : vector<8x48xf32>
    %168 = math.exp %167 : vector<8x48xf32>
    %cst_99 = arith.constant dense<0.000000e+00> : vector<48xf32>
    %169 = vector.multi_reduction <add>, %168, %cst_99 [0] : vector<8x48xf32> to vector<48xf32>
    %170 = vector.shape_cast %169 : vector<48xf32> to vector<1x48xf32>
    %171 = math.log %170 : vector<1x48xf32>
    %172 = arith.addf %165, %171 : vector<1x48xf32>
    %173 = tpu.concatenate %157, %172 in 0 : vector<1x48xf32>, vector<1x48xf32> -> vector<2x48xf32>
    %cst_100 = arith.constant dense<0xFF800000> : vector<2xf32>
    %174 = vector.multi_reduction <maximumf>, %173, %cst_100 [1] : vector<2x48xf32> to vector<2xf32>
    %175 = vector.shape_cast %174 : vector<2xf32> to vector<2x1xf32>
    %176 = vector.broadcast %175 : vector<2x1xf32> to vector<2x48xf32>
    %177 = arith.subf %173, %176 : vector<2x48xf32>
    %178 = math.exp %177 : vector<2x48xf32>
    %cst_101 = arith.constant dense<0.000000e+00> : vector<2x48xf32>
    %179 = tpu.matmul %178, %34, %cst_101 {dimension_numbers = #tpu.dot_dimension_numbers<[1], [0], [0], [1], [0, 0, 1, 1], [], []>} : vector<2x48xf32>, vector<48x48xf32>, vector<2x48xf32> -> vector<2x48xf32>
    %180 = math.log %179 : vector<2x48xf32>
    %181 = vector.broadcast %175 : vector<2x1xf32> to vector<2x48xf32>
    %182 = arith.addf %180, %181 : vector<2x48xf32>
    %183 = vector.broadcast %31 : vector<1x1xf32> to vector<2x48xf32>
    %184 = arith.addf %182, %183 : vector<2x48xf32>
    %185 = vector.extract_strided_slice %184 {offsets = [0, 0], sizes = [1, 48], strides = [1, 1]} : vector<2x48xf32> to vector<1x48xf32>
    %c10_102 = arith.constant 10 : index
    %c0_103 = arith.constant 0 : index
    %186 = vector.load %arg12[%c10_102, %c0_103] : memref<24x48xf32, #tpu.memory_space<vmem>>, vector<1x48xf32>
    tpu.vector_store %arg12[%c10_102, %c0_103], %185 {strides = array<i32>} : memref<24x48xf32, #tpu.memory_space<vmem>>, vector<1x48xf32>,
    %187 = vector.extract_strided_slice %184 {offsets = [1, 0], sizes = [1, 48], strides = [1, 1]} : vector<2x48xf32> to vector<1x48xf32>
    %c10_104 = arith.constant 10 : index
    %c0_105 = arith.constant 0 : index
    %188 = vector.load %arg13[%c10_104, %c0_105] : memref<24x48xf32, #tpu.memory_space<vmem>>, vector<1x48xf32>
    tpu.vector_store %arg13[%c10_104, %c0_105], %187 {strides = array<i32>} : memref<24x48xf32, #tpu.memory_space<vmem>>, vector<1x48xf32>,
    %c11 = arith.constant 11 : index
    %c0_106 = arith.constant 0 : index
    %189 = vector.load %arg10[%c11, %c0_106] : memref<24x48xf32, #tpu.memory_space<vmem>>, vector<1x48xf32>
    %c3 = arith.constant 3 : index
    %c0_107 = arith.constant 0 : index
    %190 = vector.load %arg10[%c3, %c0_107] : memref<24x48xf32, #tpu.memory_space<vmem>>, vector<8x48xf32>
    %c3_108 = arith.constant 3 : index
    %c0_109 = arith.constant 0 : index
    %191 = vector.load %arg12[%c3_108, %c0_109] : memref<24x48xf32, #tpu.memory_space<vmem>>, vector<8x48xf32>
    %192 = vector.broadcast %189 : vector<1x48xf32> to vector<8x48xf32>
    %193 = arith.addf %192, %191 : vector<8x48xf32>
    %194 = arith.subf %193, %190 : vector<8x48xf32>
    %cst_110 = arith.constant dense<0xFF800000> : vector<48xf32>
    %195 = vector.multi_reduction <maximumf>, %194, %cst_110 [0] : vector<8x48xf32> to vector<48xf32>
    %196 = vector.shape_cast %195 : vector<48xf32> to vector<1x48xf32>
    %197 = vector.broadcast %196 : vector<1x48xf32> to vector<8x48xf32>
    %198 = arith.subf %194, %197 : vector<8x48xf32>
    %199 = math.exp %198 : vector<8x48xf32>
    %cst_111 = arith.constant dense<0.000000e+00> : vector<48xf32>
    %200 = vector.multi_reduction <add>, %199, %cst_111 [0] : vector<8x48xf32> to vector<48xf32>
    %201 = vector.shape_cast %200 : vector<48xf32> to vector<1x48xf32>
    %202 = math.log %201 : vector<1x48xf32>
    %203 = arith.addf %196, %202 : vector<1x48xf32>
    %c11_112 = arith.constant 11 : index
    %c0_113 = arith.constant 0 : index
    %204 = vector.load %arg11[%c11_112, %c0_113] : memref<24x48xf32, #tpu.memory_space<vmem>>, vector<1x48xf32>
    %c3_114 = arith.constant 3 : index
    %c0_115 = arith.constant 0 : index
    %205 = vector.load %arg11[%c3_114, %c0_115] : memref<24x48xf32, #tpu.memory_space<vmem>>, vector<8x48xf32>
    %c3_116 = arith.constant 3 : index
    %c0_117 = arith.constant 0 : index
    %206 = vector.load %arg13[%c3_116, %c0_117] : memref<24x48xf32, #tpu.memory_space<vmem>>, vector<8x48xf32>
    %207 = vector.broadcast %204 : vector<1x48xf32> to vector<8x48xf32>
    %208 = arith.addf %207, %206 : vector<8x48xf32>
    %209 = arith.subf %208, %205 : vector<8x48xf32>
    %cst_118 = arith.constant dense<0xFF800000> : vector<48xf32>
    %210 = vector.multi_reduction <maximumf>, %209, %cst_118 [0] : vector<8x48xf32> to vector<48xf32>
    %211 = vector.shape_cast %210 : vector<48xf32> to vector<1x48xf32>
    %212 = vector.broadcast %211 : vector<1x48xf32> to vector<8x48xf32>
    %213 = arith.subf %209, %212 : vector<8x48xf32>
    %214 = math.exp %213 : vector<8x48xf32>
    %cst_119 = arith.constant dense<0.000000e+00> : vector<48xf32>
    %215 = vector.multi_reduction <add>, %214, %cst_119 [0] : vector<8x48xf32> to vector<48xf32>
    %216 = vector.shape_cast %215 : vector<48xf32> to vector<1x48xf32>
    %217 = math.log %216 : vector<1x48xf32>
    %218 = arith.addf %211, %217 : vector<1x48xf32>
    %219 = tpu.concatenate %203, %218 in 0 : vector<1x48xf32>, vector<1x48xf32> -> vector<2x48xf32>
    %cst_120 = arith.constant dense<0xFF800000> : vector<2xf32>
    %220 = vector.multi_reduction <maximumf>, %219, %cst_120 [1] : vector<2x48xf32> to vector<2xf32>
    %221 = vector.shape_cast %220 : vector<2xf32> to vector<2x1xf32>
    %222 = vector.broadcast %221 : vector<2x1xf32> to vector<2x48xf32>
    %223 = arith.subf %219, %222 : vector<2x48xf32>
    %224 = math.exp %223 : vector<2x48xf32>
    %cst_121 = arith.constant dense<0.000000e+00> : vector<2x48xf32>
    %225 = tpu.matmul %224, %34, %cst_121 {dimension_numbers = #tpu.dot_dimension_numbers<[1], [0], [0], [1], [0, 0, 1, 1], [], []>} : vector<2x48xf32>, vector<48x48xf32>, vector<2x48xf32> -> vector<2x48xf32>
    %226 = math.log %225 : vector<2x48xf32>
    %227 = vector.broadcast %221 : vector<2x1xf32> to vector<2x48xf32>
    %228 = arith.addf %226, %227 : vector<2x48xf32>
    %229 = vector.broadcast %31 : vector<1x1xf32> to vector<2x48xf32>
    %230 = arith.addf %228, %229 : vector<2x48xf32>
    %231 = vector.extract_strided_slice %230 {offsets = [0, 0], sizes = [1, 48], strides = [1, 1]} : vector<2x48xf32> to vector<1x48xf32>
    %c11_122 = arith.constant 11 : index
    %c0_123 = arith.constant 0 : index
    %232 = vector.load %arg12[%c11_122, %c0_123] : memref<24x48xf32, #tpu.memory_space<vmem>>, vector<1x48xf32>
    tpu.vector_store %arg12[%c11_122, %c0_123], %231 {strides = array<i32>} : memref<24x48xf32, #tpu.memory_space<vmem>>, vector<1x48xf32>,
    %233 = vector.extract_strided_slice %230 {offsets = [1, 0], sizes = [1, 48], strides = [1, 1]} : vector<2x48xf32> to vector<1x48xf32>
    %c11_124 = arith.constant 11 : index
    %c0_125 = arith.constant 0 : index
    %234 = vector.load %arg13[%c11_124, %c0_125] : memref<24x48xf32, #tpu.memory_space<vmem>>, vector<1x48xf32>
    tpu.vector_store %arg13[%c11_124, %c0_125], %233 {strides = array<i32>} : memref<24x48xf32, #tpu.memory_space<vmem>>, vector<1x48xf32>,
    %c12 = arith.constant 12 : index
    %c0_126 = arith.constant 0 : index
    %235 = vector.load %arg10[%c12, %c0_126] : memref<24x48xf32, #tpu.memory_space<vmem>>, vector<1x48xf32>
    %c4 = arith.constant 4 : index
    %c0_127 = arith.constant 0 : index
    %236 = vector.load %arg10[%c4, %c0_127] : memref<24x48xf32, #tpu.memory_space<vmem>>, vector<8x48xf32>
    %c4_128 = arith.constant 4 : index
    %c0_129 = arith.constant 0 : index
    %237 = vector.load %arg12[%c4_128, %c0_129] : memref<24x48xf32, #tpu.memory_space<vmem>>, vector<8x48xf32>
    %238 = vector.broadcast %235 : vector<1x48xf32> to vector<8x48xf32>
    %239 = arith.addf %238, %237 : vector<8x48xf32>
    %240 = arith.subf %239, %236 : vector<8x48xf32>
    %cst_130 = arith.constant dense<0xFF800000> : vector<48xf32>
    %241 = vector.multi_reduction <maximumf>, %240, %cst_130 [0] : vector<8x48xf32> to vector<48xf32>
    %242 = vector.shape_cast %241 : vector<48xf32> to vector<1x48xf32>
    %243 = vector.broadcast %242 : vector<1x48xf32> to vector<8x48xf32>
    %244 = arith.subf %240, %243 : vector<8x48xf32>
    %245 = math.exp %244 : vector<8x48xf32>
    %cst_131 = arith.constant dense<0.000000e+00> : vector<48xf32>
    %246 = vector.multi_reduction <add>, %245, %cst_131 [0] : vector<8x48xf32> to vector<48xf32>
    %247 = vector.shape_cast %246 : vector<48xf32> to vector<1x48xf32>
    %248 = math.log %247 : vector<1x48xf32>
    %249 = arith.addf %242, %248 : vector<1x48xf32>
    %c12_132 = arith.constant 12 : index
    %c0_133 = arith.constant 0 : index
    %250 = vector.load %arg11[%c12_132, %c0_133] : memref<24x48xf32, #tpu.memory_space<vmem>>, vector<1x48xf32>
    %c4_134 = arith.constant 4 : index
    %c0_135 = arith.constant 0 : index
    %251 = vector.load %arg11[%c4_134, %c0_135] : memref<24x48xf32, #tpu.memory_space<vmem>>, vector<8x48xf32>
    %c4_136 = arith.constant 4 : index
    %c0_137 = arith.constant 0 : index
    %252 = vector.load %arg13[%c4_136, %c0_137] : memref<24x48xf32, #tpu.memory_space<vmem>>, vector<8x48xf32>
    %253 = vector.broadcast %250 : vector<1x48xf32> to vector<8x48xf32>
    %254 = arith.addf %253, %252 : vector<8x48xf32>
    %255 = arith.subf %254, %251 : vector<8x48xf32>
    %cst_138 = arith.constant dense<0xFF800000> : vector<48xf32>
    %256 = vector.multi_reduction <maximumf>, %255, %cst_138 [0] : vector<8x48xf32> to vector<48xf32>
    %257 = vector.shape_cast %256 : vector<48xf32> to vector<1x48xf32>
    %258 = vector.broadcast %257 : vector<1x48xf32> to vector<8x48xf32>
    %259 = arith.subf %255, %258 : vector<8x48xf32>
    %260 = math.exp %259 : vector<8x48xf32>
    %cst_139 = arith.constant dense<0.000000e+00> : vector<48xf32>
    %261 = vector.multi_reduction <add>, %260, %cst_139 [0] : vector<8x48xf32> to vector<48xf32>
    %262 = vector.shape_cast %261 : vector<48xf32> to vector<1x48xf32>
    %263 = math.log %262 : vector<1x48xf32>
    %264 = arith.addf %257, %263 : vector<1x48xf32>
    %265 = tpu.concatenate %249, %264 in 0 : vector<1x48xf32>, vector<1x48xf32> -> vector<2x48xf32>
    %cst_140 = arith.constant dense<0xFF800000> : vector<2xf32>
    %266 = vector.multi_reduction <maximumf>, %265, %cst_140 [1] : vector<2x48xf32> to vector<2xf32>
    %267 = vector.shape_cast %266 : vector<2xf32> to vector<2x1xf32>
    %268 = vector.broadcast %267 : vector<2x1xf32> to vector<2x48xf32>
    %269 = arith.subf %265, %268 : vector<2x48xf32>
    %270 = math.exp %269 : vector<2x48xf32>
    %cst_141 = arith.constant dense<0.000000e+00> : vector<2x48xf32>
    %271 = tpu.matmul %270, %34, %cst_141 {dimension_numbers = #tpu.dot_dimension_numbers<[1], [0], [0], [1], [0, 0, 1, 1], [], []>} : vector<2x48xf32>, vector<48x48xf32>, vector<2x48xf32> -> vector<2x48xf32>
    %272 = math.log %271 : vector<2x48xf32>
    %273 = vector.broadcast %267 : vector<2x1xf32> to vector<2x48xf32>
    %274 = arith.addf %272, %273 : vector<2x48xf32>
    %275 = vector.broadcast %31 : vector<1x1xf32> to vector<2x48xf32>
    %276 = arith.addf %274, %275 : vector<2x48xf32>
    %277 = vector.extract_strided_slice %276 {offsets = [0, 0], sizes = [1, 48], strides = [1, 1]} : vector<2x48xf32> to vector<1x48xf32>
    %c12_142 = arith.constant 12 : index
    %c0_143 = arith.constant 0 : index
    %278 = vector.load %arg12[%c12_142, %c0_143] : memref<24x48xf32, #tpu.memory_space<vmem>>, vector<1x48xf32>
    tpu.vector_store %arg12[%c12_142, %c0_143], %277 {strides = array<i32>} : memref<24x48xf32, #tpu.memory_space<vmem>>, vector<1x48xf32>,
    %279 = vector.extract_strided_slice %276 {offsets = [1, 0], sizes = [1, 48], strides = [1, 1]} : vector<2x48xf32> to vector<1x48xf32>
    %c12_144 = arith.constant 12 : index
    %c0_145 = arith.constant 0 : index
    %280 = vector.load %arg13[%c12_144, %c0_145] : memref<24x48xf32, #tpu.memory_space<vmem>>, vector<1x48xf32>
    tpu.vector_store %arg13[%c12_144, %c0_145], %279 {strides = array<i32>} : memref<24x48xf32, #tpu.memory_space<vmem>>, vector<1x48xf32>,
    %c13 = arith.constant 13 : index
    %c0_146 = arith.constant 0 : index
    %281 = vector.load %arg10[%c13, %c0_146] : memref<24x48xf32, #tpu.memory_space<vmem>>, vector<1x48xf32>
    %c5 = arith.constant 5 : index
    %c0_147 = arith.constant 0 : index
    %282 = vector.load %arg10[%c5, %c0_147] : memref<24x48xf32, #tpu.memory_space<vmem>>, vector<8x48xf32>
    %c5_148 = arith.constant 5 : index
    %c0_149 = arith.constant 0 : index
    %283 = vector.load %arg12[%c5_148, %c0_149] : memref<24x48xf32, #tpu.memory_space<vmem>>, vector<8x48xf32>
    %284 = vector.broadcast %281 : vector<1x48xf32> to vector<8x48xf32>
    %285 = arith.addf %284, %283 : vector<8x48xf32>
    %286 = arith.subf %285, %282 : vector<8x48xf32>
    %cst_150 = arith.constant dense<0xFF800000> : vector<48xf32>
    %287 = vector.multi_reduction <maximumf>, %286, %cst_150 [0] : vector<8x48xf32> to vector<48xf32>
    %288 = vector.shape_cast %287 : vector<48xf32> to vector<1x48xf32>
    %289 = vector.broadcast %288 : vector<1x48xf32> to vector<8x48xf32>
    %290 = arith.subf %286, %289 : vector<8x48xf32>
    %291 = math.exp %290 : vector<8x48xf32>
    %cst_151 = arith.constant dense<0.000000e+00> : vector<48xf32>
    %292 = vector.multi_reduction <add>, %291, %cst_151 [0] : vector<8x48xf32> to vector<48xf32>
    %293 = vector.shape_cast %292 : vector<48xf32> to vector<1x48xf32>
    %294 = math.log %293 : vector<1x48xf32>
    %295 = arith.addf %288, %294 : vector<1x48xf32>
    %c13_152 = arith.constant 13 : index
    %c0_153 = arith.constant 0 : index
    %296 = vector.load %arg11[%c13_152, %c0_153] : memref<24x48xf32, #tpu.memory_space<vmem>>, vector<1x48xf32>
    %c5_154 = arith.constant 5 : index
    %c0_155 = arith.constant 0 : index
    %297 = vector.load %arg11[%c5_154, %c0_155] : memref<24x48xf32, #tpu.memory_space<vmem>>, vector<8x48xf32>
    %c5_156 = arith.constant 5 : index
    %c0_157 = arith.constant 0 : index
    %298 = vector.load %arg13[%c5_156, %c0_157] : memref<24x48xf32, #tpu.memory_space<vmem>>, vector<8x48xf32>
    %299 = vector.broadcast %296 : vector<1x48xf32> to vector<8x48xf32>
    %300 = arith.addf %299, %298 : vector<8x48xf32>
    %301 = arith.subf %300, %297 : vector<8x48xf32>
    %cst_158 = arith.constant dense<0xFF800000> : vector<48xf32>
    %302 = vector.multi_reduction <maximumf>, %301, %cst_158 [0] : vector<8x48xf32> to vector<48xf32>
    %303 = vector.shape_cast %302 : vector<48xf32> to vector<1x48xf32>
    %304 = vector.broadcast %303 : vector<1x48xf32> to vector<8x48xf32>
    %305 = arith.subf %301, %304 : vector<8x48xf32>
    %306 = math.exp %305 : vector<8x48xf32>
    %cst_159 = arith.constant dense<0.000000e+00> : vector<48xf32>
    %307 = vector.multi_reduction <add>, %306, %cst_159 [0] : vector<8x48xf32> to vector<48xf32>
    %308 = vector.shape_cast %307 : vector<48xf32> to vector<1x48xf32>
    %309 = math.log %308 : vector<1x48xf32>
    %310 = arith.addf %303, %309 : vector<1x48xf32>
    %311 = tpu.concatenate %295, %310 in 0 : vector<1x48xf32>, vector<1x48xf32> -> vector<2x48xf32>
    %cst_160 = arith.constant dense<0xFF800000> : vector<2xf32>
    %312 = vector.multi_reduction <maximumf>, %311, %cst_160 [1] : vector<2x48xf32> to vector<2xf32>
    %313 = vector.shape_cast %312 : vector<2xf32> to vector<2x1xf32>
    %314 = vector.broadcast %313 : vector<2x1xf32> to vector<2x48xf32>
    %315 = arith.subf %311, %314 : vector<2x48xf32>
    %316 = math.exp %315 : vector<2x48xf32>
    %cst_161 = arith.constant dense<0.000000e+00> : vector<2x48xf32>
    %317 = tpu.matmul %316, %34, %cst_161 {dimension_numbers = #tpu.dot_dimension_numbers<[1], [0], [0], [1], [0, 0, 1, 1], [], []>} : vector<2x48xf32>, vector<48x48xf32>, vector<2x48xf32> -> vector<2x48xf32>
    %318 = math.log %317 : vector<2x48xf32>
    %319 = vector.broadcast %313 : vector<2x1xf32> to vector<2x48xf32>
    %320 = arith.addf %318, %319 : vector<2x48xf32>
    %321 = vector.broadcast %31 : vector<1x1xf32> to vector<2x48xf32>
    %322 = arith.addf %320, %321 : vector<2x48xf32>
    %323 = vector.extract_strided_slice %322 {offsets = [0, 0], sizes = [1, 48], strides = [1, 1]} : vector<2x48xf32> to vector<1x48xf32>
    %c13_162 = arith.constant 13 : index
    %c0_163 = arith.constant 0 : index
    %324 = vector.load %arg12[%c13_162, %c0_163] : memref<24x48xf32, #tpu.memory_space<vmem>>, vector<1x48xf32>
    tpu.vector_store %arg12[%c13_162, %c0_163], %323 {strides = array<i32>} : memref<24x48xf32, #tpu.memory_space<vmem>>, vector<1x48xf32>,
    %325 = vector.extract_strided_slice %322 {offsets = [1, 0], sizes = [1, 48], strides = [1, 1]} : vector<2x48xf32> to vector<1x48xf32>
    %c13_164 = arith.constant 13 : index
    %c0_165 = arith.constant 0 : index
    %326 = vector.load %arg13[%c13_164, %c0_165] : memref<24x48xf32, #tpu.memory_space<vmem>>, vector<1x48xf32>
    tpu.vector_store %arg13[%c13_164, %c0_165], %325 {strides = array<i32>} : memref<24x48xf32, #tpu.memory_space<vmem>>, vector<1x48xf32>,
    %c14 = arith.constant 14 : index
    %c0_166 = arith.constant 0 : index
    %327 = vector.load %arg10[%c14, %c0_166] : memref<24x48xf32, #tpu.memory_space<vmem>>, vector<1x48xf32>
    %c6 = arith.constant 6 : index
    %c0_167 = arith.constant 0 : index
    %328 = vector.load %arg10[%c6, %c0_167] : memref<24x48xf32, #tpu.memory_space<vmem>>, vector<8x48xf32>
    %c6_168 = arith.constant 6 : index
    %c0_169 = arith.constant 0 : index
    %329 = vector.load %arg12[%c6_168, %c0_169] : memref<24x48xf32, #tpu.memory_space<vmem>>, vector<8x48xf32>
    %330 = vector.broadcast %327 : vector<1x48xf32> to vector<8x48xf32>
    %331 = arith.addf %330, %329 : vector<8x48xf32>
    %332 = arith.subf %331, %328 : vector<8x48xf32>
    %cst_170 = arith.constant dense<0xFF800000> : vector<48xf32>
    %333 = vector.multi_reduction <maximumf>, %332, %cst_170 [0] : vector<8x48xf32> to vector<48xf32>
    %334 = vector.shape_cast %333 : vector<48xf32> to vector<1x48xf32>
    %335 = vector.broadcast %334 : vector<1x48xf32> to vector<8x48xf32>
    %336 = arith.subf %332, %335 : vector<8x48xf32>
    %337 = math.exp %336 : vector<8x48xf32>
    %cst_171 = arith.constant dense<0.000000e+00> : vector<48xf32>
    %338 = vector.multi_reduction <add>, %337, %cst_171 [0] : vector<8x48xf32> to vector<48xf32>
    %339 = vector.shape_cast %338 : vector<48xf32> to vector<1x48xf32>
    %340 = math.log %339 : vector<1x48xf32>
    %341 = arith.addf %334, %340 : vector<1x48xf32>
    %c14_172 = arith.constant 14 : index
    %c0_173 = arith.constant 0 : index
    %342 = vector.load %arg11[%c14_172, %c0_173] : memref<24x48xf32, #tpu.memory_space<vmem>>, vector<1x48xf32>
    %c6_174 = arith.constant 6 : index
    %c0_175 = arith.constant 0 : index
    %343 = vector.load %arg11[%c6_174, %c0_175] : memref<24x48xf32, #tpu.memory_space<vmem>>, vector<8x48xf32>
    %c6_176 = arith.constant 6 : index
    %c0_177 = arith.constant 0 : index
    %344 = vector.load %arg13[%c6_176, %c0_177] : memref<24x48xf32, #tpu.memory_space<vmem>>, vector<8x48xf32>
    %345 = vector.broadcast %342 : vector<1x48xf32> to vector<8x48xf32>
    %346 = arith.addf %345, %344 : vector<8x48xf32>
    %347 = arith.subf %346, %343 : vector<8x48xf32>
    %cst_178 = arith.constant dense<0xFF800000> : vector<48xf32>
    %348 = vector.multi_reduction <maximumf>, %347, %cst_178 [0] : vector<8x48xf32> to vector<48xf32>
    %349 = vector.shape_cast %348 : vector<48xf32> to vector<1x48xf32>
    %350 = vector.broadcast %349 : vector<1x48xf32> to vector<8x48xf32>
    %351 = arith.subf %347, %350 : vector<8x48xf32>
    %352 = math.exp %351 : vector<8x48xf32>
    %cst_179 = arith.constant dense<0.000000e+00> : vector<48xf32>
    %353 = vector.multi_reduction <add>, %352, %cst_179 [0] : vector<8x48xf32> to vector<48xf32>
    %354 = vector.shape_cast %353 : vector<48xf32> to vector<1x48xf32>
    %355 = math.log %354 : vector<1x48xf32>
    %356 = arith.addf %349, %355 : vector<1x48xf32>
    %357 = tpu.concatenate %341, %356 in 0 : vector<1x48xf32>, vector<1x48xf32> -> vector<2x48xf32>
    %cst_180 = arith.constant dense<0xFF800000> : vector<2xf32>
    %358 = vector.multi_reduction <maximumf>, %357, %cst_180 [1] : vector<2x48xf32> to vector<2xf32>
    %359 = vector.shape_cast %358 : vector<2xf32> to vector<2x1xf32>
    %360 = vector.broadcast %359 : vector<2x1xf32> to vector<2x48xf32>
    %361 = arith.subf %357, %360 : vector<2x48xf32>
    %362 = math.exp %361 : vector<2x48xf32>
    %cst_181 = arith.constant dense<0.000000e+00> : vector<2x48xf32>
    %363 = tpu.matmul %362, %34, %cst_181 {dimension_numbers = #tpu.dot_dimension_numbers<[1], [0], [0], [1], [0, 0, 1, 1], [], []>} : vector<2x48xf32>, vector<48x48xf32>, vector<2x48xf32> -> vector<2x48xf32>
    %364 = math.log %363 : vector<2x48xf32>
    %365 = vector.broadcast %359 : vector<2x1xf32> to vector<2x48xf32>
    %366 = arith.addf %364, %365 : vector<2x48xf32>
    %367 = vector.broadcast %31 : vector<1x1xf32> to vector<2x48xf32>
    %368 = arith.addf %366, %367 : vector<2x48xf32>
    %369 = vector.extract_strided_slice %368 {offsets = [0, 0], sizes = [1, 48], strides = [1, 1]} : vector<2x48xf32> to vector<1x48xf32>
    %c14_182 = arith.constant 14 : index
    %c0_183 = arith.constant 0 : index
    %370 = vector.load %arg12[%c14_182, %c0_183] : memref<24x48xf32, #tpu.memory_space<vmem>>, vector<1x48xf32>
    tpu.vector_store %arg12[%c14_182, %c0_183], %369 {strides = array<i32>} : memref<24x48xf32, #tpu.memory_space<vmem>>, vector<1x48xf32>,
    %371 = vector.extract_strided_slice %368 {offsets = [1, 0], sizes = [1, 48], strides = [1, 1]} : vector<2x48xf32> to vector<1x48xf32>
    %c14_184 = arith.constant 14 : index
    %c0_185 = arith.constant 0 : index
    %372 = vector.load %arg13[%c14_184, %c0_185] : memref<24x48xf32, #tpu.memory_space<vmem>>, vector<1x48xf32>
    tpu.vector_store %arg13[%c14_184, %c0_185], %371 {strides = array<i32>} : memref<24x48xf32, #tpu.memory_space<vmem>>, vector<1x48xf32>,
    %c15 = arith.constant 15 : index
    %c0_186 = arith.constant 0 : index
    %373 = vector.load %arg10[%c15, %c0_186] : memref<24x48xf32, #tpu.memory_space<vmem>>, vector<1x48xf32>
    %c7_187 = arith.constant 7 : index
    %c0_188 = arith.constant 0 : index
    %374 = vector.load %arg10[%c7_187, %c0_188] : memref<24x48xf32, #tpu.memory_space<vmem>>, vector<8x48xf32>
    %c7_189 = arith.constant 7 : index
    %c0_190 = arith.constant 0 : index
    %375 = vector.load %arg12[%c7_189, %c0_190] : memref<24x48xf32, #tpu.memory_space<vmem>>, vector<8x48xf32>
    %376 = vector.broadcast %373 : vector<1x48xf32> to vector<8x48xf32>
    %377 = arith.addf %376, %375 : vector<8x48xf32>
    %378 = arith.subf %377, %374 : vector<8x48xf32>
    %cst_191 = arith.constant dense<0xFF800000> : vector<48xf32>
    %379 = vector.multi_reduction <maximumf>, %378, %cst_191 [0] : vector<8x48xf32> to vector<48xf32>
    %380 = vector.shape_cast %379 : vector<48xf32> to vector<1x48xf32>
    %381 = vector.broadcast %380 : vector<1x48xf32> to vector<8x48xf32>
    %382 = arith.subf %378, %381 : vector<8x48xf32>
    %383 = math.exp %382 : vector<8x48xf32>
    %cst_192 = arith.constant dense<0.000000e+00> : vector<48xf32>
    %384 = vector.multi_reduction <add>, %383, %cst_192 [0] : vector<8x48xf32> to vector<48xf32>
    %385 = vector.shape_cast %384 : vector<48xf32> to vector<1x48xf32>
    %386 = math.log %385 : vector<1x48xf32>
    %387 = arith.addf %380, %386 : vector<1x48xf32>
    %c15_193 = arith.constant 15 : index
    %c0_194 = arith.constant 0 : index
    %388 = vector.load %arg11[%c15_193, %c0_194] : memref<24x48xf32, #tpu.memory_space<vmem>>, vector<1x48xf32>
    %c7_195 = arith.constant 7 : index
    %c0_196 = arith.constant 0 : index
    %389 = vector.load %arg11[%c7_195, %c0_196] : memref<24x48xf32, #tpu.memory_space<vmem>>, vector<8x48xf32>
    %c7_197 = arith.constant 7 : index
    %c0_198 = arith.constant 0 : index
    %390 = vector.load %arg13[%c7_197, %c0_198] : memref<24x48xf32, #tpu.memory_space<vmem>>, vector<8x48xf32>
    %391 = vector.broadcast %388 : vector<1x48xf32> to vector<8x48xf32>
    %392 = arith.addf %391, %390 : vector<8x48xf32>
    %393 = arith.subf %392, %389 : vector<8x48xf32>
    %cst_199 = arith.constant dense<0xFF800000> : vector<48xf32>
    %394 = vector.multi_reduction <maximumf>, %393, %cst_199 [0] : vector<8x48xf32> to vector<48xf32>
    %395 = vector.shape_cast %394 : vector<48xf32> to vector<1x48xf32>
    %396 = vector.broadcast %395 : vector<1x48xf32> to vector<8x48xf32>
    %397 = arith.subf %393, %396 : vector<8x48xf32>
    %398 = math.exp %397 : vector<8x48xf32>
    %cst_200 = arith.constant dense<0.000000e+00> : vector<48xf32>
    %399 = vector.multi_reduction <add>, %398, %cst_200 [0] : vector<8x48xf32> to vector<48xf32>
    %400 = vector.shape_cast %399 : vector<48xf32> to vector<1x48xf32>
    %401 = math.log %400 : vector<1x48xf32>
    %402 = arith.addf %395, %401 : vector<1x48xf32>
    %403 = tpu.concatenate %387, %402 in 0 : vector<1x48xf32>, vector<1x48xf32> -> vector<2x48xf32>
    %cst_201 = arith.constant dense<0xFF800000> : vector<2xf32>
    %404 = vector.multi_reduction <maximumf>, %403, %cst_201 [1] : vector<2x48xf32> to vector<2xf32>
    %405 = vector.shape_cast %404 : vector<2xf32> to vector<2x1xf32>
    %406 = vector.broadcast %405 : vector<2x1xf32> to vector<2x48xf32>
    %407 = arith.subf %403, %406 : vector<2x48xf32>
    %408 = math.exp %407 : vector<2x48xf32>
    %cst_202 = arith.constant dense<0.000000e+00> : vector<2x48xf32>
    %409 = tpu.matmul %408, %34, %cst_202 {dimension_numbers = #tpu.dot_dimension_numbers<[1], [0], [0], [1], [0, 0, 1, 1], [], []>} : vector<2x48xf32>, vector<48x48xf32>, vector<2x48xf32> -> vector<2x48xf32>
    %410 = math.log %409 : vector<2x48xf32>
    %411 = vector.broadcast %405 : vector<2x1xf32> to vector<2x48xf32>
    %412 = arith.addf %410, %411 : vector<2x48xf32>
    %413 = vector.broadcast %31 : vector<1x1xf32> to vector<2x48xf32>
    %414 = arith.addf %412, %413 : vector<2x48xf32>
    %415 = vector.extract_strided_slice %414 {offsets = [0, 0], sizes = [1, 48], strides = [1, 1]} : vector<2x48xf32> to vector<1x48xf32>
    %c15_203 = arith.constant 15 : index
    %c0_204 = arith.constant 0 : index
    %416 = vector.load %arg12[%c15_203, %c0_204] : memref<24x48xf32, #tpu.memory_space<vmem>>, vector<1x48xf32>
    tpu.vector_store %arg12[%c15_203, %c0_204], %415 {strides = array<i32>} : memref<24x48xf32, #tpu.memory_space<vmem>>, vector<1x48xf32>,
    %417 = vector.extract_strided_slice %414 {offsets = [1, 0], sizes = [1, 48], strides = [1, 1]} : vector<2x48xf32> to vector<1x48xf32>
    %c15_205 = arith.constant 15 : index
    %c0_206 = arith.constant 0 : index
    %418 = vector.load %arg13[%c15_205, %c0_206] : memref<24x48xf32, #tpu.memory_space<vmem>>, vector<1x48xf32>
    tpu.vector_store %arg13[%c15_205, %c0_206], %417 {strides = array<i32>} : memref<24x48xf32, #tpu.memory_space<vmem>>, vector<1x48xf32>,
    %c16 = arith.constant 16 : index
    %c0_207 = arith.constant 0 : index
    %419 = vector.load %arg10[%c16, %c0_207] : memref<24x48xf32, #tpu.memory_space<vmem>>, vector<1x48xf32>
    %c8_208 = arith.constant 8 : index
    %c0_209 = arith.constant 0 : index
    %420 = vector.load %arg10[%c8_208, %c0_209] : memref<24x48xf32, #tpu.memory_space<vmem>>, vector<8x48xf32>
    %c8_210 = arith.constant 8 : index
    %c0_211 = arith.constant 0 : index
    %421 = vector.load %arg12[%c8_210, %c0_211] : memref<24x48xf32, #tpu.memory_space<vmem>>, vector<8x48xf32>
    %422 = vector.broadcast %419 : vector<1x48xf32> to vector<8x48xf32>
    %423 = arith.addf %422, %421 : vector<8x48xf32>
    %424 = arith.subf %423, %420 : vector<8x48xf32>
    %cst_212 = arith.constant dense<0xFF800000> : vector<48xf32>
    %425 = vector.multi_reduction <maximumf>, %424, %cst_212 [0] : vector<8x48xf32> to vector<48xf32>
    %426 = vector.shape_cast %425 : vector<48xf32> to vector<1x48xf32>
    %427 = vector.broadcast %426 : vector<1x48xf32> to vector<8x48xf32>
    %428 = arith.subf %424, %427 : vector<8x48xf32>
    %429 = math.exp %428 : vector<8x48xf32>
    %cst_213 = arith.constant dense<0.000000e+00> : vector<48xf32>
    %430 = vector.multi_reduction <add>, %429, %cst_213 [0] : vector<8x48xf32> to vector<48xf32>
    %431 = vector.shape_cast %430 : vector<48xf32> to vector<1x48xf32>
    %432 = math.log %431 : vector<1x48xf32>
    %433 = arith.addf %426, %432 : vector<1x48xf32>
    %c16_214 = arith.constant 16 : index
    %c0_215 = arith.constant 0 : index
    %434 = vector.load %arg11[%c16_214, %c0_215] : memref<24x48xf32, #tpu.memory_space<vmem>>, vector<1x48xf32>
    %c8_216 = arith.constant 8 : index
    %c0_217 = arith.constant 0 : index
    %435 = vector.load %arg11[%c8_216, %c0_217] : memref<24x48xf32, #tpu.memory_space<vmem>>, vector<8x48xf32>
    %c8_218 = arith.constant 8 : index
    %c0_219 = arith.constant 0 : index
    %436 = vector.load %arg13[%c8_218, %c0_219] : memref<24x48xf32, #tpu.memory_space<vmem>>, vector<8x48xf32>
    %437 = vector.broadcast %434 : vector<1x48xf32> to vector<8x48xf32>
    %438 = arith.addf %437, %436 : vector<8x48xf32>
    %439 = arith.subf %438, %435 : vector<8x48xf32>
    %cst_220 = arith.constant dense<0xFF800000> : vector<48xf32>
    %440 = vector.multi_reduction <maximumf>, %439, %cst_220 [0] : vector<8x48xf32> to vector<48xf32>
    %441 = vector.shape_cast %440 : vector<48xf32> to vector<1x48xf32>
    %442 = vector.broadcast %441 : vector<1x48xf32> to vector<8x48xf32>
    %443 = arith.subf %439, %442 : vector<8x48xf32>
    %444 = math.exp %443 : vector<8x48xf32>
    %cst_221 = arith.constant dense<0.000000e+00> : vector<48xf32>
    %445 = vector.multi_reduction <add>, %444, %cst_221 [0] : vector<8x48xf32> to vector<48xf32>
    %446 = vector.shape_cast %445 : vector<48xf32> to vector<1x48xf32>
    %447 = math.log %446 : vector<1x48xf32>
    %448 = arith.addf %441, %447 : vector<1x48xf32>
    %449 = tpu.concatenate %433, %448 in 0 : vector<1x48xf32>, vector<1x48xf32> -> vector<2x48xf32>
    %cst_222 = arith.constant dense<0xFF800000> : vector<2xf32>
    %450 = vector.multi_reduction <maximumf>, %449, %cst_222 [1] : vector<2x48xf32> to vector<2xf32>
    %451 = vector.shape_cast %450 : vector<2xf32> to vector<2x1xf32>
    %452 = vector.broadcast %451 : vector<2x1xf32> to vector<2x48xf32>
    %453 = arith.subf %449, %452 : vector<2x48xf32>
    %454 = math.exp %453 : vector<2x48xf32>
    %cst_223 = arith.constant dense<0.000000e+00> : vector<2x48xf32>
    %455 = tpu.matmul %454, %34, %cst_223 {dimension_numbers = #tpu.dot_dimension_numbers<[1], [0], [0], [1], [0, 0, 1, 1], [], []>} : vector<2x48xf32>, vector<48x48xf32>, vector<2x48xf32> -> vector<2x48xf32>
    %456 = math.log %455 : vector<2x48xf32>
    %457 = vector.broadcast %451 : vector<2x1xf32> to vector<2x48xf32>
    %458 = arith.addf %456, %457 : vector<2x48xf32>
    %459 = vector.broadcast %31 : vector<1x1xf32> to vector<2x48xf32>
    %460 = arith.addf %458, %459 : vector<2x48xf32>
    %461 = vector.extract_strided_slice %460 {offsets = [0, 0], sizes = [1, 48], strides = [1, 1]} : vector<2x48xf32> to vector<1x48xf32>
    %c16_224 = arith.constant 16 : index
    %c0_225 = arith.constant 0 : index
    %462 = vector.load %arg12[%c16_224, %c0_225] : memref<24x48xf32, #tpu.memory_space<vmem>>, vector<1x48xf32>
    tpu.vector_store %arg12[%c16_224, %c0_225], %461 {strides = array<i32>} : memref<24x48xf32, #tpu.memory_space<vmem>>, vector<1x48xf32>,
    %463 = vector.extract_strided_slice %460 {offsets = [1, 0], sizes = [1, 48], strides = [1, 1]} : vector<2x48xf32> to vector<1x48xf32>
    %c16_226 = arith.constant 16 : index
    %c0_227 = arith.constant 0 : index
    %464 = vector.load %arg13[%c16_226, %c0_227] : memref<24x48xf32, #tpu.memory_space<vmem>>, vector<1x48xf32>
    tpu.vector_store %arg13[%c16_226, %c0_227], %463 {strides = array<i32>} : memref<24x48xf32, #tpu.memory_space<vmem>>, vector<1x48xf32>,
    %c17 = arith.constant 17 : index
    %c0_228 = arith.constant 0 : index
    %465 = vector.load %arg10[%c17, %c0_228] : memref<24x48xf32, #tpu.memory_space<vmem>>, vector<1x48xf32>
    %c9_229 = arith.constant 9 : index
    %c0_230 = arith.constant 0 : index
    %466 = vector.load %arg10[%c9_229, %c0_230] : memref<24x48xf32, #tpu.memory_space<vmem>>, vector<8x48xf32>
    %c9_231 = arith.constant 9 : index
    %c0_232 = arith.constant 0 : index
    %467 = vector.load %arg12[%c9_231, %c0_232] : memref<24x48xf32, #tpu.memory_space<vmem>>, vector<8x48xf32>
    %468 = vector.broadcast %465 : vector<1x48xf32> to vector<8x48xf32>
    %469 = arith.addf %468, %467 : vector<8x48xf32>
    %470 = arith.subf %469, %466 : vector<8x48xf32>
    %cst_233 = arith.constant dense<0xFF800000> : vector<48xf32>
    %471 = vector.multi_reduction <maximumf>, %470, %cst_233 [0] : vector<8x48xf32> to vector<48xf32>
    %472 = vector.shape_cast %471 : vector<48xf32> to vector<1x48xf32>
    %473 = vector.broadcast %472 : vector<1x48xf32> to vector<8x48xf32>
    %474 = arith.subf %470, %473 : vector<8x48xf32>
    %475 = math.exp %474 : vector<8x48xf32>
    %cst_234 = arith.constant dense<0.000000e+00> : vector<48xf32>
    %476 = vector.multi_reduction <add>, %475, %cst_234 [0] : vector<8x48xf32> to vector<48xf32>
    %477 = vector.shape_cast %476 : vector<48xf32> to vector<1x48xf32>
    %478 = math.log %477 : vector<1x48xf32>
    %479 = arith.addf %472, %478 : vector<1x48xf32>
    %c17_235 = arith.constant 17 : index
    %c0_236 = arith.constant 0 : index
    %480 = vector.load %arg11[%c17_235, %c0_236] : memref<24x48xf32, #tpu.memory_space<vmem>>, vector<1x48xf32>
    %c9_237 = arith.constant 9 : index
    %c0_238 = arith.constant 0 : index
    %481 = vector.load %arg11[%c9_237, %c0_238] : memref<24x48xf32, #tpu.memory_space<vmem>>, vector<8x48xf32>
    %c9_239 = arith.constant 9 : index
    %c0_240 = arith.constant 0 : index
    %482 = vector.load %arg13[%c9_239, %c0_240] : memref<24x48xf32, #tpu.memory_space<vmem>>, vector<8x48xf32>
    %483 = vector.broadcast %480 : vector<1x48xf32> to vector<8x48xf32>
    %484 = arith.addf %483, %482 : vector<8x48xf32>
    %485 = arith.subf %484, %481 : vector<8x48xf32>
    %cst_241 = arith.constant dense<0xFF800000> : vector<48xf32>
    %486 = vector.multi_reduction <maximumf>, %485, %cst_241 [0] : vector<8x48xf32> to vector<48xf32>
    %487 = vector.shape_cast %486 : vector<48xf32> to vector<1x48xf32>
    %488 = vector.broadcast %487 : vector<1x48xf32> to vector<8x48xf32>
    %489 = arith.subf %485, %488 : vector<8x48xf32>
    %490 = math.exp %489 : vector<8x48xf32>
    %cst_242 = arith.constant dense<0.000000e+00> : vector<48xf32>
    %491 = vector.multi_reduction <add>, %490, %cst_242 [0] : vector<8x48xf32> to vector<48xf32>
    %492 = vector.shape_cast %491 : vector<48xf32> to vector<1x48xf32>
    %493 = math.log %492 : vector<1x48xf32>
    %494 = arith.addf %487, %493 : vector<1x48xf32>
    %495 = tpu.concatenate %479, %494 in 0 : vector<1x48xf32>, vector<1x48xf32> -> vector<2x48xf32>
    %cst_243 = arith.constant dense<0xFF800000> : vector<2xf32>
    %496 = vector.multi_reduction <maximumf>, %495, %cst_243 [1] : vector<2x48xf32> to vector<2xf32>
    %497 = vector.shape_cast %496 : vector<2xf32> to vector<2x1xf32>
    %498 = vector.broadcast %497 : vector<2x1xf32> to vector<2x48xf32>
    %499 = arith.subf %495, %498 : vector<2x48xf32>
    %500 = math.exp %499 : vector<2x48xf32>
    %cst_244 = arith.constant dense<0.000000e+00> : vector<2x48xf32>
    %501 = tpu.matmul %500, %34, %cst_244 {dimension_numbers = #tpu.dot_dimension_numbers<[1], [0], [0], [1], [0, 0, 1, 1], [], []>} : vector<2x48xf32>, vector<48x48xf32>, vector<2x48xf32> -> vector<2x48xf32>
    %502 = math.log %501 : vector<2x48xf32>
    %503 = vector.broadcast %497 : vector<2x1xf32> to vector<2x48xf32>
    %504 = arith.addf %502, %503 : vector<2x48xf32>
    %505 = vector.broadcast %31 : vector<1x1xf32> to vector<2x48xf32>
    %506 = arith.addf %504, %505 : vector<2x48xf32>
    %507 = vector.extract_strided_slice %506 {offsets = [0, 0], sizes = [1, 48], strides = [1, 1]} : vector<2x48xf32> to vector<1x48xf32>
    %c17_245 = arith.constant 17 : index
    %c0_246 = arith.constant 0 : index
    %508 = vector.load %arg12[%c17_245, %c0_246] : memref<24x48xf32, #tpu.memory_space<vmem>>, vector<1x48xf32>
    tpu.vector_store %arg12[%c17_245, %c0_246], %507 {strides = array<i32>} : memref<24x48xf32, #tpu.memory_space<vmem>>, vector<1x48xf32>,
    %509 = vector.extract_strided_slice %506 {offsets = [1, 0], sizes = [1, 48], strides = [1, 1]} : vector<2x48xf32> to vector<1x48xf32>
    %c17_247 = arith.constant 17 : index
    %c0_248 = arith.constant 0 : index
    %510 = vector.load %arg13[%c17_247, %c0_248] : memref<24x48xf32, #tpu.memory_space<vmem>>, vector<1x48xf32>
    tpu.vector_store %arg13[%c17_247, %c0_248], %509 {strides = array<i32>} : memref<24x48xf32, #tpu.memory_space<vmem>>, vector<1x48xf32>,
    %c18 = arith.constant 18 : index
    %c0_249 = arith.constant 0 : index
    %511 = vector.load %arg10[%c18, %c0_249] : memref<24x48xf32, #tpu.memory_space<vmem>>, vector<1x48xf32>
    %c10_250 = arith.constant 10 : index
    %c0_251 = arith.constant 0 : index
    %512 = vector.load %arg10[%c10_250, %c0_251] : memref<24x48xf32, #tpu.memory_space<vmem>>, vector<8x48xf32>
    %c10_252 = arith.constant 10 : index
    %c0_253 = arith.constant 0 : index
    %513 = vector.load %arg12[%c10_252, %c0_253] : memref<24x48xf32, #tpu.memory_space<vmem>>, vector<8x48xf32>
    %514 = vector.broadcast %511 : vector<1x48xf32> to vector<8x48xf32>
    %515 = arith.addf %514, %513 : vector<8x48xf32>
    %516 = arith.subf %515, %512 : vector<8x48xf32>
    %cst_254 = arith.constant dense<0xFF800000> : vector<48xf32>
    %517 = vector.multi_reduction <maximumf>, %516, %cst_254 [0] : vector<8x48xf32> to vector<48xf32>
    %518 = vector.shape_cast %517 : vector<48xf32> to vector<1x48xf32>
    %519 = vector.broadcast %518 : vector<1x48xf32> to vector<8x48xf32>
    %520 = arith.subf %516, %519 : vector<8x48xf32>
    %521 = math.exp %520 : vector<8x48xf32>
    %cst_255 = arith.constant dense<0.000000e+00> : vector<48xf32>
    %522 = vector.multi_reduction <add>, %521, %cst_255 [0] : vector<8x48xf32> to vector<48xf32>
    %523 = vector.shape_cast %522 : vector<48xf32> to vector<1x48xf32>
    %524 = math.log %523 : vector<1x48xf32>
    %525 = arith.addf %518, %524 : vector<1x48xf32>
    %c18_256 = arith.constant 18 : index
    %c0_257 = arith.constant 0 : index
    %526 = vector.load %arg11[%c18_256, %c0_257] : memref<24x48xf32, #tpu.memory_space<vmem>>, vector<1x48xf32>
    %c10_258 = arith.constant 10 : index
    %c0_259 = arith.constant 0 : index
    %527 = vector.load %arg11[%c10_258, %c0_259] : memref<24x48xf32, #tpu.memory_space<vmem>>, vector<8x48xf32>
    %c10_260 = arith.constant 10 : index
    %c0_261 = arith.constant 0 : index
    %528 = vector.load %arg13[%c10_260, %c0_261] : memref<24x48xf32, #tpu.memory_space<vmem>>, vector<8x48xf32>
    %529 = vector.broadcast %526 : vector<1x48xf32> to vector<8x48xf32>
    %530 = arith.addf %529, %528 : vector<8x48xf32>
    %531 = arith.subf %530, %527 : vector<8x48xf32>
    %cst_262 = arith.constant dense<0xFF800000> : vector<48xf32>
    %532 = vector.multi_reduction <maximumf>, %531, %cst_262 [0] : vector<8x48xf32> to vector<48xf32>
    %533 = vector.shape_cast %532 : vector<48xf32> to vector<1x48xf32>
    %534 = vector.broadcast %533 : vector<1x48xf32> to vector<8x48xf32>
    %535 = arith.subf %531, %534 : vector<8x48xf32>
    %536 = math.exp %535 : vector<8x48xf32>
    %cst_263 = arith.constant dense<0.000000e+00> : vector<48xf32>
    %537 = vector.multi_reduction <add>, %536, %cst_263 [0] : vector<8x48xf32> to vector<48xf32>
    %538 = vector.shape_cast %537 : vector<48xf32> to vector<1x48xf32>
    %539 = math.log %538 : vector<1x48xf32>
    %540 = arith.addf %533, %539 : vector<1x48xf32>
    %541 = tpu.concatenate %525, %540 in 0 : vector<1x48xf32>, vector<1x48xf32> -> vector<2x48xf32>
    %cst_264 = arith.constant dense<0xFF800000> : vector<2xf32>
    %542 = vector.multi_reduction <maximumf>, %541, %cst_264 [1] : vector<2x48xf32> to vector<2xf32>
    %543 = vector.shape_cast %542 : vector<2xf32> to vector<2x1xf32>
    %544 = vector.broadcast %543 : vector<2x1xf32> to vector<2x48xf32>
    %545 = arith.subf %541, %544 : vector<2x48xf32>
    %546 = math.exp %545 : vector<2x48xf32>
    %cst_265 = arith.constant dense<0.000000e+00> : vector<2x48xf32>
    %547 = tpu.matmul %546, %34, %cst_265 {dimension_numbers = #tpu.dot_dimension_numbers<[1], [0], [0], [1], [0, 0, 1, 1], [], []>} : vector<2x48xf32>, vector<48x48xf32>, vector<2x48xf32> -> vector<2x48xf32>
    %548 = math.log %547 : vector<2x48xf32>
    %549 = vector.broadcast %543 : vector<2x1xf32> to vector<2x48xf32>
    %550 = arith.addf %548, %549 : vector<2x48xf32>
    %551 = vector.broadcast %31 : vector<1x1xf32> to vector<2x48xf32>
    %552 = arith.addf %550, %551 : vector<2x48xf32>
    %553 = vector.extract_strided_slice %552 {offsets = [0, 0], sizes = [1, 48], strides = [1, 1]} : vector<2x48xf32> to vector<1x48xf32>
    %c18_266 = arith.constant 18 : index
    %c0_267 = arith.constant 0 : index
    %554 = vector.load %arg12[%c18_266, %c0_267] : memref<24x48xf32, #tpu.memory_space<vmem>>, vector<1x48xf32>
    tpu.vector_store %arg12[%c18_266, %c0_267], %553 {strides = array<i32>} : memref<24x48xf32, #tpu.memory_space<vmem>>, vector<1x48xf32>,
    %555 = vector.extract_strided_slice %552 {offsets = [1, 0], sizes = [1, 48], strides = [1, 1]} : vector<2x48xf32> to vector<1x48xf32>
    %c18_268 = arith.constant 18 : index
    %c0_269 = arith.constant 0 : index
    %556 = vector.load %arg13[%c18_268, %c0_269] : memref<24x48xf32, #tpu.memory_space<vmem>>, vector<1x48xf32>
    tpu.vector_store %arg13[%c18_268, %c0_269], %555 {strides = array<i32>} : memref<24x48xf32, #tpu.memory_space<vmem>>, vector<1x48xf32>,
    %c19 = arith.constant 19 : index
    %c0_270 = arith.constant 0 : index
    %557 = vector.load %arg10[%c19, %c0_270] : memref<24x48xf32, #tpu.memory_space<vmem>>, vector<1x48xf32>
    %c11_271 = arith.constant 11 : index
    %c0_272 = arith.constant 0 : index
    %558 = vector.load %arg10[%c11_271, %c0_272] : memref<24x48xf32, #tpu.memory_space<vmem>>, vector<8x48xf32>
    %c11_273 = arith.constant 11 : index
    %c0_274 = arith.constant 0 : index
    %559 = vector.load %arg12[%c11_273, %c0_274] : memref<24x48xf32, #tpu.memory_space<vmem>>, vector<8x48xf32>
    %560 = vector.broadcast %557 : vector<1x48xf32> to vector<8x48xf32>
    %561 = arith.addf %560, %559 : vector<8x48xf32>
    %562 = arith.subf %561, %558 : vector<8x48xf32>
    %cst_275 = arith.constant dense<0xFF800000> : vector<48xf32>
    %563 = vector.multi_reduction <maximumf>, %562, %cst_275 [0] : vector<8x48xf32> to vector<48xf32>
    %564 = vector.shape_cast %563 : vector<48xf32> to vector<1x48xf32>
    %565 = vector.broadcast %564 : vector<1x48xf32> to vector<8x48xf32>
    %566 = arith.subf %562, %565 : vector<8x48xf32>
    %567 = math.exp %566 : vector<8x48xf32>
    %cst_276 = arith.constant dense<0.000000e+00> : vector<48xf32>
    %568 = vector.multi_reduction <add>, %567, %cst_276 [0] : vector<8x48xf32> to vector<48xf32>
    %569 = vector.shape_cast %568 : vector<48xf32> to vector<1x48xf32>
    %570 = math.log %569 : vector<1x48xf32>
    %571 = arith.addf %564, %570 : vector<1x48xf32>
    %c19_277 = arith.constant 19 : index
    %c0_278 = arith.constant 0 : index
    %572 = vector.load %arg11[%c19_277, %c0_278] : memref<24x48xf32, #tpu.memory_space<vmem>>, vector<1x48xf32>
    %c11_279 = arith.constant 11 : index
    %c0_280 = arith.constant 0 : index
    %573 = vector.load %arg11[%c11_279, %c0_280] : memref<24x48xf32, #tpu.memory_space<vmem>>, vector<8x48xf32>
    %c11_281 = arith.constant 11 : index
    %c0_282 = arith.constant 0 : index
    %574 = vector.load %arg13[%c11_281, %c0_282] : memref<24x48xf32, #tpu.memory_space<vmem>>, vector<8x48xf32>
    %575 = vector.broadcast %572 : vector<1x48xf32> to vector<8x48xf32>
    %576 = arith.addf %575, %574 : vector<8x48xf32>
    %577 = arith.subf %576, %573 : vector<8x48xf32>
    %cst_283 = arith.constant dense<0xFF800000> : vector<48xf32>
    %578 = vector.multi_reduction <maximumf>, %577, %cst_283 [0] : vector<8x48xf32> to vector<48xf32>
    %579 = vector.shape_cast %578 : vector<48xf32> to vector<1x48xf32>
    %580 = vector.broadcast %579 : vector<1x48xf32> to vector<8x48xf32>
    %581 = arith.subf %577, %580 : vector<8x48xf32>
    %582 = math.exp %581 : vector<8x48xf32>
    %cst_284 = arith.constant dense<0.000000e+00> : vector<48xf32>
    %583 = vector.multi_reduction <add>, %582, %cst_284 [0] : vector<8x48xf32> to vector<48xf32>
    %584 = vector.shape_cast %583 : vector<48xf32> to vector<1x48xf32>
    %585 = math.log %584 : vector<1x48xf32>
    %586 = arith.addf %579, %585 : vector<1x48xf32>
    %587 = tpu.concatenate %571, %586 in 0 : vector<1x48xf32>, vector<1x48xf32> -> vector<2x48xf32>
    %cst_285 = arith.constant dense<0xFF800000> : vector<2xf32>
    %588 = vector.multi_reduction <maximumf>, %587, %cst_285 [1] : vector<2x48xf32> to vector<2xf32>
    %589 = vector.shape_cast %588 : vector<2xf32> to vector<2x1xf32>
    %590 = vector.broadcast %589 : vector<2x1xf32> to vector<2x48xf32>
    %591 = arith.subf %587, %590 : vector<2x48xf32>
    %592 = math.exp %591 : vector<2x48xf32>
    %cst_286 = arith.constant dense<0.000000e+00> : vector<2x48xf32>
    %593 = tpu.matmul %592, %34, %cst_286 {dimension_numbers = #tpu.dot_dimension_numbers<[1], [0], [0], [1], [0, 0, 1, 1], [], []>} : vector<2x48xf32>, vector<48x48xf32>, vector<2x48xf32> -> vector<2x48xf32>
    %594 = math.log %593 : vector<2x48xf32>
    %595 = vector.broadcast %589 : vector<2x1xf32> to vector<2x48xf32>
    %596 = arith.addf %594, %595 : vector<2x48xf32>
    %597 = vector.broadcast %31 : vector<1x1xf32> to vector<2x48xf32>
    %598 = arith.addf %596, %597 : vector<2x48xf32>
    %599 = vector.extract_strided_slice %598 {offsets = [0, 0], sizes = [1, 48], strides = [1, 1]} : vector<2x48xf32> to vector<1x48xf32>
    %c19_287 = arith.constant 19 : index
    %c0_288 = arith.constant 0 : index
    %600 = vector.load %arg12[%c19_287, %c0_288] : memref<24x48xf32, #tpu.memory_space<vmem>>, vector<1x48xf32>
    tpu.vector_store %arg12[%c19_287, %c0_288], %599 {strides = array<i32>} : memref<24x48xf32, #tpu.memory_space<vmem>>, vector<1x48xf32>,
    %601 = vector.extract_strided_slice %598 {offsets = [1, 0], sizes = [1, 48], strides = [1, 1]} : vector<2x48xf32> to vector<1x48xf32>
    %c19_289 = arith.constant 19 : index
    %c0_290 = arith.constant 0 : index
    %602 = vector.load %arg13[%c19_289, %c0_290] : memref<24x48xf32, #tpu.memory_space<vmem>>, vector<1x48xf32>
    tpu.vector_store %arg13[%c19_289, %c0_290], %601 {strides = array<i32>} : memref<24x48xf32, #tpu.memory_space<vmem>>, vector<1x48xf32>,
    %c20 = arith.constant 20 : index
    %c0_291 = arith.constant 0 : index
    %603 = vector.load %arg10[%c20, %c0_291] : memref<24x48xf32, #tpu.memory_space<vmem>>, vector<1x48xf32>
    %c12_292 = arith.constant 12 : index
    %c0_293 = arith.constant 0 : index
    %604 = vector.load %arg10[%c12_292, %c0_293] : memref<24x48xf32, #tpu.memory_space<vmem>>, vector<8x48xf32>
    %c12_294 = arith.constant 12 : index
    %c0_295 = arith.constant 0 : index
    %605 = vector.load %arg12[%c12_294, %c0_295] : memref<24x48xf32, #tpu.memory_space<vmem>>, vector<8x48xf32>
    %606 = vector.broadcast %603 : vector<1x48xf32> to vector<8x48xf32>
    %607 = arith.addf %606, %605 : vector<8x48xf32>
    %608 = arith.subf %607, %604 : vector<8x48xf32>
    %cst_296 = arith.constant dense<0xFF800000> : vector<48xf32>
    %609 = vector.multi_reduction <maximumf>, %608, %cst_296 [0] : vector<8x48xf32> to vector<48xf32>
    %610 = vector.shape_cast %609 : vector<48xf32> to vector<1x48xf32>
    %611 = vector.broadcast %610 : vector<1x48xf32> to vector<8x48xf32>
    %612 = arith.subf %608, %611 : vector<8x48xf32>
    %613 = math.exp %612 : vector<8x48xf32>
    %cst_297 = arith.constant dense<0.000000e+00> : vector<48xf32>
    %614 = vector.multi_reduction <add>, %613, %cst_297 [0] : vector<8x48xf32> to vector<48xf32>
    %615 = vector.shape_cast %614 : vector<48xf32> to vector<1x48xf32>
    %616 = math.log %615 : vector<1x48xf32>
    %617 = arith.addf %610, %616 : vector<1x48xf32>
    %c20_298 = arith.constant 20 : index
    %c0_299 = arith.constant 0 : index
    %618 = vector.load %arg11[%c20_298, %c0_299] : memref<24x48xf32, #tpu.memory_space<vmem>>, vector<1x48xf32>
    %c12_300 = arith.constant 12 : index
    %c0_301 = arith.constant 0 : index
    %619 = vector.load %arg11[%c12_300, %c0_301] : memref<24x48xf32, #tpu.memory_space<vmem>>, vector<8x48xf32>
    %c12_302 = arith.constant 12 : index
    %c0_303 = arith.constant 0 : index
    %620 = vector.load %arg13[%c12_302, %c0_303] : memref<24x48xf32, #tpu.memory_space<vmem>>, vector<8x48xf32>
    %621 = vector.broadcast %618 : vector<1x48xf32> to vector<8x48xf32>
    %622 = arith.addf %621, %620 : vector<8x48xf32>
    %623 = arith.subf %622, %619 : vector<8x48xf32>
    %cst_304 = arith.constant dense<0xFF800000> : vector<48xf32>
    %624 = vector.multi_reduction <maximumf>, %623, %cst_304 [0] : vector<8x48xf32> to vector<48xf32>
    %625 = vector.shape_cast %624 : vector<48xf32> to vector<1x48xf32>
    %626 = vector.broadcast %625 : vector<1x48xf32> to vector<8x48xf32>
    %627 = arith.subf %623, %626 : vector<8x48xf32>
    %628 = math.exp %627 : vector<8x48xf32>
    %cst_305 = arith.constant dense<0.000000e+00> : vector<48xf32>
    %629 = vector.multi_reduction <add>, %628, %cst_305 [0] : vector<8x48xf32> to vector<48xf32>
    %630 = vector.shape_cast %629 : vector<48xf32> to vector<1x48xf32>
    %631 = math.log %630 : vector<1x48xf32>
    %632 = arith.addf %625, %631 : vector<1x48xf32>
    %633 = tpu.concatenate %617, %632 in 0 : vector<1x48xf32>, vector<1x48xf32> -> vector<2x48xf32>
    %cst_306 = arith.constant dense<0xFF800000> : vector<2xf32>
    %634 = vector.multi_reduction <maximumf>, %633, %cst_306 [1] : vector<2x48xf32> to vector<2xf32>
    %635 = vector.shape_cast %634 : vector<2xf32> to vector<2x1xf32>
    %636 = vector.broadcast %635 : vector<2x1xf32> to vector<2x48xf32>
    %637 = arith.subf %633, %636 : vector<2x48xf32>
    %638 = math.exp %637 : vector<2x48xf32>
    %cst_307 = arith.constant dense<0.000000e+00> : vector<2x48xf32>
    %639 = tpu.matmul %638, %34, %cst_307 {dimension_numbers = #tpu.dot_dimension_numbers<[1], [0], [0], [1], [0, 0, 1, 1], [], []>} : vector<2x48xf32>, vector<48x48xf32>, vector<2x48xf32> -> vector<2x48xf32>
    %640 = math.log %639 : vector<2x48xf32>
    %641 = vector.broadcast %635 : vector<2x1xf32> to vector<2x48xf32>
    %642 = arith.addf %640, %641 : vector<2x48xf32>
    %643 = vector.broadcast %31 : vector<1x1xf32> to vector<2x48xf32>
    %644 = arith.addf %642, %643 : vector<2x48xf32>
    %645 = vector.extract_strided_slice %644 {offsets = [0, 0], sizes = [1, 48], strides = [1, 1]} : vector<2x48xf32> to vector<1x48xf32>
    %c20_308 = arith.constant 20 : index
    %c0_309 = arith.constant 0 : index
    %646 = vector.load %arg12[%c20_308, %c0_309] : memref<24x48xf32, #tpu.memory_space<vmem>>, vector<1x48xf32>
    tpu.vector_store %arg12[%c20_308, %c0_309], %645 {strides = array<i32>} : memref<24x48xf32, #tpu.memory_space<vmem>>, vector<1x48xf32>,
    %647 = vector.extract_strided_slice %644 {offsets = [1, 0], sizes = [1, 48], strides = [1, 1]} : vector<2x48xf32> to vector<1x48xf32>
    %c20_310 = arith.constant 20 : index
    %c0_311 = arith.constant 0 : index
    %648 = vector.load %arg13[%c20_310, %c0_311] : memref<24x48xf32, #tpu.memory_space<vmem>>, vector<1x48xf32>
    tpu.vector_store %arg13[%c20_310, %c0_311], %647 {strides = array<i32>} : memref<24x48xf32, #tpu.memory_space<vmem>>, vector<1x48xf32>,
    %c21 = arith.constant 21 : index
    %c0_312 = arith.constant 0 : index
    %649 = vector.load %arg10[%c21, %c0_312] : memref<24x48xf32, #tpu.memory_space<vmem>>, vector<1x48xf32>
    %c13_313 = arith.constant 13 : index
    %c0_314 = arith.constant 0 : index
    %650 = vector.load %arg10[%c13_313, %c0_314] : memref<24x48xf32, #tpu.memory_space<vmem>>, vector<8x48xf32>
    %c13_315 = arith.constant 13 : index
    %c0_316 = arith.constant 0 : index
    %651 = vector.load %arg12[%c13_315, %c0_316] : memref<24x48xf32, #tpu.memory_space<vmem>>, vector<8x48xf32>
    %652 = vector.broadcast %649 : vector<1x48xf32> to vector<8x48xf32>
    %653 = arith.addf %652, %651 : vector<8x48xf32>
    %654 = arith.subf %653, %650 : vector<8x48xf32>
    %cst_317 = arith.constant dense<0xFF800000> : vector<48xf32>
    %655 = vector.multi_reduction <maximumf>, %654, %cst_317 [0] : vector<8x48xf32> to vector<48xf32>
    %656 = vector.shape_cast %655 : vector<48xf32> to vector<1x48xf32>
    %657 = vector.broadcast %656 : vector<1x48xf32> to vector<8x48xf32>
    %658 = arith.subf %654, %657 : vector<8x48xf32>
    %659 = math.exp %658 : vector<8x48xf32>
    %cst_318 = arith.constant dense<0.000000e+00> : vector<48xf32>
    %660 = vector.multi_reduction <add>, %659, %cst_318 [0] : vector<8x48xf32> to vector<48xf32>
    %661 = vector.shape_cast %660 : vector<48xf32> to vector<1x48xf32>
    %662 = math.log %661 : vector<1x48xf32>
    %663 = arith.addf %656, %662 : vector<1x48xf32>
    %c21_319 = arith.constant 21 : index
    %c0_320 = arith.constant 0 : index
    %664 = vector.load %arg11[%c21_319, %c0_320] : memref<24x48xf32, #tpu.memory_space<vmem>>, vector<1x48xf32>
    %c13_321 = arith.constant 13 : index
    %c0_322 = arith.constant 0 : index
    %665 = vector.load %arg11[%c13_321, %c0_322] : memref<24x48xf32, #tpu.memory_space<vmem>>, vector<8x48xf32>
    %c13_323 = arith.constant 13 : index
    %c0_324 = arith.constant 0 : index
    %666 = vector.load %arg13[%c13_323, %c0_324] : memref<24x48xf32, #tpu.memory_space<vmem>>, vector<8x48xf32>
    %667 = vector.broadcast %664 : vector<1x48xf32> to vector<8x48xf32>
    %668 = arith.addf %667, %666 : vector<8x48xf32>
    %669 = arith.subf %668, %665 : vector<8x48xf32>
    %cst_325 = arith.constant dense<0xFF800000> : vector<48xf32>
    %670 = vector.multi_reduction <maximumf>, %669, %cst_325 [0] : vector<8x48xf32> to vector<48xf32>
    %671 = vector.shape_cast %670 : vector<48xf32> to vector<1x48xf32>
    %672 = vector.broadcast %671 : vector<1x48xf32> to vector<8x48xf32>
    %673 = arith.subf %669, %672 : vector<8x48xf32>
    %674 = math.exp %673 : vector<8x48xf32>
    %cst_326 = arith.constant dense<0.000000e+00> : vector<48xf32>
    %675 = vector.multi_reduction <add>, %674, %cst_326 [0] : vector<8x48xf32> to vector<48xf32>
    %676 = vector.shape_cast %675 : vector<48xf32> to vector<1x48xf32>
    %677 = math.log %676 : vector<1x48xf32>
    %678 = arith.addf %671, %677 : vector<1x48xf32>
    %679 = tpu.concatenate %663, %678 in 0 : vector<1x48xf32>, vector<1x48xf32> -> vector<2x48xf32>
    %cst_327 = arith.constant dense<0xFF800000> : vector<2xf32>
    %680 = vector.multi_reduction <maximumf>, %679, %cst_327 [1] : vector<2x48xf32> to vector<2xf32>
    %681 = vector.shape_cast %680 : vector<2xf32> to vector<2x1xf32>
    %682 = vector.broadcast %681 : vector<2x1xf32> to vector<2x48xf32>
    %683 = arith.subf %679, %682 : vector<2x48xf32>
    %684 = math.exp %683 : vector<2x48xf32>
    %cst_328 = arith.constant dense<0.000000e+00> : vector<2x48xf32>
    %685 = tpu.matmul %684, %34, %cst_328 {dimension_numbers = #tpu.dot_dimension_numbers<[1], [0], [0], [1], [0, 0, 1, 1], [], []>} : vector<2x48xf32>, vector<48x48xf32>, vector<2x48xf32> -> vector<2x48xf32>
    %686 = math.log %685 : vector<2x48xf32>
    %687 = vector.broadcast %681 : vector<2x1xf32> to vector<2x48xf32>
    %688 = arith.addf %686, %687 : vector<2x48xf32>
    %689 = vector.broadcast %31 : vector<1x1xf32> to vector<2x48xf32>
    %690 = arith.addf %688, %689 : vector<2x48xf32>
    %691 = vector.extract_strided_slice %690 {offsets = [0, 0], sizes = [1, 48], strides = [1, 1]} : vector<2x48xf32> to vector<1x48xf32>
    %c21_329 = arith.constant 21 : index
    %c0_330 = arith.constant 0 : index
    %692 = vector.load %arg12[%c21_329, %c0_330] : memref<24x48xf32, #tpu.memory_space<vmem>>, vector<1x48xf32>
    tpu.vector_store %arg12[%c21_329, %c0_330], %691 {strides = array<i32>} : memref<24x48xf32, #tpu.memory_space<vmem>>, vector<1x48xf32>,
    %693 = vector.extract_strided_slice %690 {offsets = [1, 0], sizes = [1, 48], strides = [1, 1]} : vector<2x48xf32> to vector<1x48xf32>
    %c21_331 = arith.constant 21 : index
    %c0_332 = arith.constant 0 : index
    %694 = vector.load %arg13[%c21_331, %c0_332] : memref<24x48xf32, #tpu.memory_space<vmem>>, vector<1x48xf32>
    tpu.vector_store %arg13[%c21_331, %c0_332], %693 {strides = array<i32>} : memref<24x48xf32, #tpu.memory_space<vmem>>, vector<1x48xf32>,
    %c22 = arith.constant 22 : index
    %c0_333 = arith.constant 0 : index
    %695 = vector.load %arg10[%c22, %c0_333] : memref<24x48xf32, #tpu.memory_space<vmem>>, vector<1x48xf32>
    %c14_334 = arith.constant 14 : index
    %c0_335 = arith.constant 0 : index
    %696 = vector.load %arg10[%c14_334, %c0_335] : memref<24x48xf32, #tpu.memory_space<vmem>>, vector<8x48xf32>
    %c14_336 = arith.constant 14 : index
    %c0_337 = arith.constant 0 : index
    %697 = vector.load %arg12[%c14_336, %c0_337] : memref<24x48xf32, #tpu.memory_space<vmem>>, vector<8x48xf32>
    %698 = vector.broadcast %695 : vector<1x48xf32> to vector<8x48xf32>
    %699 = arith.addf %698, %697 : vector<8x48xf32>
    %700 = arith.subf %699, %696 : vector<8x48xf32>
    %cst_338 = arith.constant dense<0xFF800000> : vector<48xf32>
    %701 = vector.multi_reduction <maximumf>, %700, %cst_338 [0] : vector<8x48xf32> to vector<48xf32>
    %702 = vector.shape_cast %701 : vector<48xf32> to vector<1x48xf32>
    %703 = vector.broadcast %702 : vector<1x48xf32> to vector<8x48xf32>
    %704 = arith.subf %700, %703 : vector<8x48xf32>
    %705 = math.exp %704 : vector<8x48xf32>
    %cst_339 = arith.constant dense<0.000000e+00> : vector<48xf32>
    %706 = vector.multi_reduction <add>, %705, %cst_339 [0] : vector<8x48xf32> to vector<48xf32>
    %707 = vector.shape_cast %706 : vector<48xf32> to vector<1x48xf32>
    %708 = math.log %707 : vector<1x48xf32>
    %709 = arith.addf %702, %708 : vector<1x48xf32>
    %c22_340 = arith.constant 22 : index
    %c0_341 = arith.constant 0 : index
    %710 = vector.load %arg11[%c22_340, %c0_341] : memref<24x48xf32, #tpu.memory_space<vmem>>, vector<1x48xf32>
    %c14_342 = arith.constant 14 : index
    %c0_343 = arith.constant 0 : index
    %711 = vector.load %arg11[%c14_342, %c0_343] : memref<24x48xf32, #tpu.memory_space<vmem>>, vector<8x48xf32>
    %c14_344 = arith.constant 14 : index
    %c0_345 = arith.constant 0 : index
    %712 = vector.load %arg13[%c14_344, %c0_345] : memref<24x48xf32, #tpu.memory_space<vmem>>, vector<8x48xf32>
    %713 = vector.broadcast %710 : vector<1x48xf32> to vector<8x48xf32>
    %714 = arith.addf %713, %712 : vector<8x48xf32>
    %715 = arith.subf %714, %711 : vector<8x48xf32>
    %cst_346 = arith.constant dense<0xFF800000> : vector<48xf32>
    %716 = vector.multi_reduction <maximumf>, %715, %cst_346 [0] : vector<8x48xf32> to vector<48xf32>
    %717 = vector.shape_cast %716 : vector<48xf32> to vector<1x48xf32>
    %718 = vector.broadcast %717 : vector<1x48xf32> to vector<8x48xf32>
    %719 = arith.subf %715, %718 : vector<8x48xf32>
    %720 = math.exp %719 : vector<8x48xf32>
    %cst_347 = arith.constant dense<0.000000e+00> : vector<48xf32>
    %721 = vector.multi_reduction <add>, %720, %cst_347 [0] : vector<8x48xf32> to vector<48xf32>
    %722 = vector.shape_cast %721 : vector<48xf32> to vector<1x48xf32>
    %723 = math.log %722 : vector<1x48xf32>
    %724 = arith.addf %717, %723 : vector<1x48xf32>
    %725 = tpu.concatenate %709, %724 in 0 : vector<1x48xf32>, vector<1x48xf32> -> vector<2x48xf32>
    %cst_348 = arith.constant dense<0xFF800000> : vector<2xf32>
    %726 = vector.multi_reduction <maximumf>, %725, %cst_348 [1] : vector<2x48xf32> to vector<2xf32>
    %727 = vector.shape_cast %726 : vector<2xf32> to vector<2x1xf32>
    %728 = vector.broadcast %727 : vector<2x1xf32> to vector<2x48xf32>
    %729 = arith.subf %725, %728 : vector<2x48xf32>
    %730 = math.exp %729 : vector<2x48xf32>
    %cst_349 = arith.constant dense<0.000000e+00> : vector<2x48xf32>
    %731 = tpu.matmul %730, %34, %cst_349 {dimension_numbers = #tpu.dot_dimension_numbers<[1], [0], [0], [1], [0, 0, 1, 1], [], []>} : vector<2x48xf32>, vector<48x48xf32>, vector<2x48xf32> -> vector<2x48xf32>
    %732 = math.log %731 : vector<2x48xf32>
    %733 = vector.broadcast %727 : vector<2x1xf32> to vector<2x48xf32>
    %734 = arith.addf %732, %733 : vector<2x48xf32>
    %735 = vector.broadcast %31 : vector<1x1xf32> to vector<2x48xf32>
    %736 = arith.addf %734, %735 : vector<2x48xf32>
    %737 = vector.extract_strided_slice %736 {offsets = [0, 0], sizes = [1, 48], strides = [1, 1]} : vector<2x48xf32> to vector<1x48xf32>
    %c22_350 = arith.constant 22 : index
    %c0_351 = arith.constant 0 : index
    %738 = vector.load %arg12[%c22_350, %c0_351] : memref<24x48xf32, #tpu.memory_space<vmem>>, vector<1x48xf32>
    tpu.vector_store %arg12[%c22_350, %c0_351], %737 {strides = array<i32>} : memref<24x48xf32, #tpu.memory_space<vmem>>, vector<1x48xf32>,
    %739 = vector.extract_strided_slice %736 {offsets = [1, 0], sizes = [1, 48], strides = [1, 1]} : vector<2x48xf32> to vector<1x48xf32>
    %c22_352 = arith.constant 22 : index
    %c0_353 = arith.constant 0 : index
    %740 = vector.load %arg13[%c22_352, %c0_353] : memref<24x48xf32, #tpu.memory_space<vmem>>, vector<1x48xf32>
    tpu.vector_store %arg13[%c22_352, %c0_353], %739 {strides = array<i32>} : memref<24x48xf32, #tpu.memory_space<vmem>>, vector<1x48xf32>,
    %c23 = arith.constant 23 : index
    %c0_354 = arith.constant 0 : index
    %741 = vector.load %arg10[%c23, %c0_354] : memref<24x48xf32, #tpu.memory_space<vmem>>, vector<1x48xf32>
    %c15_355 = arith.constant 15 : index
    %c0_356 = arith.constant 0 : index
    %742 = vector.load %arg10[%c15_355, %c0_356] : memref<24x48xf32, #tpu.memory_space<vmem>>, vector<8x48xf32>
    %c15_357 = arith.constant 15 : index
    %c0_358 = arith.constant 0 : index
    %743 = vector.load %arg12[%c15_357, %c0_358] : memref<24x48xf32, #tpu.memory_space<vmem>>, vector<8x48xf32>
    %744 = vector.broadcast %741 : vector<1x48xf32> to vector<8x48xf32>
    %745 = arith.addf %744, %743 : vector<8x48xf32>
    %746 = arith.subf %745, %742 : vector<8x48xf32>
    %cst_359 = arith.constant dense<0xFF800000> : vector<48xf32>
    %747 = vector.multi_reduction <maximumf>, %746, %cst_359 [0] : vector<8x48xf32> to vector<48xf32>
    %748 = vector.shape_cast %747 : vector<48xf32> to vector<1x48xf32>
    %749 = vector.broadcast %748 : vector<1x48xf32> to vector<8x48xf32>
    %750 = arith.subf %746, %749 : vector<8x48xf32>
    %751 = math.exp %750 : vector<8x48xf32>
    %cst_360 = arith.constant dense<0.000000e+00> : vector<48xf32>
    %752 = vector.multi_reduction <add>, %751, %cst_360 [0] : vector<8x48xf32> to vector<48xf32>
    %753 = vector.shape_cast %752 : vector<48xf32> to vector<1x48xf32>
    %754 = math.log %753 : vector<1x48xf32>
    %755 = arith.addf %748, %754 : vector<1x48xf32>
    %c23_361 = arith.constant 23 : index
    %c0_362 = arith.constant 0 : index
    %756 = vector.load %arg11[%c23_361, %c0_362] : memref<24x48xf32, #tpu.memory_space<vmem>>, vector<1x48xf32>
    %c15_363 = arith.constant 15 : index
    %c0_364 = arith.constant 0 : index
    %757 = vector.load %arg11[%c15_363, %c0_364] : memref<24x48xf32, #tpu.memory_space<vmem>>, vector<8x48xf32>
    %c15_365 = arith.constant 15 : index
    %c0_366 = arith.constant 0 : index
    %758 = vector.load %arg13[%c15_365, %c0_366] : memref<24x48xf32, #tpu.memory_space<vmem>>, vector<8x48xf32>
    %759 = vector.broadcast %756 : vector<1x48xf32> to vector<8x48xf32>
    %760 = arith.addf %759, %758 : vector<8x48xf32>
    %761 = arith.subf %760, %757 : vector<8x48xf32>
    %cst_367 = arith.constant dense<0xFF800000> : vector<48xf32>
    %762 = vector.multi_reduction <maximumf>, %761, %cst_367 [0] : vector<8x48xf32> to vector<48xf32>
    %763 = vector.shape_cast %762 : vector<48xf32> to vector<1x48xf32>
    %764 = vector.broadcast %763 : vector<1x48xf32> to vector<8x48xf32>
    %765 = arith.subf %761, %764 : vector<8x48xf32>
    %766 = math.exp %765 : vector<8x48xf32>
    %cst_368 = arith.constant dense<0.000000e+00> : vector<48xf32>
    %767 = vector.multi_reduction <add>, %766, %cst_368 [0] : vector<8x48xf32> to vector<48xf32>
    %768 = vector.shape_cast %767 : vector<48xf32> to vector<1x48xf32>
    %769 = math.log %768 : vector<1x48xf32>
    %770 = arith.addf %763, %769 : vector<1x48xf32>
    %771 = tpu.concatenate %755, %770 in 0 : vector<1x48xf32>, vector<1x48xf32> -> vector<2x48xf32>
    %cst_369 = arith.constant dense<0xFF800000> : vector<2xf32>
    %772 = vector.multi_reduction <maximumf>, %771, %cst_369 [1] : vector<2x48xf32> to vector<2xf32>
    %773 = vector.shape_cast %772 : vector<2xf32> to vector<2x1xf32>
    %774 = vector.broadcast %773 : vector<2x1xf32> to vector<2x48xf32>
    %775 = arith.subf %771, %774 : vector<2x48xf32>
    %776 = math.exp %775 : vector<2x48xf32>
    %cst_370 = arith.constant dense<0.000000e+00> : vector<2x48xf32>
    %777 = tpu.matmul %776, %34, %cst_370 {dimension_numbers = #tpu.dot_dimension_numbers<[1], [0], [0], [1], [0, 0, 1, 1], [], []>} : vector<2x48xf32>, vector<48x48xf32>, vector<2x48xf32> -> vector<2x48xf32>
    %778 = math.log %777 : vector<2x48xf32>
    %779 = vector.broadcast %773 : vector<2x1xf32> to vector<2x48xf32>
    %780 = arith.addf %778, %779 : vector<2x48xf32>
    %781 = vector.broadcast %31 : vector<1x1xf32> to vector<2x48xf32>
    %782 = arith.addf %780, %781 : vector<2x48xf32>
    %783 = vector.extract_strided_slice %782 {offsets = [0, 0], sizes = [1, 48], strides = [1, 1]} : vector<2x48xf32> to vector<1x48xf32>
    %c23_371 = arith.constant 23 : index
    %c0_372 = arith.constant 0 : index
    %784 = vector.load %arg12[%c23_371, %c0_372] : memref<24x48xf32, #tpu.memory_space<vmem>>, vector<1x48xf32>
    tpu.vector_store %arg12[%c23_371, %c0_372], %783 {strides = array<i32>} : memref<24x48xf32, #tpu.memory_space<vmem>>, vector<1x48xf32>,
    %785 = vector.extract_strided_slice %782 {offsets = [1, 0], sizes = [1, 48], strides = [1, 1]} : vector<2x48xf32> to vector<1x48xf32>
    %c23_373 = arith.constant 23 : index
    %c0_374 = arith.constant 0 : index
    %786 = vector.load %arg13[%c23_373, %c0_374] : memref<24x48xf32, #tpu.memory_space<vmem>>, vector<1x48xf32>
    tpu.vector_store %arg13[%c23_373, %c0_374], %785 {strides = array<i32>} : memref<24x48xf32, #tpu.memory_space<vmem>>, vector<1x48xf32>,
    %787 = vector.extract_strided_slice %771 {offsets = [0, 0], sizes = [1, 48], strides = [1, 1]} : vector<2x48xf32> to vector<1x48xf32>
    %cst_375 = arith.constant dense<0xFF800000> : vector<1xf32>
    %788 = vector.multi_reduction <maximumf>, %787, %cst_375 [1] : vector<1x48xf32> to vector<1xf32>
    %789 = vector.shape_cast %788 : vector<1xf32> to vector<1x1xf32>
    %790 = vector.broadcast %789 : vector<1x1xf32> to vector<1x48xf32>
    %791 = arith.subf %787, %790 : vector<1x48xf32>
    %792 = math.exp %791 : vector<1x48xf32>
    %cst_376 = arith.constant dense<0.000000e+00> : vector<1xf32>
    %793 = vector.multi_reduction <add>, %792, %cst_376 [1] : vector<1x48xf32> to vector<1xf32>
    %794 = vector.shape_cast %793 : vector<1xf32> to vector<1x1xf32>
    %795 = math.log %794 : vector<1x1xf32>
    %796 = arith.addf %789, %795 : vector<1x1xf32>
    %797 = arith.subf %796, %19 : vector<1x1xf32>
    %c0_377 = arith.constant 0 : index
    %c0_378 = arith.constant 0 : index
    %798 = vector.load %arg9[%c0_377, %c0_378] : memref<2x1xf32, #tpu.memory_space<vmem>>, vector<1x1xf32>
    tpu.vector_store %arg9[%c0_377, %c0_378], %797 {strides = array<i32>} : memref<2x1xf32, #tpu.memory_space<vmem>>, vector<1x1xf32>,
    %799 = vector.extract_strided_slice %771 {offsets = [1, 0], sizes = [1, 48], strides = [1, 1]} : vector<2x48xf32> to vector<1x48xf32>
    %cst_379 = arith.constant dense<0xFF800000> : vector<1xf32>
    %800 = vector.multi_reduction <maximumf>, %799, %cst_379 [1] : vector<1x48xf32> to vector<1xf32>
    %801 = vector.shape_cast %800 : vector<1xf32> to vector<1x1xf32>
    %802 = vector.broadcast %801 : vector<1x1xf32> to vector<1x48xf32>
    %803 = arith.subf %799, %802 : vector<1x48xf32>
    %804 = math.exp %803 : vector<1x48xf32>
    %cst_380 = arith.constant dense<0.000000e+00> : vector<1xf32>
    %805 = vector.multi_reduction <add>, %804, %cst_380 [1] : vector<1x48xf32> to vector<1xf32>
    %806 = vector.shape_cast %805 : vector<1xf32> to vector<1x1xf32>
    %807 = math.log %806 : vector<1x1xf32>
    %808 = arith.addf %801, %807 : vector<1x1xf32>
    %809 = arith.subf %808, %24 : vector<1x1xf32>
    %c1_381 = arith.constant 1 : index
    %c0_382 = arith.constant 0 : index
    %810 = vector.load %arg9[%c1_381, %c0_382] : memref<2x1xf32, #tpu.memory_space<vmem>>, vector<1x1xf32>
    tpu.vector_store %arg9[%c1_381, %c0_382], %809 {strides = array<i32>} : memref<2x1xf32, #tpu.memory_space<vmem>>, vector<1x1xf32>,
    return
  }
  func.func @transform_0(%arg0: i32) -> (i32, i32) {
    %c0_i32 = arith.constant 0 : i32
    %c0_i32_0 = arith.constant 0 : i32
    %c0_i32_1 = arith.constant 0 : i32
    return %c0_i32, %c0_i32_0 : i32, i32
  }
  func.func @transform_1(%arg0: i32) -> (i32, i32) {
    %c0_i32 = arith.constant 0 : i32
    %c0_i32_0 = arith.constant 0 : i32
    %c0_i32_1 = arith.constant 0 : i32
    return %c0_i32, %c0_i32_0 : i32, i32
  }
  func.func @transform_2(%arg0: i32) -> (i32, i32) {
    %c0_i32 = arith.constant 0 : i32
    %c0_i32_0 = arith.constant 0 : i32
    %c0_i32_1 = arith.constant 0 : i32
    return %c0_i32, %c0_i32_0 : i32, i32
  }
  func.func @transform_3(%arg0: i32) -> (i32, i32) {
    %c0_i32 = arith.constant 0 : i32
    %c0_i32_0 = arith.constant 0 : i32
    %c0_i32_1 = arith.constant 0 : i32
    return %c0_i32, %c0_i32_0 : i32, i32
  }
  func.func @transform_4(%arg0: i32) -> (i32, i32) {
    %c0_i32 = arith.constant 0 : i32
    %c0_i32_0 = arith.constant 0 : i32
    %c0_i32_1 = arith.constant 0 : i32
    return %c0_i32, %c0_i32_0 : i32, i32
  }
  func.func @transform_5(%arg0: i32) -> (i32, i32) {
    %c0_i32 = arith.constant 0 : i32
    %c0_i32_0 = arith.constant 0 : i32
    %c0_i32_1 = arith.constant 0 : i32
    return %c0_i32, %c0_i32_0 : i32, i32
  }
  func.func @transform_6(%arg0: i32) -> (i32, i32) {
    %c0_i32 = arith.constant 0 : i32
    %c0_i32_0 = arith.constant 0 : i32
    %c0_i32_1 = arith.constant 0 : i32
    return %c0_i32, %c0_i32_0 : i32, i32
  }
  func.func @transform_7(%arg0: i32) -> (i32, i32) {
    %c0_i32 = arith.constant 0 : i32
    %c0_i32_0 = arith.constant 0 : i32
    %c0_i32_1 = arith.constant 0 : i32
    return %c0_i32, %c0_i32_0 : i32, i32
  }
  func.func @transform_8(%arg0: i32) -> (i32, i32) {
    %c0_i32 = arith.constant 0 : i32
    %c0_i32_0 = arith.constant 0 : i32
    %c0_i32_1 = arith.constant 0 : i32
    return %c0_i32, %c0_i32_0 : i32, i32
  }
}

</mosaic_0001>

<bundles_post_ra>
// kernel: eq.1
= control target key start
LH: loop header
LB: loop body
LE: loop exit
PB: predicated region body
PF: predicated region fallthrough
CT: control target
= control target key end

     0   :  { %vm7_vm0 = vcmask 130048   ;;  %vm13_vm1 = vcmask 261248   ;;  %s39_s0 = inlined_call_operand.vmem [shape: s32[2,16], index: 0, kind: input, shape index: {}]   ;;  %s40_s1 = inlined_call_operand.vmem [shape: s32[32], index: 1, kind: output, shape index: {}]  }
   0x1   :  { %v4_v0 = vld [vmem:[%s39_s0] sm:$0x3]  ;;  %s22_s0 = smov 16  }
   0x2   :  { %5 = vst [vmem:[#allocation1] sm:$0x3] %v4_v0 }
   0x9   :  { %v10_v1 = vld [vmem:[#allocation1 + $0x1] sm:$0x1]   ;;  %v6_v2 = vld [vmem:[#allocation1] sm:$0x1]  }
   0xa   :  { %11 = vrot.lane.b32.xlu0 %v10_v1, %s22_s0  ;;  %8 = vst.msk [vmem:[#allocation0] sm:$0x1] %vm7_vm0, %v6_v2  }
  0x7c   :  { %v12_v3 = vpop.permute.xlu0 %11  }
  0x7d   :  { %14 = vst.msk [vmem:[#allocation0] sm:$0x1] %vm13_vm1, %v12_v3  }
  0x84   :  { %v17_v4 = vld [vmem:[#allocation0] sm:$0x1] }
  0x85   :  { %20 = vst [vmem:[%s40_s1] sm:$0x1] %v17_v4 }

// kernel: note2harmony_forward.1
= control target key start
LH: loop header
LB: loop body
LE: loop exit
PB: predicated region body
PF: predicated region fallthrough
CT: control target
= control target key end

     0   :  { %vm40_vm0 = vcmask 195584   ;;  %vm94_vm1 = vcmask 261120   ;;  %vm144_vm2 = vcmask 392192   ;;  %v2001_v37 = vmov 0.0   ;;  %s2484_s1 = inlined_call_operand.vmem [shape: f32[24,32], index: 1, kind: input, shape index: {}]   ;;  %s2485_s3 = inlined_call_operand.vmem [shape: f32[32,48], index: 3, kind: input, shape index: {}]   ;;  %s2486_s0 = inlined_call_operand.vmem [shape: f32[32,24], index: 0, kind: input, shape index: {}]   ;;  %s2487_s2 = inlined_call_operand.vmem [shape: f32[1,32], index: 2, kind: input, shape index: {}]   ;;  %s2488_s4 = inlined_call_operand.vmem [shape: f32[1,48], index: 4, kind: input, shape index: {}]   ;;  %s2489_s6 = inlined_call_operand.vmem [shape: f32[32,32], index: 6, kind: input, shape index: {}]   ;;  %s2490_s5 = inlined_call_operand.vmem [shape: f32[48,48], index: 5, kind: input, shape index: {}]   ;;  %s2491_s7 = inlined_call_operand.vmem [shape: f32[32,48], index: 7, kind: input, shape index: {}]   ;;  %s2492_s8 = inlined_call_operand.vmem [shape: f32[2,1], index: 8, kind: output, shape index: {}]  }
   0x1   :  { %v35_v0 = vld [vmem:[%s2484_s1 + $0x10] sm:$0xff]  ;;  %v34_v1 = vld [vmem:[%s2484_s1 + $0x8] sm:$0xff]  ;;  %v33_v2 = vld [vmem:[%s2484_s1] sm:$0xff]  ;;  %269 = vst.msk [vmem:[#allocation2] sm:$0xff] %vm144_vm2, %v2001_v37  ;;  %vm273_vm3 = vcmask 385024   ;;  %vm332_vm4 = vcmask 1040384  }
   0x2   :  { %66 = vmatpush.msra.mxu0 %v35_v0  ;;  %v89_v3 = vld [vmem:[%s2485_s3 + $0x18] sm:$0xff]  ;;  %v29_v4 = vld [vmem:[%s2486_s0] sm:$0xff]  ;;  %v30_v5 = vld [vmem:[%s2486_s0 + $0x8] sm:$0xff]  ;;  %v2002_v38 = vmov -1e+30   ;;  %275 = vst.msk [vmem:[#allocation3] sm:$0xff] %vm144_vm2, %v2001_v37 }
   0x3   :  { %119 = vmatpush.msra.mxu1 %v89_v3  ;;  %v31_v6 = vld [vmem:[%s2486_s0 + $0x10] sm:$0xff]  ;;  %v32_v7 = vld [vmem:[%s2486_s0 + $0x18] sm:$0xff]  ;;  %v87_v9 = vld [vmem:[%s2485_s3 + $0x8] sm:$0xff]  ;;  %272 = vst.msk [vmem:[#allocation4] sm:$0xff] %vm144_vm2, %v2002_v38  ;;  %vm334_vm5 = vcmask 386048   ;;  %vm369_vm6 = vcmask 386049  }
   0x4   :  { %67 = vmatpush.msra.mxu0 %v34_v1  ;;  %v88_v8 = vld [vmem:[%s2485_s3 + $0x10] sm:$0xff]  ;;  %v86_v10 = vld [vmem:[%s2485_s3] sm:$0xff]  ;;  %v172_v34 = vld [vmem:[%s2489_s6 + $0x8] sm:$0xff]  ;;  %274 = vst.msk [vmem:[#allocation4 + $0x7] sm:$0x1] %vm273_vm3, %v2001_v37  ;;  %vm1719_vm7 = vcmask 1025  }
   0x5   :  { %120 = vmatpush.msra.mxu1 %v88_v8  ;;  %v1755_v11 = vld [vmem:[%s2487_s2] ss:$0 sm:$0xff]  ;;  %v173_v35 = vld [vmem:[%s2489_s6 + $0x10] sm:$0xff]  ;;  %v174_v36 = vld [vmem:[%s2489_s6 + $0x18] sm:$0xff]  ;;  %278 = vst.msk [vmem:[#allocation5] sm:$0xff] %vm144_vm2, %v2002_v38  ;;  %vm1704_vm8 = vcmask 0  }
   0x6   :  { %68 = vmatpush.msra.mxu0 %v33_v2  ;;  %v1756_v27 = vld [vmem:[%s2488_s4] ss:$0 sm:$0xff]  ;;  %279 = vst.msk [vmem:[#allocation5 + $0x7] sm:$0x1] %vm273_vm3, %v2001_v37  ;;  %v2142_v43 = vld [vmem:[%s2490_s5 + $0x10] sm:$0xff]  ;;  %v2149_v45 = vld [vmem:[%s2490_s5 + $0x28] sm:$0xff] }
   0x7   :  { %1725 = vmatmul.msk.f32.vlgmr.msra.gmra.mxu0 %vm40_vm0, %v29_v4  ;;  %121 = vmatpush.msra.mxu1 %v87_v9  ;;  %v171_v33 = vld [vmem:[%s2489_s6] sm:$0xff]  ;;  %v228_v44 = vsel %vm144_vm2, %v2142_v43, -inf  ;;  %v2154_v46 = vld [vmem:[%s2490_s5 + $0x8] sm:$0xff]  ;;  %v237_v47 = vsel %vm144_vm2, %v2149_v45, -inf  ;;  %v2163_v49 = vld [vmem:[%s2490_s5 + $0x18] sm:$0xff] }
   0x8   :  { %v2127_v39 = vld [vmem:[%s2490_s5 + $0x20] sm:$0xff]  ;;  %229 = vmax.xlane.f32.xlu2 %v228_v44  ;;  %v225_v48 = vsel %vm144_vm2, %v2154_v46, -inf  ;;  %v231_v50 = vsel %vm144_vm2, %v2163_v49, -inf }
   0x9   :  { %122 = vmatpush.msra.mxu1 %v86_v10  ;;  %v2132_v40 = vld [vmem:[%s2490_s5] sm:$0xff]  ;;  %v234_v41 = vsel %vm144_vm2, %v2127_v39, -inf }
   0xa   :  { %v222_v42 = vsel %vm144_vm2, %v2132_v40, -inf  ;;  %235 = vmax.xlane.f32.xlu1 %v234_v41  ;;  %v281_v55 = vld [vmem:[#allocation2] sm:$0xff] }
   0xb   :  { %223 = vmax.xlane.f32.xlu0 %v222_v42  ;;  %v282_v52 = vld [vmem:[#allocation4] sm:$0xff] }
   0xd   :  { %v308_v1 = vld [vmem:[#allocation5] sm:$0xff] }
   0xf   :  { %1726 = vmatmul.msk.f32.gmra.mxu0 %vm40_vm0, %v30_v5  ;;  %v307_v5 = vld [vmem:[#allocation3] sm:$0xff] }
  0x10   :  { %232 = vmax.xlane.f32.xlu2 %v231_v50 }
  0x12   :  { %238 = vmax.xlane.f32.xlu1 %v237_v47 }
  0x13   :  { %226 = vmax.xlane.f32.xlu0 %v225_v48 }
  0x17   :  { %1727 = vmatmul.msk.f32.gmra.mxu0 %vm40_vm0, %v31_v6 }
  0x1f   :  { %1728 = vmatmul.msk.f32.gmra.mxu0 %vm40_vm0, %v32_v7 }
  0x84   :  { %v70_v12 = vpop.f32.mrf.mxu0 }
  0x85   :  { %v71_v13 = vadd.f32 %v1755_v11, %v70_v12 }
  0x87   :  { %v82_v14 = vmax.f32 %v71_v13, 0.0 }
  0x89   :  { %1729 = vmatmul.msk.f32.vlgmr.msra.gmra.mxu1 %vm94_vm1, %v82_v14 }
  0x8c   :  { %v73_v15 = vpop.f32.mrf.mxu0 }
  0x8d   :  { %v74_v16 = vadd.f32 %v1755_v11, %v73_v15 }
  0x8f   :  { %v83_v17 = vmax.f32 %v74_v16, 0.0 }
  0x91   :  { %1730 = vmatmul.msk.f32.gmra.mxu1 %vm94_vm1, %v83_v17 }
  0x94   :  { %v76_v18 = vpop.f32.mrf.mxu0 }
  0x95   :  { %v77_v19 = vadd.f32 %v1755_v11, %v76_v18 }
  0x97   :  { %v84_v20 = vmax.f32 %v77_v19, 0.0 }
  0x99   :  { %1731 = vmatmul.msk.f32.gmra.mxu1 %vm94_vm1, %v84_v20 }
  0x9c   :  { %v79_v21 = vpop.f32.mrf.mxu0 }
  0x9d   :  { %v80_v22 = vadd.f32 %v1755_v11, %v79_v21 }
  0x9f   :  { %v85_v23 = vmax.f32 %v80_v22, 0.0 }
  0xa1   :  { %1732 = vmatmul.msk.f32.gmra.mxu1 %vm94_vm1, %v85_v23 }
 0x106   :  { %v124_v24 = vpop.f32.mrf.mxu1 }
 0x107   :  { %v2099_v32 = vadd.f32 %v1756_v27, %v124_v24 }
 0x10e   :  { %v127_v25 = vpop.f32.mrf.mxu1 }
 0x10f   :  { %v2096_v31 = vadd.f32 %v1756_v27, %v127_v25 }
 0x116   :  { %v130_v26 = vpop.f32.mrf.mxu1 }
 0x117   :  { %v2093_v30 = vadd.f32 %v1756_v27, %v130_v26 }
 0x11e   :  { %v133_v28 = vpop.f32.mrf.mxu1 }
 0x11f   :  { %v2091_v29 = vadd.f32 %v1756_v27, %v133_v28 }
 0x121   :  { %199 = vmatpush.msra.mxu2 %v2091_v29 }
 0x123   :  { %200 = vmatpush.msra.mxu2 %v2093_v30 }
 0x125   :  { %201 = vmatpush.msra.mxu2 %v2096_v31 }
 0x127   :  { %202 = vmatpush.msra.mxu2 %v2099_v32 }
 0x128   :  { %1733 = vmatmul.msk.f32.vlgmr.msra.gmra.mxu2 %vm94_vm1, %v171_v33 }
 0x130   :  { %1734 = vmatmul.msk.f32.gmra.mxu2 %vm94_vm1, %v172_v34 }
 0x138   :  { %1735 = vmatmul.msk.f32.gmra.mxu2 %vm94_vm1, %v173_v35 }
 0x140   :  { %1736 = vmatmul.msk.f32.gmra.mxu2 %vm94_vm1, %v174_v36 }
 0x1ab   :  { %v204_v51 = vpop.f32.mrf.mxu2 }
 0x1ac   :  { %270 = vst.msk [vmem:[#allocation2 + $0x8] sm:$0xff] %vm144_vm2, %v204_v51 }
 0x1b3   :  { %v207_v53 = vpop.f32.mrf.mxu2  ;;  %v1757_v54 = vld [vmem:[#allocation2 + $0x8] ss:$0 sm:$0xff] }
 0x1b4   :  { %271 = vst.msk [vmem:[#allocation2 + $0x10] sm:$0xff] %vm144_vm2, %v207_v53  ;;  %v284_v56 = vadd.f32 %v1757_v54, %v282_v52  ;;  %v236_v53 = vpop.xlane.xlu1 %235  ;;  %v224_v54 = vpop.xlane.xlu0 %223 }
 0x1b6   :  { %v285_v57 = vsub.f32 %v284_v56, %v281_v55  ;;  %v230_v55 = vpop.xlane.xlu2 %229  ;;  %v240_v56 = vmax.f32 %v224_v54, %v236_v53 }
 0x1b8   :  { %v286_v58 = vsel %vm144_vm2, %v285_v57, -inf }
 0x1b9   :  { %v287_v59 = vrot.slane %v286_v58, 4 }
 0x1bb   :  { %v210_v60 = vpop.f32.mrf.mxu2  ;;  %v288_v61 = vmax.f32 %v286_v58, %v287_v59 }
 0x1bc   :  { %276 = vst.msk [vmem:[#allocation3 + $0x8] sm:$0xff] %vm144_vm2, %v210_v60  ;;  %v227_v58 = vpop.xlane.xlu0 %226 }
 0x1bd   :  { %v289_v62 = vrot.slane %v288_v61, 2 }
 0x1be   :  { %v233_v60 = vpop.xlane.xlu2 %232 }
 0x1bf   :  { %v290_v63 = vmax.f32 %v288_v61, %v289_v62  ;;  %v243_v62 = vmax.f32 %v230_v55, %v233_v60 }
 0x1c1   :  { %v291_v0 = vrot.slane %v290_v63, 1 }
 0x1c3   :  { %v213_v2 = vpop.f32.mrf.mxu2  ;;  %v1758_v3 = vld [vmem:[#allocation3 + $0x8] ss:$0 sm:$0xff]  ;;  %v292_v4 = vmax.f32 %v290_v63, %v291_v0 }
 0x1c4   :  { %277 = vst.msk [vmem:[#allocation3 + $0x10] sm:$0xff] %vm144_vm2, %v213_v2  ;;  %v310_v6 = vadd.f32 %v1758_v3, %v308_v1 }
 0x1c5   :  { %v293_v7 = vsub.f32 %v285_v57, %v292_v4  ;;  %v239_v57 = vpop.xlane.xlu1 %238 }
 0x1c6   :  { %v311_v8 = vsub.f32 %v310_v6, %v307_v5  ;;  %v241_v59 = vmax.f32 %v227_v58, %v239_v57 }
 0x1c7   :  { %v294_v9 = vmul.f32 1.442695, %v293_v7 }
 0x1c8   :  { %v312_v10 = vsel %vm144_vm2, %v311_v8, -inf  ;;  %v242_v61 = vmax.f32 %v240_v56, %v241_v59 }
 0x1c9   :  { %1789 = vpow2.f32 %v294_v9  ;;  %v313_v11 = vrot.slane %v312_v10, 4 }
 0x1ca   :  { %v244_v63 = vmax.f32 %v242_v61, %v243_v62 }
 0x1cb   :  { %v314_v12 = vmax.f32 %v312_v10, %v313_v11 }
 0x1cc   :  { %v245_v0 = vrot.slane %v244_v63, 4 }
 0x1cd   :  { %v315_v13 = vrot.slane %v314_v12, 2 }
 0x1ce   :  { %v246_v1 = vmax.f32 %v244_v63, %v245_v0 }
 0x1cf   :  { %v1790_v14 = vpop.eup %1789  ;;  %v316_v15 = vmax.f32 %v314_v12, %v315_v13 }
 0x1d0   :  { %v296_v16 = vsel %vm144_vm2, %v1790_v14, 0.0  ;;  %v247_v2 = vrot.slane %v246_v1, 2 }
 0x1d1   :  { %v297_v17 = vrot.slane %v296_v16, 4  ;;  %v317_v18 = vrot.slane %v316_v15, 1 }
 0x1d2   :  { %v248_v3 = vmax.f32 %v246_v1, %v247_v2 }
 0x1d3   :  { %v318_v19 = vmax.f32 %v316_v15, %v317_v18  ;;  %v298_v20 = vadd.f32 %v297_v17, %v296_v16 }
 0x1d5   :  { %v319_v21 = vsub.f32 %v311_v8, %v318_v19  ;;  %v299_v23 = vrot.slane %v298_v20, 2 }
 0x1d7   :  { %v320_v22 = vmul.f32 1.442695, %v319_v21  ;;  %v300_v24 = vadd.f32 %v299_v23, %v298_v20 }
 0x1d9   :  { %1791 = vpow2.f32 %v320_v22  ;;  %v301_v27 = vrot.slane %v300_v24, 1 }
 0x1db   :  { %v302_v34 = vadd.f32 %v301_v27, %v300_v24  ;;  %v1759_v27 = vld [vmem:[#allocation2 + $0x9] ss:$0 sm:$0xff] }
 0x1dd   :  { %1793 = vlog2.f32 %v302_v34 }
 0x1df   :  { %v1792_v25 = vpop.eup %1791 }
 0x1e0   :  { %v322_v26 = vsel %vm144_vm2, %v1792_v25, 0.0 }
 0x1e1   :  { %v323_v28 = vrot.slane %v322_v26, 4 }
 0x1e3   :  { %v324_v33 = vadd.f32 %v323_v28, %v322_v26  ;;  %v1794_v41 = vpop.eup %1793 }
 0x1e4   :  { %v304_v42 = vmul.f32 0.6931472, %v1794_v41  ;;  %v398_v41 = vld [vmem:[#allocation3 + $0x1] sm:$0xff] }
 0x1e5   :  { %v325_v35 = vrot.slane %v324_v33, 2 }
 0x1e6   :  { %v305_v48 = vadd.f32 %v304_v42, %v292_v4  ;;  %v249_v4 = vrot.slane %v248_v3, 1 }
 0x1e7   :  { %v326_v36 = vadd.f32 %v325_v35, %v324_v33  ;;  %v1760_v33 = vld [vmem:[#allocation3 + $0x9] ss:$0 sm:$0xff] }
 0x1e8   :  { %v2180_v5 = vmax.f32 %v248_v3, %v249_v4 }
 0x1e9   :  { %v327_v37 = vrot.slane %v326_v36, 1 }
 0x1ea   :  { %v255_v6 = vsub.f32 %v2127_v39, %v2180_v5  ;;  %v256_v7 = vsub.f32 %v2149_v45, %v2180_v5  ;;  %v254_v8 = vsub.f32 %v2163_v49, %v2180_v5  ;;  %v253_v10 = vsub.f32 %v2142_v43, %v2180_v5 }
 0x1eb   :  { %v328_v38 = vadd.f32 %v327_v37, %v326_v36  ;;  %v252_v12 = vsub.f32 %v2154_v46, %v2180_v5  ;;  %v251_v14 = vsub.f32 %v2132_v40, %v2180_v5  ;;  %v372_v36 = vld [vmem:[#allocation2 + $0x1] sm:$0xff] }
 0x1ec   :  { %v265_v9 = vmul.f32 1.442695, %v255_v6  ;;  %v267_v11 = vmul.f32 1.442695, %v256_v7  ;;  %v263_v13 = vmul.f32 1.442695, %v254_v8 }
 0x1ed   :  { %1795 = vlog2.f32 %v328_v38  ;;  %v261_v39 = vmul.f32 1.442695, %v253_v10  ;;  %v259_v15 = vmul.f32 1.442695, %v252_v12  ;;  %v257_v45 = vmul.f32 1.442695, %v251_v14 }
 0x1ee   :  { %1797 = vpow2.f32 %v265_v9 }
 0x1ef   :  { %1799 = vpow2.f32 %v267_v11 }
 0x1f0   :  { %1801 = vpow2.f32 %v263_v13 }
 0x1f1   :  { %1803 = vpow2.f32 %v261_v39 }
 0x1f2   :  { %1805 = vpow2.f32 %v259_v15 }
 0x1f3   :  { %v1796_v44 = vpop.eup %1795  ;;  %1807 = vpow2.f32 %v257_v45 }
 0x1f4   :  { %v330_v47 = vmul.f32 0.6931472, %v1796_v44  ;;  %v2194_v49 = vpop.eup %1797 }
 0x1f5   :  { %v2196_v16 = vpop.eup %1799 }
 0x1f6   :  { %v331_v50 = vadd.f32 %v330_v47, %v318_v19  ;;  %354 = vmatpush.msra.mxu3 %v2196_v16  ;;  %619 = vmatpush.msrb.mxu0 %v2196_v16  ;;  %v2200_v43 = vpop.eup %1801 }
 0x1f7   :  { %707 = vmatpush.msrb.mxu1 %v2196_v16  ;;  %795 = vmatpush.msrb.mxu2 %v2196_v16  ;;  %v2206_v40 = vpop.eup %1803 }
 0x1f8   :  { %v2176_v51 = vsel %vm332_vm4, %v305_v48, %v331_v50  ;;  %355 = vmatpush.msra.mxu3 %v2194_v49  ;;  %620 = vmatpush.msrb.mxu0 %v2194_v49  ;;  %v2212_v46 = vpop.eup %1805 }
 0x1f9   :  { %v335_v52 = vsel %vm334_vm5, %v2176_v51, -inf  ;;  %708 = vmatpush.msrb.mxu1 %v2194_v49  ;;  %796 = vmatpush.msrb.mxu2 %v2194_v49  ;;  %v2218_v17 = vpop.eup %1807 }
 0x1fa   :  { %336 = vmax.xlane.f32.xlu0 %v335_v52  ;;  %356 = vmatpush.msra.mxu3 %v2200_v43 }
 0x1fb   :  { %621 = vmatpush.msrb.mxu0 %v2200_v43  ;;  %709 = vmatpush.msrb.mxu1 %v2200_v43 }
 0x1fc   :  { %797 = vmatpush.msrb.mxu2 %v2200_v43  ;;  %357 = vmatpush.msra.mxu3 %v2206_v40 }
 0x1fd   :  { %622 = vmatpush.msrb.mxu0 %v2206_v40  ;;  %710 = vmatpush.msrb.mxu1 %v2206_v40 }
 0x1fe   :  { %798 = vmatpush.msrb.mxu2 %v2206_v40  ;;  %358 = vmatpush.msra.mxu3 %v2212_v46 }
 0x1ff   :  { %623 = vmatpush.msrb.mxu0 %v2212_v46  ;;  %711 = vmatpush.msrb.mxu1 %v2212_v46 }
 0x200   :  { %799 = vmatpush.msrb.mxu2 %v2212_v46  ;;  %359 = vmatpush.msra.mxu3 %v2218_v17 }
 0x201   :  { %624 = vmatpush.msrb.mxu0 %v2218_v17  ;;  %712 = vmatpush.msrb.mxu1 %v2218_v17 }
 0x202   :  { %800 = vmatpush.msrb.mxu2 %v2218_v17  ;;  %443 = vmatpush.msrb.mxu3 %v2196_v16 }
 0x203   :  { %971 = vmatpush.msra.mxu0 %v2196_v16  ;;  %1059 = vmatpush.msra.mxu1 %v2196_v16 }
 0x204   :  { %1147 = vmatpush.msra.mxu2 %v2196_v16  ;;  %444 = vmatpush.msrb.mxu3 %v2194_v49 }
 0x205   :  { %972 = vmatpush.msra.mxu0 %v2194_v49  ;;  %1060 = vmatpush.msra.mxu1 %v2194_v49 }
 0x206   :  { %1148 = vmatpush.msra.mxu2 %v2194_v49  ;;  %445 = vmatpush.msrb.mxu3 %v2200_v43 }
 0x207   :  { %973 = vmatpush.msra.mxu0 %v2200_v43  ;;  %1061 = vmatpush.msra.mxu1 %v2200_v43 }
 0x208   :  { %1149 = vmatpush.msra.mxu2 %v2200_v43  ;;  %446 = vmatpush.msrb.mxu3 %v2206_v40 }
 0x209   :  { %974 = vmatpush.msra.mxu0 %v2206_v40  ;;  %1062 = vmatpush.msra.mxu1 %v2206_v40 }
 0x20a   :  { %1150 = vmatpush.msra.mxu2 %v2206_v40  ;;  %447 = vmatpush.msrb.mxu3 %v2212_v46 }
 0x20b   :  { %975 = vmatpush.msra.mxu0 %v2212_v46  ;;  %1063 = vmatpush.msra.mxu1 %v2212_v46 }
 0x20c   :  { %1151 = vmatpush.msra.mxu2 %v2212_v46  ;;  %448 = vmatpush.msrb.mxu3 %v2218_v17 }
 0x20d   :  { %976 = vmatpush.msra.mxu0 %v2218_v17  ;;  %1064 = vmatpush.msra.mxu1 %v2218_v17 }
 0x20e   :  { %1152 = vmatpush.msra.mxu2 %v2218_v17 }
 0x26d   :  { %v337_v18 = vpop.xlane.xlu0 %336 }
 0x26e   :  { %v338_v19 = vsub.f32 %v2176_v51, %v337_v18 }
 0x270   :  { %v339_v20 = vmul.f32 1.442695, %v338_v19 }
 0x272   :  { %1809 = vpow2.f32 %v339_v20 }
 0x278   :  { %v1810_v21 = vpop.eup %1809 }
 0x279   :  { %1737 = vmatmul.msk.f32.vlgmr.msra.gmra.mxu3 %vm144_vm2, %v1810_v21 }
 0x27a   :  { %531 = vmatpush.msra.mxu3 %v2196_v16 }
 0x27c   :  { %532 = vmatpush.msra.mxu3 %v2194_v49 }
 0x27e   :  { %533 = vmatpush.msra.mxu3 %v2200_v43 }
 0x280   :  { %534 = vmatpush.msra.mxu3 %v2206_v40 }
 0x282   :  { %535 = vmatpush.msra.mxu3 %v2212_v46 }
 0x284   :  { %536 = vmatpush.msra.mxu3 %v2218_v17 }
 0x2fc   :  { %v361_v22 = vpop.f32.mrf.mxu3 }
 0x2fd   :  { %1811 = vlog2.f32 %v361_v22 }
 0x303   :  { %v1812_v23 = vpop.eup %1811 }
 0x304   :  { %v365_v24 = vmul.f32 0.6931472, %v1812_v23 }
 0x306   :  { %v366_v25 = vadd.f32 %v365_v24, %v337_v18 }
 0x308   :  { %v367_v26 = vadd.f32 %v366_v25, %v2180_v5 }
 0x30a   :  { %368 = vst.msk [vmem:[#allocation4 + $0x8] sm:$0x1] %vm273_vm3, %v367_v26 }
 0x30b   :  { %370 = vst.msk [vmem:[#allocation5 + $0x7] sm:$0x2] %vm369_vm6, %v367_v26 }
 0x311   :  { %v373_v28 = vld [vmem:[#allocation4 + $0x1] sm:$0xff] }
 0x312   :  { %v375_v34 = vadd.f32 %v1759_v27, %v373_v28  ;;  %v399_v35 = vld [vmem:[#allocation5 + $0x1] sm:$0xff] }
 0x313   :  { %v401_v37 = vadd.f32 %v1760_v33, %v399_v35 }
 0x314   :  { %v376_v38 = vsub.f32 %v375_v34, %v372_v36 }
 0x315   :  { %v402_v42 = vsub.f32 %v401_v37, %v398_v41  ;;  %v1761_v41 = vld [vmem:[#allocation2 + $0xa] ss:$0 sm:$0xff] }
 0x316   :  { %v377_v44 = vsel %vm144_vm2, %v376_v38, -inf }
 0x317   :  { %v378_v47 = vrot.slane %v377_v44, 4  ;;  %v403_v48 = vsel %vm144_vm2, %v402_v42, -inf }
 0x318   :  { %v404_v50 = vrot.slane %v403_v48, 4 }
 0x319   :  { %v379_v51 = vmax.f32 %v377_v44, %v378_v47  ;;  %v1762_v44 = vld [vmem:[#allocation3 + $0xa] ss:$0 sm:$0xff] }
 0x31a   :  { %v405_v52 = vmax.f32 %v403_v48, %v404_v50  ;;  %v460_v50 = vld [vmem:[#allocation2 + $0x2] sm:$0xff] }
 0x31b   :  { %v380_v53 = vrot.slane %v379_v51, 2 }
 0x31c   :  { %v406_v54 = vrot.slane %v405_v52, 2 }
 0x31d   :  { %v381_v55 = vmax.f32 %v379_v51, %v380_v53  ;;  %v486_v53 = vld [vmem:[#allocation3 + $0x2] sm:$0xff] }
 0x31e   :  { %v407_v56 = vmax.f32 %v405_v52, %v406_v54 }
 0x31f   :  { %v382_v57 = vrot.slane %v381_v55, 1 }
 0x320   :  { %v408_v58 = vrot.slane %v407_v56, 1 }
 0x321   :  { %v383_v59 = vmax.f32 %v381_v55, %v382_v57 }
 0x322   :  { %v409_v60 = vmax.f32 %v407_v56, %v408_v58 }
 0x323   :  { %v384_v61 = vsub.f32 %v376_v38, %v383_v59 }
 0x324   :  { %v410_v62 = vsub.f32 %v402_v42, %v409_v60 }
 0x325   :  { %v385_v63 = vmul.f32 1.442695, %v384_v61 }
 0x326   :  { %v411_v0 = vmul.f32 1.442695, %v410_v62 }
 0x327   :  { %1813 = vpow2.f32 %v385_v63 }
 0x328   :  { %1815 = vpow2.f32 %v411_v0 }
 0x32d   :  { %v1814_v1 = vpop.eup %1813 }
 0x32e   :  { %v1816_v2 = vpop.eup %1815  ;;  %v387_v3 = vsel %vm144_vm2, %v1814_v1, 0.0 }
 0x32f   :  { %v388_v4 = vrot.slane %v387_v3, 4  ;;  %v413_v6 = vsel %vm144_vm2, %v1816_v2, 0.0 }
 0x330   :  { %v414_v7 = vrot.slane %v413_v6, 4 }
 0x331   :  { %v389_v8 = vadd.f32 %v388_v4, %v387_v3 }
 0x332   :  { %v415_v9 = vadd.f32 %v414_v7, %v413_v6 }
 0x333   :  { %v390_v10 = vrot.slane %v389_v8, 2 }
 0x334   :  { %v416_v11 = vrot.slane %v415_v9, 2 }
 0x335   :  { %v391_v12 = vadd.f32 %v390_v10, %v389_v8 }
 0x336   :  { %v417_v13 = vadd.f32 %v416_v11, %v415_v9 }
 0x337   :  { %v392_v14 = vrot.slane %v391_v12, 1 }
 0x338   :  { %v418_v39 = vrot.slane %v417_v13, 1 }
 0x339   :  { %v393_v15 = vadd.f32 %v392_v14, %v391_v12 }
 0x33a   :  { %v419_v45 = vadd.f32 %v418_v39, %v417_v13 }
 0x33b   :  { %1817 = vlog2.f32 %v393_v15 }
 0x33c   :  { %1819 = vlog2.f32 %v419_v45 }
 0x341   :  { %v1818_v18 = vpop.eup %1817 }
 0x342   :  { %v1820_v19 = vpop.eup %1819  ;;  %v395_v20 = vmul.f32 0.6931472, %v1818_v18 }
 0x343   :  { %v421_v21 = vmul.f32 0.6931472, %v1820_v19 }
 0x344   :  { %v396_v22 = vadd.f32 %v395_v20, %v383_v59 }
 0x345   :  { %v422_v23 = vadd.f32 %v421_v21, %v409_v60 }
 0x347   :  { %v423_v24 = vsel %vm332_vm4, %v396_v22, %v422_v23 }
 0x348   :  { %v424_v25 = vsel %vm334_vm5, %v423_v24, -inf }
 0x349   :  { %425 = vmax.xlane.f32.xlu1 %v424_v25 }
 0x3bc   :  { %v426_v26 = vpop.xlane.xlu1 %425 }
 0x3bd   :  { %v427_v27 = vsub.f32 %v423_v24, %v426_v26 }
 0x3bf   :  { %v428_v28 = vmul.f32 1.442695, %v427_v27 }
 0x3c1   :  { %1821 = vpow2.f32 %v428_v28 }
 0x3c7   :  { %v1822_v33 = vpop.eup %1821 }
 0x3c8   :  { %1738 = vmatmul.msk.f32.vlgmr.msrb.gmra.mxu3 %vm144_vm2, %v1822_v33 }
 0x3c9   :  { %883 = vmatpush.msrb.mxu3 %v2196_v16 }
 0x3cb   :  { %884 = vmatpush.msrb.mxu3 %v2194_v49 }
 0x3cd   :  { %885 = vmatpush.msrb.mxu3 %v2200_v43 }
 0x3cf   :  { %886 = vmatpush.msrb.mxu3 %v2206_v40 }
 0x3d1   :  { %887 = vmatpush.msrb.mxu3 %v2212_v46 }
 0x3d3   :  { %888 = vmatpush.msrb.mxu3 %v2218_v17 }
 0x44b   :  { %v450_v34 = vpop.f32.mrf.mxu3 }
 0x44c   :  { %1823 = vlog2.f32 %v450_v34 }
 0x452   :  { %v1824_v35 = vpop.eup %1823 }
 0x453   :  { %v454_v36 = vmul.f32 0.6931472, %v1824_v35 }
 0x455   :  { %v455_v37 = vadd.f32 %v454_v36, %v426_v26 }
 0x457   :  { %v456_v38 = vadd.f32 %v455_v37, %v2180_v5 }
 0x459   :  { %457 = vst.msk [vmem:[#allocation4 + $0x9] sm:$0x1] %vm273_vm3, %v456_v38 }
 0x45a   :  { %458 = vst.msk [vmem:[#allocation5 + $0x8] sm:$0x2] %vm369_vm6, %v456_v38 }
 0x460   :  { %v461_v42 = vld [vmem:[#allocation4 + $0x2] sm:$0xff] }
 0x461   :  { %v463_v47 = vadd.f32 %v1761_v41, %v461_v42  ;;  %v487_v48 = vld [vmem:[#allocation5 + $0x2] sm:$0xff] }
 0x462   :  { %v489_v51 = vadd.f32 %v1762_v44, %v487_v48 }
 0x463   :  { %v464_v52 = vsub.f32 %v463_v47, %v460_v50 }
 0x464   :  { %v490_v54 = vsub.f32 %v489_v51, %v486_v53  ;;  %v1763_v53 = vld [vmem:[#allocation2 + $0xb] ss:$0 sm:$0xff] }
 0x465   :  { %v465_v55 = vsel %vm144_vm2, %v464_v52, -inf }
 0x466   :  { %v466_v56 = vrot.slane %v465_v55, 4  ;;  %v491_v57 = vsel %vm144_vm2, %v490_v54, -inf }
 0x467   :  { %v492_v58 = vrot.slane %v491_v57, 4 }
 0x468   :  { %v467_v59 = vmax.f32 %v465_v55, %v466_v56  ;;  %v1764_v55 = vld [vmem:[#allocation3 + $0xb] ss:$0 sm:$0xff] }
 0x469   :  { %v493_v60 = vmax.f32 %v491_v57, %v492_v58  ;;  %v548_v58 = vld [vmem:[#allocation2 + $0x3] sm:$0xff] }
 0x46a   :  { %v468_v61 = vrot.slane %v467_v59, 2 }
 0x46b   :  { %v494_v62 = vrot.slane %v493_v60, 2 }
 0x46c   :  { %v469_v63 = vmax.f32 %v467_v59, %v468_v61  ;;  %v574_v61 = vld [vmem:[#allocation3 + $0x3] sm:$0xff] }
 0x46d   :  { %v495_v0 = vmax.f32 %v493_v60, %v494_v62 }
 0x46e   :  { %v470_v1 = vrot.slane %v469_v63, 1 }
 0x46f   :  { %v496_v2 = vrot.slane %v495_v0, 1 }
 0x470   :  { %v471_v3 = vmax.f32 %v469_v63, %v470_v1 }
 0x471   :  { %v497_v4 = vmax.f32 %v495_v0, %v496_v2 }
 0x472   :  { %v472_v6 = vsub.f32 %v464_v52, %v471_v3 }
 0x473   :  { %v498_v7 = vsub.f32 %v490_v54, %v497_v4 }
 0x474   :  { %v473_v8 = vmul.f32 1.442695, %v472_v6 }
 0x475   :  { %v499_v9 = vmul.f32 1.442695, %v498_v7 }
 0x476   :  { %1825 = vpow2.f32 %v473_v8 }
 0x477   :  { %1827 = vpow2.f32 %v499_v9 }
 0x47c   :  { %v1826_v10 = vpop.eup %1825 }
 0x47d   :  { %v1828_v11 = vpop.eup %1827  ;;  %v475_v12 = vsel %vm144_vm2, %v1826_v10, 0.0 }
 0x47e   :  { %v476_v13 = vrot.slane %v475_v12, 4  ;;  %v501_v14 = vsel %vm144_vm2, %v1828_v11, 0.0 }
 0x47f   :  { %v502_v39 = vrot.slane %v501_v14, 4 }
 0x480   :  { %v477_v15 = vadd.f32 %v476_v13, %v475_v12 }
 0x481   :  { %v503_v45 = vadd.f32 %v502_v39, %v501_v14 }
 0x482   :  { %v478_v18 = vrot.slane %v477_v15, 2 }
 0x483   :  { %v504_v19 = vrot.slane %v503_v45, 2 }
 0x484   :  { %v479_v20 = vadd.f32 %v478_v18, %v477_v15 }
 0x485   :  { %v505_v21 = vadd.f32 %v504_v19, %v503_v45 }
 0x486   :  { %v480_v22 = vrot.slane %v479_v20, 1 }
 0x487   :  { %v506_v23 = vrot.slane %v505_v21, 1 }
 0x488   :  { %v481_v24 = vadd.f32 %v480_v22, %v479_v20 }
 0x489   :  { %v507_v25 = vadd.f32 %v506_v23, %v505_v21 }
 0x48a   :  { %1829 = vlog2.f32 %v481_v24 }
 0x48b   :  { %1831 = vlog2.f32 %v507_v25 }
 0x490   :  { %v1830_v26 = vpop.eup %1829 }
 0x491   :  { %v1832_v27 = vpop.eup %1831  ;;  %v483_v28 = vmul.f32 0.6931472, %v1830_v26 }
 0x492   :  { %v509_v33 = vmul.f32 0.6931472, %v1832_v27 }
 0x493   :  { %v484_v34 = vadd.f32 %v483_v28, %v471_v3 }
 0x494   :  { %v510_v35 = vadd.f32 %v509_v33, %v497_v4 }
 0x496   :  { %v511_v36 = vsel %vm332_vm4, %v484_v34, %v510_v35 }
 0x497   :  { %v512_v37 = vsel %vm334_vm5, %v511_v36, -inf }
 0x498   :  { %513 = vmax.xlane.f32.xlu2 %v512_v37 }
 0x50b   :  { %v514_v38 = vpop.xlane.xlu2 %513 }
 0x50c   :  { %v515_v41 = vsub.f32 %v511_v36, %v514_v38 }
 0x50e   :  { %v516_v42 = vmul.f32 1.442695, %v515_v41 }
 0x510   :  { %1833 = vpow2.f32 %v516_v42 }
 0x516   :  { %v1834_v44 = vpop.eup %1833 }
 0x517   :  { %1739 = vmatmul.msk.f32.vlgmr.msra.gmra.mxu3 %vm144_vm2, %v1834_v44 }
 0x518   :  { %1235 = vmatpush.msra.mxu3 %v2196_v16 }
 0x51a   :  { %1236 = vmatpush.msra.mxu3 %v2194_v49 }
 0x51c   :  { %1237 = vmatpush.msra.mxu3 %v2200_v43 }
 0x51e   :  { %1238 = vmatpush.msra.mxu3 %v2206_v40 }
 0x520   :  { %1239 = vmatpush.msra.mxu3 %v2212_v46 }
 0x522   :  { %1240 = vmatpush.msra.mxu3 %v2218_v17 }
 0x59a   :  { %v538_v47 = vpop.f32.mrf.mxu3 }
 0x59b   :  { %1835 = vlog2.f32 %v538_v47 }
 0x5a1   :  { %v1836_v48 = vpop.eup %1835 }
 0x5a2   :  { %v542_v50 = vmul.f32 0.6931472, %v1836_v48 }
 0x5a4   :  { %v543_v51 = vadd.f32 %v542_v50, %v514_v38 }
 0x5a6   :  { %v544_v52 = vadd.f32 %v543_v51, %v2180_v5 }
 0x5a8   :  { %545 = vst.msk [vmem:[#allocation4 + $0xa] sm:$0x1] %vm273_vm3, %v544_v52 }
 0x5a9   :  { %546 = vst.msk [vmem:[#allocation5 + $0x9] sm:$0x2] %vm369_vm6, %v544_v52 }
 0x5af   :  { %v549_v54 = vld [vmem:[#allocation4 + $0x3] sm:$0xff] }
 0x5b0   :  { %v551_v56 = vadd.f32 %v1763_v53, %v549_v54  ;;  %v575_v57 = vld [vmem:[#allocation5 + $0x3] sm:$0xff] }
 0x5b1   :  { %v577_v59 = vadd.f32 %v1764_v55, %v575_v57 }
 0x5b2   :  { %v552_v60 = vsub.f32 %v551_v56, %v548_v58 }
 0x5b3   :  { %v578_v62 = vsub.f32 %v577_v59, %v574_v61  ;;  %v1765_v61 = vld [vmem:[#allocation2 + $0xc] ss:$0 sm:$0xff] }
 0x5b4   :  { %v553_v63 = vsel %vm144_vm2, %v552_v60, -inf }
 0x5b5   :  { %v554_v0 = vrot.slane %v553_v63, 4  ;;  %v579_v1 = vsel %vm144_vm2, %v578_v62, -inf }
 0x5b6   :  { %v580_v2 = vrot.slane %v579_v1, 4 }
 0x5b7   :  { %v555_v3 = vmax.f32 %v553_v63, %v554_v0  ;;  %v1766_v63 = vld [vmem:[#allocation3 + $0xc] ss:$0 sm:$0xff] }
 0x5b8   :  { %v581_v4 = vmax.f32 %v579_v1, %v580_v2  ;;  %v636_v2 = vld [vmem:[#allocation2 + $0x4] sm:$0xff] }
 0x5b9   :  { %v556_v6 = vrot.slane %v555_v3, 2 }
 0x5ba   :  { %v582_v7 = vrot.slane %v581_v4, 2 }
 0x5bb   :  { %v557_v8 = vmax.f32 %v555_v3, %v556_v6  ;;  %v662_v6 = vld [vmem:[#allocation3 + $0x4] sm:$0xff] }
 0x5bc   :  { %v583_v9 = vmax.f32 %v581_v4, %v582_v7 }
 0x5bd   :  { %v558_v10 = vrot.slane %v557_v8, 1 }
 0x5be   :  { %v584_v11 = vrot.slane %v583_v9, 1 }
 0x5bf   :  { %v559_v12 = vmax.f32 %v557_v8, %v558_v10 }
 0x5c0   :  { %v585_v13 = vmax.f32 %v583_v9, %v584_v11 }
 0x5c1   :  { %v560_v14 = vsub.f32 %v552_v60, %v559_v12 }
 0x5c2   :  { %v586_v39 = vsub.f32 %v578_v62, %v585_v13 }
 0x5c3   :  { %v561_v15 = vmul.f32 1.442695, %v560_v14 }
 0x5c4   :  { %v587_v45 = vmul.f32 1.442695, %v586_v39 }
 0x5c5   :  { %1837 = vpow2.f32 %v561_v15 }
 0x5c6   :  { %1839 = vpow2.f32 %v587_v45 }
 0x5cb   :  { %v1838_v18 = vpop.eup %1837 }
 0x5cc   :  { %v1840_v19 = vpop.eup %1839  ;;  %v563_v20 = vsel %vm144_vm2, %v1838_v18, 0.0 }
 0x5cd   :  { %v564_v21 = vrot.slane %v563_v20, 4  ;;  %v589_v22 = vsel %vm144_vm2, %v1840_v19, 0.0 }
 0x5ce   :  { %v590_v23 = vrot.slane %v589_v22, 4 }
 0x5cf   :  { %v565_v24 = vadd.f32 %v564_v21, %v563_v20 }
 0x5d0   :  { %v591_v25 = vadd.f32 %v590_v23, %v589_v22 }
 0x5d1   :  { %v566_v26 = vrot.slane %v565_v24, 2 }
 0x5d2   :  { %v592_v27 = vrot.slane %v591_v25, 2 }
 0x5d3   :  { %v567_v28 = vadd.f32 %v566_v26, %v565_v24 }
 0x5d4   :  { %v593_v33 = vadd.f32 %v592_v27, %v591_v25 }
 0x5d5   :  { %v568_v34 = vrot.slane %v567_v28, 1 }
 0x5d6   :  { %v594_v35 = vrot.slane %v593_v33, 1 }
 0x5d7   :  { %v569_v36 = vadd.f32 %v568_v34, %v567_v28 }
 0x5d8   :  { %v595_v37 = vadd.f32 %v594_v35, %v593_v33 }
 0x5d9   :  { %1841 = vlog2.f32 %v569_v36 }
 0x5da   :  { %1843 = vlog2.f32 %v595_v37 }
 0x5df   :  { %v1842_v38 = vpop.eup %1841 }
 0x5e0   :  { %v1844_v41 = vpop.eup %1843  ;;  %v571_v42 = vmul.f32 0.6931472, %v1842_v38 }
 0x5e1   :  { %v597_v44 = vmul.f32 0.6931472, %v1844_v41 }
 0x5e2   :  { %v572_v47 = vadd.f32 %v571_v42, %v559_v12 }
 0x5e3   :  { %v598_v48 = vadd.f32 %v597_v44, %v585_v13 }
 0x5e5   :  { %v599_v50 = vsel %vm332_vm4, %v572_v47, %v598_v48 }
 0x5e6   :  { %v600_v51 = vsel %vm334_vm5, %v599_v50, -inf }
 0x5e7   :  { %601 = vmax.xlane.f32.xlu0 %v600_v51 }
 0x65a   :  { %v602_v52 = vpop.xlane.xlu0 %601 }
 0x65b   :  { %v603_v53 = vsub.f32 %v599_v50, %v602_v52 }
 0x65d   :  { %v604_v54 = vmul.f32 1.442695, %v603_v53 }
 0x65f   :  { %1845 = vpow2.f32 %v604_v54 }
 0x665   :  { %v1846_v55 = vpop.eup %1845 }
 0x666   :  { %1740 = vmatmul.msk.f32.vlgmr.msrb.gmra.mxu0 %vm144_vm2, %v1846_v55 }
 0x667   :  { %1323 = vmatpush.msrb.mxu0 %v2196_v16 }
 0x669   :  { %1324 = vmatpush.msrb.mxu0 %v2194_v49 }
 0x66b   :  { %1325 = vmatpush.msrb.mxu0 %v2200_v43 }
 0x66d   :  { %1326 = vmatpush.msrb.mxu0 %v2206_v40 }
 0x66f   :  { %1327 = vmatpush.msrb.mxu0 %v2212_v46 }
 0x671   :  { %1328 = vmatpush.msrb.mxu0 %v2218_v17 }
 0x6e3   :  { %v626_v56 = vpop.f32.mrf.mxu0 }
 0x6e4   :  { %1847 = vlog2.f32 %v626_v56 }
 0x6ea   :  { %v1848_v57 = vpop.eup %1847 }
 0x6eb   :  { %v630_v58 = vmul.f32 0.6931472, %v1848_v57 }
 0x6ed   :  { %v631_v59 = vadd.f32 %v630_v58, %v602_v52 }
 0x6ef   :  { %v632_v60 = vadd.f32 %v631_v59, %v2180_v5 }
 0x6f1   :  { %633 = vst.msk [vmem:[#allocation4 + $0xb] sm:$0x1] %vm273_vm3, %v632_v60 }
 0x6f2   :  { %634 = vst.msk [vmem:[#allocation5 + $0xa] sm:$0x2] %vm369_vm6, %v632_v60 }
 0x6f8   :  { %v637_v62 = vld [vmem:[#allocation4 + $0x4] sm:$0xff] }
 0x6f9   :  { %v639_v0 = vadd.f32 %v1765_v61, %v637_v62  ;;  %v663_v1 = vld [vmem:[#allocation5 + $0x4] sm:$0xff] }
 0x6fa   :  { %v665_v3 = vadd.f32 %v1766_v63, %v663_v1 }
 0x6fb   :  { %v640_v4 = vsub.f32 %v639_v0, %v636_v2 }
 0x6fc   :  { %v666_v7 = vsub.f32 %v665_v3, %v662_v6  ;;  %v1767_v6 = vld [vmem:[#allocation2 + $0xd] ss:$0 sm:$0xff] }
 0x6fd   :  { %v641_v8 = vsel %vm144_vm2, %v640_v4, -inf }
 0x6fe   :  { %v642_v9 = vrot.slane %v641_v8, 4  ;;  %v667_v10 = vsel %vm144_vm2, %v666_v7, -inf }
 0x6ff   :  { %v668_v11 = vrot.slane %v667_v10, 4 }
 0x700   :  { %v643_v12 = vmax.f32 %v641_v8, %v642_v9  ;;  %v1768_v8 = vld [vmem:[#allocation3 + $0xd] ss:$0 sm:$0xff] }
 0x701   :  { %v669_v13 = vmax.f32 %v667_v10, %v668_v11  ;;  %v724_v11 = vld [vmem:[#allocation2 + $0x5] sm:$0xff] }
 0x702   :  { %v644_v14 = vrot.slane %v643_v12, 2 }
 0x703   :  { %v670_v39 = vrot.slane %v669_v13, 2 }
 0x704   :  { %v645_v15 = vmax.f32 %v643_v12, %v644_v14  ;;  %v750_v14 = vld [vmem:[#allocation3 + $0x5] sm:$0xff] }
 0x705   :  { %v671_v45 = vmax.f32 %v669_v13, %v670_v39 }
 0x706   :  { %v646_v18 = vrot.slane %v645_v15, 1 }
 0x707   :  { %v672_v19 = vrot.slane %v671_v45, 1 }
 0x708   :  { %v647_v20 = vmax.f32 %v645_v15, %v646_v18 }
 0x709   :  { %v673_v21 = vmax.f32 %v671_v45, %v672_v19 }
 0x70a   :  { %v648_v22 = vsub.f32 %v640_v4, %v647_v20 }
 0x70b   :  { %v674_v23 = vsub.f32 %v666_v7, %v673_v21 }
 0x70c   :  { %v649_v24 = vmul.f32 1.442695, %v648_v22 }
 0x70d   :  { %v675_v25 = vmul.f32 1.442695, %v674_v23 }
 0x70e   :  { %1849 = vpow2.f32 %v649_v24 }
 0x70f   :  { %1851 = vpow2.f32 %v675_v25 }
 0x714   :  { %v1850_v26 = vpop.eup %1849 }
 0x715   :  { %v1852_v27 = vpop.eup %1851  ;;  %v651_v28 = vsel %vm144_vm2, %v1850_v26, 0.0 }
 0x716   :  { %v652_v33 = vrot.slane %v651_v28, 4  ;;  %v677_v34 = vsel %vm144_vm2, %v1852_v27, 0.0 }
 0x717   :  { %v678_v35 = vrot.slane %v677_v34, 4 }
 0x718   :  { %v653_v36 = vadd.f32 %v652_v33, %v651_v28 }
 0x719   :  { %v679_v37 = vadd.f32 %v678_v35, %v677_v34 }
 0x71a   :  { %v654_v38 = vrot.slane %v653_v36, 2 }
 0x71b   :  { %v680_v41 = vrot.slane %v679_v37, 2 }
 0x71c   :  { %v655_v42 = vadd.f32 %v654_v38, %v653_v36 }
 0x71d   :  { %v681_v44 = vadd.f32 %v680_v41, %v679_v37 }
 0x71e   :  { %v656_v47 = vrot.slane %v655_v42, 1 }
 0x71f   :  { %v682_v48 = vrot.slane %v681_v44, 1 }
 0x720   :  { %v657_v50 = vadd.f32 %v656_v47, %v655_v42 }
 0x721   :  { %v683_v51 = vadd.f32 %v682_v48, %v681_v44 }
 0x722   :  { %1853 = vlog2.f32 %v657_v50 }
 0x723   :  { %1855 = vlog2.f32 %v683_v51 }
 0x728   :  { %v1854_v52 = vpop.eup %1853 }
 0x729   :  { %v1856_v53 = vpop.eup %1855  ;;  %v659_v54 = vmul.f32 0.6931472, %v1854_v52 }
 0x72a   :  { %v685_v55 = vmul.f32 0.6931472, %v1856_v53 }
 0x72b   :  { %v660_v56 = vadd.f32 %v659_v54, %v647_v20 }
 0x72c   :  { %v686_v57 = vadd.f32 %v685_v55, %v673_v21 }
 0x72e   :  { %v687_v58 = vsel %vm332_vm4, %v660_v56, %v686_v57 }
 0x72f   :  { %v688_v59 = vsel %vm334_vm5, %v687_v58, -inf }
 0x730   :  { %689 = vmax.xlane.f32.xlu1 %v688_v59 }
 0x7a3   :  { %v690_v60 = vpop.xlane.xlu1 %689 }
 0x7a4   :  { %v691_v61 = vsub.f32 %v687_v58, %v690_v60 }
 0x7a6   :  { %v692_v62 = vmul.f32 1.442695, %v691_v61 }
 0x7a8   :  { %1857 = vpow2.f32 %v692_v62 }
 0x7ae   :  { %v1858_v63 = vpop.eup %1857 }
 0x7af   :  { %1741 = vmatmul.msk.f32.vlgmr.msrb.gmra.mxu1 %vm144_vm2, %v1858_v63 }
 0x7b0   :  { %1411 = vmatpush.msrb.mxu1 %v2196_v16 }
 0x7b2   :  { %1412 = vmatpush.msrb.mxu1 %v2194_v49 }
 0x7b4   :  { %1413 = vmatpush.msrb.mxu1 %v2200_v43 }
 0x7b6   :  { %1414 = vmatpush.msrb.mxu1 %v2206_v40 }
 0x7b8   :  { %1415 = vmatpush.msrb.mxu1 %v2212_v46 }
 0x7ba   :  { %1416 = vmatpush.msrb.mxu1 %v2218_v17 }
 0x82c   :  { %v714_v0 = vpop.f32.mrf.mxu1 }
 0x82d   :  { %1859 = vlog2.f32 %v714_v0 }
 0x833   :  { %v1860_v1 = vpop.eup %1859 }
 0x834   :  { %v718_v2 = vmul.f32 0.6931472, %v1860_v1 }
 0x836   :  { %v719_v3 = vadd.f32 %v718_v2, %v690_v60 }
 0x838   :  { %v720_v4 = vadd.f32 %v719_v3, %v2180_v5 }
 0x83a   :  { %721 = vst.msk [vmem:[#allocation4 + $0xc] sm:$0x1] %vm273_vm3, %v720_v4 }
 0x83b   :  { %722 = vst.msk [vmem:[#allocation5 + $0xb] sm:$0x2] %vm369_vm6, %v720_v4 }
 0x841   :  { %v725_v7 = vld [vmem:[#allocation4 + $0x5] sm:$0xff] }
 0x842   :  { %v727_v9 = vadd.f32 %v1767_v6, %v725_v7  ;;  %v751_v10 = vld [vmem:[#allocation5 + $0x5] sm:$0xff] }
 0x843   :  { %v753_v12 = vadd.f32 %v1768_v8, %v751_v10 }
 0x844   :  { %v728_v13 = vsub.f32 %v727_v9, %v724_v11 }
 0x845   :  { %v754_v39 = vsub.f32 %v753_v12, %v750_v14  ;;  %v1769_v14 = vld [vmem:[#allocation2 + $0xe] ss:$0 sm:$0xff] }
 0x846   :  { %v729_v15 = vsel %vm144_vm2, %v728_v13, -inf }
 0x847   :  { %v730_v45 = vrot.slane %v729_v15, 4  ;;  %v755_v18 = vsel %vm144_vm2, %v754_v39, -inf }
 0x848   :  { %v756_v19 = vrot.slane %v755_v18, 4 }
 0x849   :  { %v731_v20 = vmax.f32 %v729_v15, %v730_v45  ;;  %v1770_v15 = vld [vmem:[#allocation3 + $0xe] ss:$0 sm:$0xff] }
 0x84a   :  { %v757_v21 = vmax.f32 %v755_v18, %v756_v19  ;;  %v812_v19 = vld [vmem:[#allocation2 + $0x6] sm:$0xff] }
 0x84b   :  { %v732_v22 = vrot.slane %v731_v20, 2 }
 0x84c   :  { %v758_v23 = vrot.slane %v757_v21, 2 }
 0x84d   :  { %v733_v24 = vmax.f32 %v731_v20, %v732_v22  ;;  %v838_v22 = vld [vmem:[#allocation3 + $0x6] sm:$0xff] }
 0x84e   :  { %v759_v25 = vmax.f32 %v757_v21, %v758_v23 }
 0x84f   :  { %v734_v26 = vrot.slane %v733_v24, 1 }
 0x850   :  { %v760_v27 = vrot.slane %v759_v25, 1 }
 0x851   :  { %v735_v28 = vmax.f32 %v733_v24, %v734_v26 }
 0x852   :  { %v761_v33 = vmax.f32 %v759_v25, %v760_v27 }
 0x853   :  { %v736_v34 = vsub.f32 %v728_v13, %v735_v28 }
 0x854   :  { %v762_v35 = vsub.f32 %v754_v39, %v761_v33 }
 0x855   :  { %v737_v36 = vmul.f32 1.442695, %v736_v34 }
 0x856   :  { %v763_v37 = vmul.f32 1.442695, %v762_v35 }
 0x857   :  { %1861 = vpow2.f32 %v737_v36 }
 0x858   :  { %1863 = vpow2.f32 %v763_v37 }
 0x85d   :  { %v1862_v38 = vpop.eup %1861 }
 0x85e   :  { %v1864_v41 = vpop.eup %1863  ;;  %v739_v42 = vsel %vm144_vm2, %v1862_v38, 0.0 }
 0x85f   :  { %v740_v44 = vrot.slane %v739_v42, 4  ;;  %v765_v47 = vsel %vm144_vm2, %v1864_v41, 0.0 }
 0x860   :  { %v766_v48 = vrot.slane %v765_v47, 4 }
 0x861   :  { %v741_v50 = vadd.f32 %v740_v44, %v739_v42 }
 0x862   :  { %v767_v51 = vadd.f32 %v766_v48, %v765_v47 }
 0x863   :  { %v742_v52 = vrot.slane %v741_v50, 2 }
 0x864   :  { %v768_v53 = vrot.slane %v767_v51, 2 }
 0x865   :  { %v743_v54 = vadd.f32 %v742_v52, %v741_v50 }
 0x866   :  { %v769_v55 = vadd.f32 %v768_v53, %v767_v51 }
 0x867   :  { %v744_v56 = vrot.slane %v743_v54, 1 }
 0x868   :  { %v770_v57 = vrot.slane %v769_v55, 1 }
 0x869   :  { %v745_v58 = vadd.f32 %v744_v56, %v743_v54 }
 0x86a   :  { %v771_v59 = vadd.f32 %v770_v57, %v769_v55 }
 0x86b   :  { %1865 = vlog2.f32 %v745_v58 }
 0x86c   :  { %1867 = vlog2.f32 %v771_v59 }
 0x871   :  { %v1866_v60 = vpop.eup %1865 }
 0x872   :  { %v1868_v61 = vpop.eup %1867  ;;  %v747_v62 = vmul.f32 0.6931472, %v1866_v60 }
 0x873   :  { %v773_v63 = vmul.f32 0.6931472, %v1868_v61 }
 0x874   :  { %v748_v0 = vadd.f32 %v747_v62, %v735_v28 }
 0x875   :  { %v774_v1 = vadd.f32 %v773_v63, %v761_v33 }
 0x877   :  { %v775_v2 = vsel %vm332_vm4, %v748_v0, %v774_v1 }
 0x878   :  { %v776_v3 = vsel %vm334_vm5, %v775_v2, -inf }
 0x879   :  { %777 = vmax.xlane.f32.xlu2 %v776_v3 }
 0x8ec   :  { %v778_v4 = vpop.xlane.xlu2 %777 }
 0x8ed   :  { %v779_v6 = vsub.f32 %v775_v2, %v778_v4 }
 0x8ef   :  { %v780_v7 = vmul.f32 1.442695, %v779_v6 }
 0x8f1   :  { %1869 = vpow2.f32 %v780_v7 }
 0x8f7   :  { %v1870_v8 = vpop.eup %1869 }
 0x8f8   :  { %1742 = vmatmul.msk.f32.vlgmr.msrb.gmra.mxu2 %vm144_vm2, %v1870_v8 }
 0x8f9   :  { %1499 = vmatpush.msrb.mxu2 %v2196_v16 }
 0x8fb   :  { %1500 = vmatpush.msrb.mxu2 %v2194_v49 }
 0x8fd   :  { %1501 = vmatpush.msrb.mxu2 %v2200_v43 }
 0x8ff   :  { %1502 = vmatpush.msrb.mxu2 %v2206_v40 }
 0x901   :  { %1503 = vmatpush.msrb.mxu2 %v2212_v46 }
 0x903   :  { %1504 = vmatpush.msrb.mxu2 %v2218_v17 }
 0x97b   :  { %v802_v9 = vpop.f32.mrf.mxu2 }
 0x97c   :  { %1871 = vlog2.f32 %v802_v9 }
 0x982   :  { %v1872_v10 = vpop.eup %1871 }
 0x983   :  { %v806_v11 = vmul.f32 0.6931472, %v1872_v10 }
 0x985   :  { %v807_v12 = vadd.f32 %v806_v11, %v778_v4 }
 0x987   :  { %v808_v13 = vadd.f32 %v807_v12, %v2180_v5 }
 0x989   :  { %809 = vst.msk [vmem:[#allocation4 + $0xd] sm:$0x1] %vm273_vm3, %v808_v13 }
 0x98a   :  { %810 = vst.msk [vmem:[#allocation5 + $0xc] sm:$0x2] %vm369_vm6, %v808_v13 }
 0x990   :  { %v813_v39 = vld [vmem:[#allocation4 + $0x6] sm:$0xff] }
 0x991   :  { %v815_v45 = vadd.f32 %v1769_v14, %v813_v39  ;;  %v839_v18 = vld [vmem:[#allocation5 + $0x6] sm:$0xff] }
 0x992   :  { %v841_v20 = vadd.f32 %v1770_v15, %v839_v18 }
 0x993   :  { %v816_v21 = vsub.f32 %v815_v45, %v812_v19 }
 0x994   :  { %v842_v23 = vsub.f32 %v841_v20, %v838_v22  ;;  %v1771_v22 = vld [vmem:[#allocation2 + $0xf] ss:$0 sm:$0xff] }
 0x995   :  { %v817_v24 = vsel %vm144_vm2, %v816_v21, -inf }
 0x996   :  { %v818_v25 = vrot.slane %v817_v24, 4  ;;  %v843_v26 = vsel %vm144_vm2, %v842_v23, -inf }
 0x997   :  { %v844_v27 = vrot.slane %v843_v26, 4 }
 0x998   :  { %v819_v28 = vmax.f32 %v817_v24, %v818_v25  ;;  %v1772_v24 = vld [vmem:[#allocation3 + $0xf] ss:$0 sm:$0xff] }
 0x999   :  { %v845_v33 = vmax.f32 %v843_v26, %v844_v27  ;;  %v900_v27 = vld [vmem:[#allocation2 + $0x7] sm:$0xff] }
 0x99a   :  { %v820_v34 = vrot.slane %v819_v28, 2 }
 0x99b   :  { %v846_v35 = vrot.slane %v845_v33, 2 }
 0x99c   :  { %v821_v36 = vmax.f32 %v819_v28, %v820_v34  ;;  %v926_v34 = vld [vmem:[#allocation3 + $0x7] sm:$0xff] }
 0x99d   :  { %v847_v37 = vmax.f32 %v845_v33, %v846_v35 }
 0x99e   :  { %v822_v38 = vrot.slane %v821_v36, 1 }
 0x99f   :  { %v848_v41 = vrot.slane %v847_v37, 1 }
 0x9a0   :  { %v823_v42 = vmax.f32 %v821_v36, %v822_v38 }
 0x9a1   :  { %v849_v44 = vmax.f32 %v847_v37, %v848_v41 }
 0x9a2   :  { %v824_v47 = vsub.f32 %v816_v21, %v823_v42 }
 0x9a3   :  { %v850_v48 = vsub.f32 %v842_v23, %v849_v44 }
 0x9a4   :  { %v825_v50 = vmul.f32 1.442695, %v824_v47 }
 0x9a5   :  { %v851_v51 = vmul.f32 1.442695, %v850_v48 }
 0x9a6   :  { %1873 = vpow2.f32 %v825_v50 }
 0x9a7   :  { %1875 = vpow2.f32 %v851_v51 }
 0x9ac   :  { %v1874_v52 = vpop.eup %1873 }
 0x9ad   :  { %v1876_v53 = vpop.eup %1875  ;;  %v827_v54 = vsel %vm144_vm2, %v1874_v52, 0.0 }
 0x9ae   :  { %v828_v55 = vrot.slane %v827_v54, 4  ;;  %v853_v56 = vsel %vm144_vm2, %v1876_v53, 0.0 }
 0x9af   :  { %v854_v57 = vrot.slane %v853_v56, 4 }
 0x9b0   :  { %v829_v58 = vadd.f32 %v828_v55, %v827_v54 }
 0x9b1   :  { %v855_v59 = vadd.f32 %v854_v57, %v853_v56 }
 0x9b2   :  { %v830_v60 = vrot.slane %v829_v58, 2 }
 0x9b3   :  { %v856_v61 = vrot.slane %v855_v59, 2 }
 0x9b4   :  { %v831_v62 = vadd.f32 %v830_v60, %v829_v58 }
 0x9b5   :  { %v857_v63 = vadd.f32 %v856_v61, %v855_v59 }
 0x9b6   :  { %v832_v0 = vrot.slane %v831_v62, 1 }
 0x9b7   :  { %v858_v1 = vrot.slane %v857_v63, 1 }
 0x9b8   :  { %v833_v2 = vadd.f32 %v832_v0, %v831_v62 }
 0x9b9   :  { %v859_v3 = vadd.f32 %v858_v1, %v857_v63 }
 0x9ba   :  { %1877 = vlog2.f32 %v833_v2 }
 0x9bb   :  { %1879 = vlog2.f32 %v859_v3 }
 0x9c0   :  { %v1878_v4 = vpop.eup %1877 }
 0x9c1   :  { %v1880_v6 = vpop.eup %1879  ;;  %v835_v7 = vmul.f32 0.6931472, %v1878_v4 }
 0x9c2   :  { %v861_v8 = vmul.f32 0.6931472, %v1880_v6 }
 0x9c3   :  { %v836_v9 = vadd.f32 %v835_v7, %v823_v42 }
 0x9c4   :  { %v862_v10 = vadd.f32 %v861_v8, %v849_v44 }
 0x9c6   :  { %v863_v11 = vsel %vm332_vm4, %v836_v9, %v862_v10 }
 0x9c7   :  { %v864_v12 = vsel %vm334_vm5, %v863_v11, -inf }
 0x9c8   :  { %865 = vmax.xlane.f32.xlu0 %v864_v12 }
 0xa3b   :  { %v866_v13 = vpop.xlane.xlu0 %865 }
 0xa3c   :  { %v867_v14 = vsub.f32 %v863_v11, %v866_v13 }
 0xa3e   :  { %v868_v39 = vmul.f32 1.442695, %v867_v14 }
 0xa40   :  { %1881 = vpow2.f32 %v868_v39 }
 0xa46   :  { %v1882_v15 = vpop.eup %1881 }
 0xa47   :  { %1743 = vmatmul.msk.f32.vlgmr.msrb.gmra.mxu3 %vm144_vm2, %v1882_v15 }
 0xa48   :  { %1587 = vmatpush.msrb.mxu3 %v2196_v16 }
 0xa4a   :  { %1588 = vmatpush.msrb.mxu3 %v2194_v49 }
 0xa4c   :  { %1589 = vmatpush.msrb.mxu3 %v2200_v43 }
 0xa4e   :  { %1590 = vmatpush.msrb.mxu3 %v2206_v40 }
 0xa50   :  { %1591 = vmatpush.msrb.mxu3 %v2212_v46 }
 0xa52   :  { %1592 = vmatpush.msrb.mxu3 %v2218_v17 }
 0xaca   :  { %v890_v45 = vpop.f32.mrf.mxu3 }
 0xacb   :  { %1883 = vlog2.f32 %v890_v45 }
 0xad1   :  { %v1884_v18 = vpop.eup %1883 }
 0xad2   :  { %v894_v19 = vmul.f32 0.6931472, %v1884_v18 }
 0xad4   :  { %v895_v20 = vadd.f32 %v894_v19, %v866_v13 }
 0xad6   :  { %v896_v21 = vadd.f32 %v895_v20, %v2180_v5 }
 0xad8   :  { %897 = vst.msk [vmem:[#allocation4 + $0xe] sm:$0x1] %vm273_vm3, %v896_v21 }
 0xad9   :  { %898 = vst.msk [vmem:[#allocation5 + $0xd] sm:$0x2] %vm369_vm6, %v896_v21 }
 0xadf   :  { %v901_v23 = vld [vmem:[#allocation4 + $0x7] sm:$0xff] }
 0xae0   :  { %v903_v25 = vadd.f32 %v1771_v22, %v901_v23  ;;  %v927_v26 = vld [vmem:[#allocation5 + $0x7] sm:$0xff] }
 0xae1   :  { %v929_v28 = vadd.f32 %v1772_v24, %v927_v26 }
 0xae2   :  { %v904_v33 = vsub.f32 %v903_v25, %v900_v27 }
 0xae3   :  { %v930_v35 = vsub.f32 %v929_v28, %v926_v34 }
 0xae4   :  { %v905_v36 = vsel %vm144_vm2, %v904_v33, -inf }
 0xae5   :  { %v906_v37 = vrot.slane %v905_v36, 4  ;;  %v931_v38 = vsel %vm144_vm2, %v930_v35, -inf }
 0xae6   :  { %v932_v41 = vrot.slane %v931_v38, 4 }
 0xae7   :  { %v907_v42 = vmax.f32 %v905_v36, %v906_v37 }
 0xae8   :  { %v933_v44 = vmax.f32 %v931_v38, %v932_v41 }
 0xae9   :  { %v908_v47 = vrot.slane %v907_v42, 2 }
 0xaea   :  { %v934_v48 = vrot.slane %v933_v44, 2 }
 0xaeb   :  { %v909_v50 = vmax.f32 %v907_v42, %v908_v47 }
 0xaec   :  { %v935_v51 = vmax.f32 %v933_v44, %v934_v48 }
 0xaed   :  { %v910_v52 = vrot.slane %v909_v50, 1 }
 0xaee   :  { %v936_v53 = vrot.slane %v935_v51, 1 }
 0xaef   :  { %v911_v54 = vmax.f32 %v909_v50, %v910_v52 }
 0xaf0   :  { %v937_v55 = vmax.f32 %v935_v51, %v936_v53 }
 0xaf1   :  { %v912_v56 = vsub.f32 %v904_v33, %v911_v54 }
 0xaf2   :  { %v938_v57 = vsub.f32 %v930_v35, %v937_v55  ;;  %v988_v35 = vld [vmem:[#allocation2 + $0x8] sm:$0xff] }
 0xaf3   :  { %v913_v58 = vmul.f32 1.442695, %v912_v56 }
 0xaf4   :  { %v939_v59 = vmul.f32 1.442695, %v938_v57 }
 0xaf5   :  { %1885 = vpow2.f32 %v913_v58 }
 0xaf6   :  { %1887 = vpow2.f32 %v939_v59 }
 0xafb   :  { %v1886_v60 = vpop.eup %1885 }
 0xafc   :  { %v1888_v61 = vpop.eup %1887  ;;  %v915_v62 = vsel %vm144_vm2, %v1886_v60, 0.0 }
 0xafd   :  { %v916_v63 = vrot.slane %v915_v62, 4  ;;  %v941_v0 = vsel %vm144_vm2, %v1888_v61, 0.0 }
 0xafe   :  { %v942_v1 = vrot.slane %v941_v0, 4 }
 0xaff   :  { %v917_v2 = vadd.f32 %v916_v63, %v915_v62 }
 0xb00   :  { %v943_v3 = vadd.f32 %v942_v1, %v941_v0 }
 0xb01   :  { %v918_v4 = vrot.slane %v917_v2, 2 }
 0xb02   :  { %v944_v6 = vrot.slane %v943_v3, 2 }
 0xb03   :  { %v919_v7 = vadd.f32 %v918_v4, %v917_v2 }
 0xb04   :  { %v945_v8 = vadd.f32 %v944_v6, %v943_v3 }
 0xb05   :  { %v920_v9 = vrot.slane %v919_v7, 1 }
 0xb06   :  { %v946_v10 = vrot.slane %v945_v8, 1 }
 0xb07   :  { %v921_v11 = vadd.f32 %v920_v9, %v919_v7 }
 0xb08   :  { %v947_v12 = vadd.f32 %v946_v10, %v945_v8 }
 0xb09   :  { %1889 = vlog2.f32 %v921_v11 }
 0xb0a   :  { %1891 = vlog2.f32 %v947_v12 }
 0xb0f   :  { %v1890_v13 = vpop.eup %1889 }
 0xb10   :  { %v1892_v14 = vpop.eup %1891  ;;  %v923_v39 = vmul.f32 0.6931472, %v1890_v13 }
 0xb11   :  { %v949_v15 = vmul.f32 0.6931472, %v1892_v14 }
 0xb12   :  { %v924_v45 = vadd.f32 %v923_v39, %v911_v54 }
 0xb13   :  { %v950_v18 = vadd.f32 %v949_v15, %v937_v55 }
 0xb15   :  { %v951_v19 = vsel %vm332_vm4, %v924_v45, %v950_v18 }
 0xb16   :  { %v952_v20 = vsel %vm334_vm5, %v951_v19, -inf }
 0xb17   :  { %953 = vmax.xlane.f32.xlu1 %v952_v20 }
 0xb8a   :  { %v954_v21 = vpop.xlane.xlu1 %953 }
 0xb8b   :  { %v955_v22 = vsub.f32 %v951_v19, %v954_v21 }
 0xb8d   :  { %v956_v23 = vmul.f32 1.442695, %v955_v22 }
 0xb8f   :  { %1893 = vpow2.f32 %v956_v23 }
 0xb95   :  { %v1894_v24 = vpop.eup %1893 }
 0xb96   :  { %1744 = vmatmul.msk.f32.vlgmr.msra.gmra.mxu0 %vm144_vm2, %v1894_v24 }
 0xb97   :  { %1675 = vmatpush.msra.mxu0 %v2196_v16 }
 0xb99   :  { %1676 = vmatpush.msra.mxu0 %v2194_v49  ;;  %v1773_v49 = vld [vmem:[#allocation2 + $0x10] ss:$0 sm:$0xff] }
 0xb9b   :  { %1677 = vmatpush.msra.mxu0 %v2200_v43  ;;  %v1774_v43 = vld [vmem:[#allocation3 + $0x10] ss:$0 sm:$0xff] }
 0xb9d   :  { %1678 = vmatpush.msra.mxu0 %v2206_v40 }
 0xb9f   :  { %1679 = vmatpush.msra.mxu0 %v2212_v46 }
 0xba1   :  { %1680 = vmatpush.msra.mxu0 %v2218_v17  ;;  %v1014_v17 = vld [vmem:[#allocation3 + $0x8] sm:$0xff] }
 0xc13   :  { %v978_v25 = vpop.f32.mrf.mxu0 }
 0xc14   :  { %1895 = vlog2.f32 %v978_v25 }
 0xc1a   :  { %v1896_v26 = vpop.eup %1895 }
 0xc1b   :  { %v982_v27 = vmul.f32 0.6931472, %v1896_v26 }
 0xc1d   :  { %v983_v28 = vadd.f32 %v982_v27, %v954_v21 }
 0xc1f   :  { %v984_v33 = vadd.f32 %v983_v28, %v2180_v5 }
 0xc21   :  { %985 = vst.msk [vmem:[#allocation4 + $0xf] sm:$0x1] %vm273_vm3, %v984_v33 }
 0xc22   :  { %986 = vst.msk [vmem:[#allocation5 + $0xe] sm:$0x2] %vm369_vm6, %v984_v33 }
 0xc28   :  { %v989_v16 = vld [vmem:[#allocation4 + $0x8] sm:$0xff] }
 0xc29   :  { %v991_v34 = vadd.f32 %v1773_v49, %v989_v16  ;;  %v1015_v40 = vld [vmem:[#allocation5 + $0x8] sm:$0xff] }
 0xc2a   :  { %v1017_v46 = vadd.f32 %v1774_v43, %v1015_v40  ;;  %v1775_v43 = vld [vmem:[#allocation2 + $0x11] ss:$0 sm:$0xff]  ;;  %v1776_v40 = vld [vmem:[#allocation3 + $0x11] ss:$0 sm:$0xff] }
 0xc2b   :  { %v992_v36 = vsub.f32 %v991_v34, %v988_v35 }
 0xc2c   :  { %v1018_v37 = vsub.f32 %v1017_v46, %v1014_v17 }
 0xc2d   :  { %v993_v38 = vsel %vm144_vm2, %v992_v36, -inf }
 0xc2e   :  { %v994_v41 = vrot.slane %v993_v38, 4  ;;  %v1019_v42 = vsel %vm144_vm2, %v1018_v37, -inf }
 0xc2f   :  { %v1020_v44 = vrot.slane %v1019_v42, 4 }
 0xc30   :  { %v995_v47 = vmax.f32 %v993_v38, %v994_v41  ;;  %v1102_v38 = vld [vmem:[#allocation3 + $0x9] sm:$0xff] }
 0xc31   :  { %v1021_v48 = vmax.f32 %v1019_v42, %v1020_v44 }
 0xc32   :  { %v996_v50 = vrot.slane %v995_v47, 2 }
 0xc33   :  { %v1022_v51 = vrot.slane %v1021_v48, 2 }
 0xc34   :  { %v997_v52 = vmax.f32 %v995_v47, %v996_v50 }
 0xc35   :  { %v1023_v53 = vmax.f32 %v1021_v48, %v1022_v51 }
 0xc36   :  { %v998_v54 = vrot.slane %v997_v52, 1 }
 0xc37   :  { %v1024_v55 = vrot.slane %v1023_v53, 1 }
 0xc38   :  { %v999_v56 = vmax.f32 %v997_v52, %v998_v54 }
 0xc39   :  { %v1025_v57 = vmax.f32 %v1023_v53, %v1024_v55 }
 0xc3a   :  { %v1000_v58 = vsub.f32 %v992_v36, %v999_v56  ;;  %v1076_v36 = vld [vmem:[#allocation2 + $0x9] sm:$0xff] }
 0xc3b   :  { %v1026_v59 = vsub.f32 %v1018_v37, %v1025_v57 }
 0xc3c   :  { %v1001_v60 = vmul.f32 1.442695, %v1000_v58 }
 0xc3d   :  { %v1027_v61 = vmul.f32 1.442695, %v1026_v59 }
 0xc3e   :  { %1897 = vpow2.f32 %v1001_v60 }
 0xc3f   :  { %1899 = vpow2.f32 %v1027_v61 }
 0xc44   :  { %v1898_v62 = vpop.eup %1897 }
 0xc45   :  { %v1900_v63 = vpop.eup %1899  ;;  %v1003_v0 = vsel %vm144_vm2, %v1898_v62, 0.0 }
 0xc46   :  { %v1004_v1 = vrot.slane %v1003_v0, 4  ;;  %v1029_v2 = vsel %vm144_vm2, %v1900_v63, 0.0 }
 0xc47   :  { %v1030_v3 = vrot.slane %v1029_v2, 4 }
 0xc48   :  { %v1005_v4 = vadd.f32 %v1004_v1, %v1003_v0 }
 0xc49   :  { %v1031_v6 = vadd.f32 %v1030_v3, %v1029_v2 }
 0xc4a   :  { %v1006_v7 = vrot.slane %v1005_v4, 2 }
 0xc4b   :  { %v1032_v8 = vrot.slane %v1031_v6, 2 }
 0xc4c   :  { %v1007_v9 = vadd.f32 %v1006_v7, %v1005_v4 }
 0xc4d   :  { %v1033_v10 = vadd.f32 %v1032_v8, %v1031_v6 }
 0xc4e   :  { %v1008_v11 = vrot.slane %v1007_v9, 1 }
 0xc4f   :  { %v1034_v12 = vrot.slane %v1033_v10, 1 }
 0xc50   :  { %v1009_v13 = vadd.f32 %v1008_v11, %v1007_v9 }
 0xc51   :  { %v1035_v14 = vadd.f32 %v1034_v12, %v1033_v10 }
 0xc52   :  { %1901 = vlog2.f32 %v1009_v13 }
 0xc53   :  { %1903 = vlog2.f32 %v1035_v14 }
 0xc58   :  { %v1902_v39 = vpop.eup %1901 }
 0xc59   :  { %v1904_v15 = vpop.eup %1903  ;;  %v1011_v45 = vmul.f32 0.6931472, %v1902_v39 }
 0xc5a   :  { %v1037_v18 = vmul.f32 0.6931472, %v1904_v15 }
 0xc5b   :  { %v1012_v19 = vadd.f32 %v1011_v45, %v999_v56 }
 0xc5c   :  { %v1038_v20 = vadd.f32 %v1037_v18, %v1025_v57 }
 0xc5e   :  { %v1039_v21 = vsel %vm332_vm4, %v1012_v19, %v1038_v20 }
 0xc5f   :  { %v1040_v22 = vsel %vm334_vm5, %v1039_v21, -inf }
 0xc60   :  { %1041 = vmax.xlane.f32.xlu2 %v1040_v22 }
 0xcd3   :  { %v1042_v23 = vpop.xlane.xlu2 %1041 }
 0xcd4   :  { %v1043_v24 = vsub.f32 %v1039_v21, %v1042_v23 }
 0xcd6   :  { %v1044_v25 = vmul.f32 1.442695, %v1043_v24 }
 0xcd8   :  { %1905 = vpow2.f32 %v1044_v25 }
 0xcde   :  { %v1906_v26 = vpop.eup %1905 }
 0xcdf   :  { %1745 = vmatmul.msk.f32.vlgmr.msra.gmra.mxu1 %vm144_vm2, %v1906_v26 }
 0xd5c   :  { %v1066_v27 = vpop.f32.mrf.mxu1 }
 0xd5d   :  { %1907 = vlog2.f32 %v1066_v27 }
 0xd63   :  { %v1908_v28 = vpop.eup %1907 }
 0xd64   :  { %v1070_v33 = vmul.f32 0.6931472, %v1908_v28 }
 0xd66   :  { %v1071_v49 = vadd.f32 %v1070_v33, %v1042_v23 }
 0xd68   :  { %v1072_v16 = vadd.f32 %v1071_v49, %v2180_v5 }
 0xd6a   :  { %1073 = vst.msk [vmem:[#allocation4 + $0x10] sm:$0x1] %vm273_vm3, %v1072_v16 }
 0xd6b   :  { %1074 = vst.msk [vmem:[#allocation5 + $0xf] sm:$0x2] %vm369_vm6, %v1072_v16 }
 0xd71   :  { %v1077_v34 = vld [vmem:[#allocation4 + $0x9] sm:$0xff] }
 0xd72   :  { %v1079_v35 = vadd.f32 %v1775_v43, %v1077_v34  ;;  %v1103_v46 = vld [vmem:[#allocation5 + $0x9] sm:$0xff] }
 0xd73   :  { %v1105_v17 = vadd.f32 %v1776_v40, %v1103_v46  ;;  %v1777_v40 = vld [vmem:[#allocation2 + $0x12] ss:$0 sm:$0xff]  ;;  %v1778_v46 = vld [vmem:[#allocation3 + $0x12] ss:$0 sm:$0xff] }
 0xd74   :  { %v1080_v37 = vsub.f32 %v1079_v35, %v1076_v36 }
 0xd75   :  { %v1106_v41 = vsub.f32 %v1105_v17, %v1102_v38 }
 0xd76   :  { %v1081_v42 = vsel %vm144_vm2, %v1080_v37, -inf }
 0xd77   :  { %v1082_v44 = vrot.slane %v1081_v42, 4  ;;  %v1107_v47 = vsel %vm144_vm2, %v1106_v41, -inf }
 0xd78   :  { %v1108_v48 = vrot.slane %v1107_v47, 4 }
 0xd79   :  { %v1083_v50 = vmax.f32 %v1081_v42, %v1082_v44  ;;  %v1190_v42 = vld [vmem:[#allocation3 + $0xa] sm:$0xff] }
 0xd7a   :  { %v1109_v51 = vmax.f32 %v1107_v47, %v1108_v48 }
 0xd7b   :  { %v1084_v52 = vrot.slane %v1083_v50, 2 }
 0xd7c   :  { %v1110_v53 = vrot.slane %v1109_v51, 2 }
 0xd7d   :  { %v1085_v54 = vmax.f32 %v1083_v50, %v1084_v52 }
 0xd7e   :  { %v1111_v55 = vmax.f32 %v1109_v51, %v1110_v53 }
 0xd7f   :  { %v1086_v56 = vrot.slane %v1085_v54, 1 }
 0xd80   :  { %v1112_v57 = vrot.slane %v1111_v55, 1 }
 0xd81   :  { %v1087_v58 = vmax.f32 %v1085_v54, %v1086_v56 }
 0xd82   :  { %v1113_v59 = vmax.f32 %v1111_v55, %v1112_v57 }
 0xd83   :  { %v1088_v60 = vsub.f32 %v1080_v37, %v1087_v58  ;;  %v1164_v37 = vld [vmem:[#allocation2 + $0xa] sm:$0xff] }
 0xd84   :  { %v1114_v61 = vsub.f32 %v1106_v41, %v1113_v59 }
 0xd85   :  { %v1089_v62 = vmul.f32 1.442695, %v1088_v60 }
 0xd86   :  { %v1115_v63 = vmul.f32 1.442695, %v1114_v61 }
 0xd87   :  { %1909 = vpow2.f32 %v1089_v62 }
 0xd88   :  { %1911 = vpow2.f32 %v1115_v63 }
 0xd8d   :  { %v1910_v0 = vpop.eup %1909 }
 0xd8e   :  { %v1912_v1 = vpop.eup %1911  ;;  %v1091_v2 = vsel %vm144_vm2, %v1910_v0, 0.0 }
 0xd8f   :  { %v1092_v3 = vrot.slane %v1091_v2, 4  ;;  %v1117_v4 = vsel %vm144_vm2, %v1912_v1, 0.0 }
 0xd90   :  { %v1118_v6 = vrot.slane %v1117_v4, 4 }
 0xd91   :  { %v1093_v7 = vadd.f32 %v1092_v3, %v1091_v2 }
 0xd92   :  { %v1119_v8 = vadd.f32 %v1118_v6, %v1117_v4 }
 0xd93   :  { %v1094_v9 = vrot.slane %v1093_v7, 2 }
 0xd94   :  { %v1120_v10 = vrot.slane %v1119_v8, 2 }
 0xd95   :  { %v1095_v11 = vadd.f32 %v1094_v9, %v1093_v7 }
 0xd96   :  { %v1121_v12 = vadd.f32 %v1120_v10, %v1119_v8 }
 0xd97   :  { %v1096_v13 = vrot.slane %v1095_v11, 1 }
 0xd98   :  { %v1122_v14 = vrot.slane %v1121_v12, 1 }
 0xd99   :  { %v1097_v39 = vadd.f32 %v1096_v13, %v1095_v11 }
 0xd9a   :  { %v1123_v15 = vadd.f32 %v1122_v14, %v1121_v12 }
 0xd9b   :  { %1913 = vlog2.f32 %v1097_v39 }
 0xd9c   :  { %1915 = vlog2.f32 %v1123_v15 }
 0xda1   :  { %v1914_v45 = vpop.eup %1913 }
 0xda2   :  { %v1916_v18 = vpop.eup %1915  ;;  %v1099_v19 = vmul.f32 0.6931472, %v1914_v45 }
 0xda3   :  { %v1125_v20 = vmul.f32 0.6931472, %v1916_v18 }
 0xda4   :  { %v1100_v21 = vadd.f32 %v1099_v19, %v1087_v58 }
 0xda5   :  { %v1126_v22 = vadd.f32 %v1125_v20, %v1113_v59 }
 0xda7   :  { %v1127_v23 = vsel %vm332_vm4, %v1100_v21, %v1126_v22 }
 0xda8   :  { %v1128_v24 = vsel %vm334_vm5, %v1127_v23, -inf }
 0xda9   :  { %1129 = vmax.xlane.f32.xlu0 %v1128_v24 }
 0xe1c   :  { %v1130_v25 = vpop.xlane.xlu0 %1129 }
 0xe1d   :  { %v1131_v26 = vsub.f32 %v1127_v23, %v1130_v25 }
 0xe1f   :  { %v1132_v27 = vmul.f32 1.442695, %v1131_v26 }
 0xe21   :  { %1917 = vpow2.f32 %v1132_v27 }
 0xe27   :  { %v1918_v28 = vpop.eup %1917 }
 0xe28   :  { %1746 = vmatmul.msk.f32.vlgmr.msra.gmra.mxu2 %vm144_vm2, %v1918_v28 }
 0xeab   :  { %v1154_v33 = vpop.f32.mrf.mxu2 }
 0xeac   :  { %1919 = vlog2.f32 %v1154_v33 }
 0xeb2   :  { %v1920_v49 = vpop.eup %1919 }
 0xeb3   :  { %v1158_v16 = vmul.f32 0.6931472, %v1920_v49 }
 0xeb5   :  { %v1159_v43 = vadd.f32 %v1158_v16, %v1130_v25 }
 0xeb7   :  { %v1160_v34 = vadd.f32 %v1159_v43, %v2180_v5 }
 0xeb9   :  { %1161 = vst.msk [vmem:[#allocation4 + $0x11] sm:$0x1] %vm273_vm3, %v1160_v34 }
 0xeba   :  { %1162 = vst.msk [vmem:[#allocation5 + $0x10] sm:$0x2] %vm369_vm6, %v1160_v34 }
 0xec0   :  { %v1165_v35 = vld [vmem:[#allocation4 + $0xa] sm:$0xff] }
 0xec1   :  { %v1167_v36 = vadd.f32 %v1777_v40, %v1165_v35  ;;  %v1191_v17 = vld [vmem:[#allocation5 + $0xa] sm:$0xff] }
 0xec2   :  { %v1193_v38 = vadd.f32 %v1778_v46, %v1191_v17  ;;  %v1779_v46 = vld [vmem:[#allocation2 + $0x13] ss:$0 sm:$0xff]  ;;  %v1780_v17 = vld [vmem:[#allocation3 + $0x13] ss:$0 sm:$0xff] }
 0xec3   :  { %v1168_v41 = vsub.f32 %v1167_v36, %v1164_v37 }
 0xec4   :  { %v1194_v44 = vsub.f32 %v1193_v38, %v1190_v42 }
 0xec5   :  { %v1169_v47 = vsel %vm144_vm2, %v1168_v41, -inf }
 0xec6   :  { %v1170_v48 = vrot.slane %v1169_v47, 4  ;;  %v1195_v50 = vsel %vm144_vm2, %v1194_v44, -inf }
 0xec7   :  { %v1196_v51 = vrot.slane %v1195_v50, 4 }
 0xec8   :  { %v1171_v52 = vmax.f32 %v1169_v47, %v1170_v48  ;;  %v1278_v47 = vld [vmem:[#allocation3 + $0xb] sm:$0xff] }
 0xec9   :  { %v1197_v53 = vmax.f32 %v1195_v50, %v1196_v51 }
 0xeca   :  { %v1172_v54 = vrot.slane %v1171_v52, 2 }
 0xecb   :  { %v1198_v55 = vrot.slane %v1197_v53, 2 }
 0xecc   :  { %v1173_v56 = vmax.f32 %v1171_v52, %v1172_v54 }
 0xecd   :  { %v1199_v57 = vmax.f32 %v1197_v53, %v1198_v55 }
 0xece   :  { %v1174_v58 = vrot.slane %v1173_v56, 1 }
 0xecf   :  { %v1200_v59 = vrot.slane %v1199_v57, 1 }
 0xed0   :  { %v1175_v60 = vmax.f32 %v1173_v56, %v1174_v58 }
 0xed1   :  { %v1201_v61 = vmax.f32 %v1199_v57, %v1200_v59 }
 0xed2   :  { %v1176_v62 = vsub.f32 %v1168_v41, %v1175_v60  ;;  %v1252_v41 = vld [vmem:[#allocation2 + $0xb] sm:$0xff] }
 0xed3   :  { %v1202_v63 = vsub.f32 %v1194_v44, %v1201_v61 }
 0xed4   :  { %v1177_v0 = vmul.f32 1.442695, %v1176_v62 }
 0xed5   :  { %v1203_v1 = vmul.f32 1.442695, %v1202_v63 }
 0xed6   :  { %1921 = vpow2.f32 %v1177_v0 }
 0xed7   :  { %1923 = vpow2.f32 %v1203_v1 }
 0xedc   :  { %v1922_v2 = vpop.eup %1921 }
 0xedd   :  { %v1924_v3 = vpop.eup %1923  ;;  %v1179_v4 = vsel %vm144_vm2, %v1922_v2, 0.0 }
 0xede   :  { %v1180_v6 = vrot.slane %v1179_v4, 4  ;;  %v1205_v7 = vsel %vm144_vm2, %v1924_v3, 0.0 }
 0xedf   :  { %v1206_v8 = vrot.slane %v1205_v7, 4 }
 0xee0   :  { %v1181_v9 = vadd.f32 %v1180_v6, %v1179_v4 }
 0xee1   :  { %v1207_v10 = vadd.f32 %v1206_v8, %v1205_v7 }
 0xee2   :  { %v1182_v11 = vrot.slane %v1181_v9, 2 }
 0xee3   :  { %v1208_v12 = vrot.slane %v1207_v10, 2 }
 0xee4   :  { %v1183_v13 = vadd.f32 %v1182_v11, %v1181_v9 }
 0xee5   :  { %v1209_v14 = vadd.f32 %v1208_v12, %v1207_v10 }
 0xee6   :  { %v1184_v39 = vrot.slane %v1183_v13, 1 }
 0xee7   :  { %v1210_v15 = vrot.slane %v1209_v14, 1 }
 0xee8   :  { %v1185_v45 = vadd.f32 %v1184_v39, %v1183_v13 }
 0xee9   :  { %v1211_v18 = vadd.f32 %v1210_v15, %v1209_v14 }
 0xeea   :  { %1925 = vlog2.f32 %v1185_v45 }
 0xeeb   :  { %1927 = vlog2.f32 %v1211_v18 }
 0xef0   :  { %v1926_v19 = vpop.eup %1925 }
 0xef1   :  { %v1928_v20 = vpop.eup %1927  ;;  %v1187_v21 = vmul.f32 0.6931472, %v1926_v19 }
 0xef2   :  { %v1213_v22 = vmul.f32 0.6931472, %v1928_v20 }
 0xef3   :  { %v1188_v23 = vadd.f32 %v1187_v21, %v1175_v60 }
 0xef4   :  { %v1214_v24 = vadd.f32 %v1213_v22, %v1201_v61 }
 0xef6   :  { %v1215_v25 = vsel %vm332_vm4, %v1188_v23, %v1214_v24 }
 0xef7   :  { %v1216_v26 = vsel %vm334_vm5, %v1215_v25, -inf }
 0xef8   :  { %1217 = vmax.xlane.f32.xlu1 %v1216_v26 }
 0xf6b   :  { %v1218_v27 = vpop.xlane.xlu1 %1217 }
 0xf6c   :  { %v1219_v28 = vsub.f32 %v1215_v25, %v1218_v27 }
 0xf6e   :  { %v1220_v33 = vmul.f32 1.442695, %v1219_v28 }
 0xf70   :  { %1929 = vpow2.f32 %v1220_v33 }
 0xf76   :  { %v1930_v49 = vpop.eup %1929 }
 0xf77   :  { %1747 = vmatmul.msk.f32.vlgmr.msra.gmra.mxu3 %vm144_vm2, %v1930_v49 }
 0xffa   :  { %v1242_v16 = vpop.f32.mrf.mxu3 }
 0xffb   :  { %1931 = vlog2.f32 %v1242_v16 }
0x1001   :  { %v1932_v43 = vpop.eup %1931 }
0x1002   :  { %v1246_v34 = vmul.f32 0.6931472, %v1932_v43 }
0x1004   :  { %v1247_v40 = vadd.f32 %v1246_v34, %v1218_v27 }
0x1006   :  { %v1248_v35 = vadd.f32 %v1247_v40, %v2180_v5 }
0x1008   :  { %1249 = vst.msk [vmem:[#allocation4 + $0x12] sm:$0x1] %vm273_vm3, %v1248_v35 }
0x1009   :  { %1250 = vst.msk [vmem:[#allocation5 + $0x11] sm:$0x2] %vm369_vm6, %v1248_v35 }
0x100f   :  { %v1253_v36 = vld [vmem:[#allocation4 + $0xb] sm:$0xff] }
0x1010   :  { %v1255_v37 = vadd.f32 %v1779_v46, %v1253_v36  ;;  %v1279_v38 = vld [vmem:[#allocation5 + $0xb] sm:$0xff] }
0x1011   :  { %v1281_v42 = vadd.f32 %v1780_v17, %v1279_v38  ;;  %v1781_v17 = vld [vmem:[#allocation2 + $0x14] ss:$0 sm:$0xff]  ;;  %v1782_v38 = vld [vmem:[#allocation3 + $0x14] ss:$0 sm:$0xff] }
0x1012   :  { %v1256_v44 = vsub.f32 %v1255_v37, %v1252_v41 }
0x1013   :  { %v1282_v48 = vsub.f32 %v1281_v42, %v1278_v47 }
0x1014   :  { %v1257_v50 = vsel %vm144_vm2, %v1256_v44, -inf }
0x1015   :  { %v1258_v51 = vrot.slane %v1257_v50, 4  ;;  %v1283_v52 = vsel %vm144_vm2, %v1282_v48, -inf }
0x1016   :  { %v1284_v53 = vrot.slane %v1283_v52, 4 }
0x1017   :  { %v1259_v54 = vmax.f32 %v1257_v50, %v1258_v51  ;;  %v1366_v50 = vld [vmem:[#allocation3 + $0xc] sm:$0xff] }
0x1018   :  { %v1285_v55 = vmax.f32 %v1283_v52, %v1284_v53 }
0x1019   :  { %v1260_v56 = vrot.slane %v1259_v54, 2 }
0x101a   :  { %v1286_v57 = vrot.slane %v1285_v55, 2 }
0x101b   :  { %v1261_v58 = vmax.f32 %v1259_v54, %v1260_v56 }
0x101c   :  { %v1287_v59 = vmax.f32 %v1285_v55, %v1286_v57 }
0x101d   :  { %v1262_v60 = vrot.slane %v1261_v58, 1 }
0x101e   :  { %v1288_v61 = vrot.slane %v1287_v59, 1 }
0x101f   :  { %v1263_v62 = vmax.f32 %v1261_v58, %v1262_v60 }
0x1020   :  { %v1289_v63 = vmax.f32 %v1287_v59, %v1288_v61 }
0x1021   :  { %v1264_v0 = vsub.f32 %v1256_v44, %v1263_v62  ;;  %v1340_v44 = vld [vmem:[#allocation2 + $0xc] sm:$0xff] }
0x1022   :  { %v1290_v1 = vsub.f32 %v1282_v48, %v1289_v63 }
0x1023   :  { %v1265_v2 = vmul.f32 1.442695, %v1264_v0 }
0x1024   :  { %v1291_v3 = vmul.f32 1.442695, %v1290_v1 }
0x1025   :  { %1933 = vpow2.f32 %v1265_v2 }
0x1026   :  { %1935 = vpow2.f32 %v1291_v3 }
0x102b   :  { %v1934_v4 = vpop.eup %1933 }
0x102c   :  { %v1936_v6 = vpop.eup %1935  ;;  %v1267_v7 = vsel %vm144_vm2, %v1934_v4, 0.0 }
0x102d   :  { %v1268_v8 = vrot.slane %v1267_v7, 4  ;;  %v1293_v9 = vsel %vm144_vm2, %v1936_v6, 0.0 }
0x102e   :  { %v1294_v10 = vrot.slane %v1293_v9, 4 }
0x102f   :  { %v1269_v11 = vadd.f32 %v1268_v8, %v1267_v7 }
0x1030   :  { %v1295_v12 = vadd.f32 %v1294_v10, %v1293_v9 }
0x1031   :  { %v1270_v13 = vrot.slane %v1269_v11, 2 }
0x1032   :  { %v1296_v14 = vrot.slane %v1295_v12, 2 }
0x1033   :  { %v1271_v39 = vadd.f32 %v1270_v13, %v1269_v11 }
0x1034   :  { %v1297_v15 = vadd.f32 %v1296_v14, %v1295_v12 }
0x1035   :  { %v1272_v45 = vrot.slane %v1271_v39, 1 }
0x1036   :  { %v1298_v18 = vrot.slane %v1297_v15, 1 }
0x1037   :  { %v1273_v19 = vadd.f32 %v1272_v45, %v1271_v39 }
0x1038   :  { %v1299_v20 = vadd.f32 %v1298_v18, %v1297_v15 }
0x1039   :  { %1937 = vlog2.f32 %v1273_v19 }
0x103a   :  { %1939 = vlog2.f32 %v1299_v20 }
0x103f   :  { %v1938_v21 = vpop.eup %1937 }
0x1040   :  { %v1940_v22 = vpop.eup %1939  ;;  %v1275_v23 = vmul.f32 0.6931472, %v1938_v21 }
0x1041   :  { %v1301_v24 = vmul.f32 0.6931472, %v1940_v22 }
0x1042   :  { %v1276_v25 = vadd.f32 %v1275_v23, %v1263_v62 }
0x1043   :  { %v1302_v26 = vadd.f32 %v1301_v24, %v1289_v63 }
0x1045   :  { %v1303_v27 = vsel %vm332_vm4, %v1276_v25, %v1302_v26 }
0x1046   :  { %v1304_v28 = vsel %vm334_vm5, %v1303_v27, -inf }
0x1047   :  { %1305 = vmax.xlane.f32.xlu2 %v1304_v28 }
0x10ba   :  { %v1306_v33 = vpop.xlane.xlu2 %1305 }
0x10bb   :  { %v1307_v49 = vsub.f32 %v1303_v27, %v1306_v33 }
0x10bd   :  { %v1308_v16 = vmul.f32 1.442695, %v1307_v49 }
0x10bf   :  { %1941 = vpow2.f32 %v1308_v16 }
0x10c5   :  { %v1942_v43 = vpop.eup %1941 }
0x10c6   :  { %1748 = vmatmul.msk.f32.vlgmr.msrb.gmra.mxu0 %vm144_vm2, %v1942_v43 }
0x1143   :  { %v1330_v34 = vpop.f32.mrf.mxu0 }
0x1144   :  { %1943 = vlog2.f32 %v1330_v34 }
0x114a   :  { %v1944_v40 = vpop.eup %1943 }
0x114b   :  { %v1334_v35 = vmul.f32 0.6931472, %v1944_v40 }
0x114d   :  { %v1335_v46 = vadd.f32 %v1334_v35, %v1306_v33 }
0x114f   :  { %v1336_v36 = vadd.f32 %v1335_v46, %v2180_v5 }
0x1151   :  { %1337 = vst.msk [vmem:[#allocation4 + $0x13] sm:$0x1] %vm273_vm3, %v1336_v36 }
0x1152   :  { %1338 = vst.msk [vmem:[#allocation5 + $0x12] sm:$0x2] %vm369_vm6, %v1336_v36 }
0x1158   :  { %v1341_v37 = vld [vmem:[#allocation4 + $0xc] sm:$0xff] }
0x1159   :  { %v1343_v41 = vadd.f32 %v1781_v17, %v1341_v37  ;;  %v1367_v42 = vld [vmem:[#allocation5 + $0xc] sm:$0xff] }
0x115a   :  { %v1369_v47 = vadd.f32 %v1782_v38, %v1367_v42  ;;  %v1783_v38 = vld [vmem:[#allocation2 + $0x15] ss:$0 sm:$0xff]  ;;  %v1784_v42 = vld [vmem:[#allocation3 + $0x15] ss:$0 sm:$0xff] }
0x115b   :  { %v1344_v48 = vsub.f32 %v1343_v41, %v1340_v44 }
0x115c   :  { %v1370_v51 = vsub.f32 %v1369_v47, %v1366_v50 }
0x115d   :  { %v1345_v52 = vsel %vm144_vm2, %v1344_v48, -inf }
0x115e   :  { %v1346_v53 = vrot.slane %v1345_v52, 4  ;;  %v1371_v54 = vsel %vm144_vm2, %v1370_v51, -inf }
0x115f   :  { %v1372_v55 = vrot.slane %v1371_v54, 4 }
0x1160   :  { %v1347_v56 = vmax.f32 %v1345_v52, %v1346_v53  ;;  %v1454_v52 = vld [vmem:[#allocation3 + $0xd] sm:$0xff] }
0x1161   :  { %v1373_v57 = vmax.f32 %v1371_v54, %v1372_v55 }
0x1162   :  { %v1348_v58 = vrot.slane %v1347_v56, 2 }
0x1163   :  { %v1374_v59 = vrot.slane %v1373_v57, 2 }
0x1164   :  { %v1349_v60 = vmax.f32 %v1347_v56, %v1348_v58 }
0x1165   :  { %v1375_v61 = vmax.f32 %v1373_v57, %v1374_v59 }
0x1166   :  { %v1350_v62 = vrot.slane %v1349_v60, 1 }
0x1167   :  { %v1376_v63 = vrot.slane %v1375_v61, 1 }
0x1168   :  { %v1351_v0 = vmax.f32 %v1349_v60, %v1350_v62 }
0x1169   :  { %v1377_v1 = vmax.f32 %v1375_v61, %v1376_v63 }
0x116a   :  { %v1352_v2 = vsub.f32 %v1344_v48, %v1351_v0  ;;  %v1428_v48 = vld [vmem:[#allocation2 + $0xd] sm:$0xff] }
0x116b   :  { %v1378_v3 = vsub.f32 %v1370_v51, %v1377_v1 }
0x116c   :  { %v1353_v4 = vmul.f32 1.442695, %v1352_v2 }
0x116d   :  { %v1379_v6 = vmul.f32 1.442695, %v1378_v3 }
0x116e   :  { %1945 = vpow2.f32 %v1353_v4 }
0x116f   :  { %1947 = vpow2.f32 %v1379_v6 }
0x1174   :  { %v1946_v7 = vpop.eup %1945 }
0x1175   :  { %v1948_v8 = vpop.eup %1947  ;;  %v1355_v9 = vsel %vm144_vm2, %v1946_v7, 0.0 }
0x1176   :  { %v1356_v10 = vrot.slane %v1355_v9, 4  ;;  %v1381_v11 = vsel %vm144_vm2, %v1948_v8, 0.0 }
0x1177   :  { %v1382_v12 = vrot.slane %v1381_v11, 4 }
0x1178   :  { %v1357_v13 = vadd.f32 %v1356_v10, %v1355_v9 }
0x1179   :  { %v1383_v14 = vadd.f32 %v1382_v12, %v1381_v11 }
0x117a   :  { %v1358_v39 = vrot.slane %v1357_v13, 2 }
0x117b   :  { %v1384_v15 = vrot.slane %v1383_v14, 2 }
0x117c   :  { %v1359_v45 = vadd.f32 %v1358_v39, %v1357_v13 }
0x117d   :  { %v1385_v18 = vadd.f32 %v1384_v15, %v1383_v14 }
0x117e   :  { %v1360_v19 = vrot.slane %v1359_v45, 1 }
0x117f   :  { %v1386_v20 = vrot.slane %v1385_v18, 1 }
0x1180   :  { %v1361_v21 = vadd.f32 %v1360_v19, %v1359_v45 }
0x1181   :  { %v1387_v22 = vadd.f32 %v1386_v20, %v1385_v18 }
0x1182   :  { %1949 = vlog2.f32 %v1361_v21 }
0x1183   :  { %1951 = vlog2.f32 %v1387_v22 }
0x1188   :  { %v1950_v23 = vpop.eup %1949 }
0x1189   :  { %v1952_v24 = vpop.eup %1951  ;;  %v1363_v25 = vmul.f32 0.6931472, %v1950_v23 }
0x118a   :  { %v1389_v26 = vmul.f32 0.6931472, %v1952_v24 }
0x118b   :  { %v1364_v27 = vadd.f32 %v1363_v25, %v1351_v0 }
0x118c   :  { %v1390_v28 = vadd.f32 %v1389_v26, %v1377_v1 }
0x118e   :  { %v1391_v33 = vsel %vm332_vm4, %v1364_v27, %v1390_v28 }
0x118f   :  { %v1392_v49 = vsel %vm334_vm5, %v1391_v33, -inf }
0x1190   :  { %1393 = vmax.xlane.f32.xlu0 %v1392_v49 }
0x1203   :  { %v1394_v16 = vpop.xlane.xlu0 %1393 }
0x1204   :  { %v1395_v43 = vsub.f32 %v1391_v33, %v1394_v16 }
0x1206   :  { %v1396_v34 = vmul.f32 1.442695, %v1395_v43 }
0x1208   :  { %1953 = vpow2.f32 %v1396_v34 }
0x120e   :  { %v1954_v40 = vpop.eup %1953 }
0x120f   :  { %1749 = vmatmul.msk.f32.vlgmr.msrb.gmra.mxu1 %vm144_vm2, %v1954_v40 }
0x128c   :  { %v1418_v35 = vpop.f32.mrf.mxu1 }
0x128d   :  { %1955 = vlog2.f32 %v1418_v35 }
0x1293   :  { %v1956_v46 = vpop.eup %1955 }
0x1294   :  { %v1422_v36 = vmul.f32 0.6931472, %v1956_v46 }
0x1296   :  { %v1423_v17 = vadd.f32 %v1422_v36, %v1394_v16 }
0x1298   :  { %v1424_v37 = vadd.f32 %v1423_v17, %v2180_v5 }
0x129a   :  { %1425 = vst.msk [vmem:[#allocation4 + $0x14] sm:$0x1] %vm273_vm3, %v1424_v37 }
0x129b   :  { %1426 = vst.msk [vmem:[#allocation5 + $0x13] sm:$0x2] %vm369_vm6, %v1424_v37 }
0x12a1   :  { %v1429_v41 = vld [vmem:[#allocation4 + $0xd] sm:$0xff] }
0x12a2   :  { %v1431_v44 = vadd.f32 %v1783_v38, %v1429_v41  ;;  %v1455_v47 = vld [vmem:[#allocation5 + $0xd] sm:$0xff] }
0x12a3   :  { %v1457_v50 = vadd.f32 %v1784_v42, %v1455_v47  ;;  %v1785_v42 = vld [vmem:[#allocation2 + $0x16] ss:$0 sm:$0xff]  ;;  %v1786_v47 = vld [vmem:[#allocation3 + $0x16] ss:$0 sm:$0xff] }
0x12a4   :  { %v1432_v51 = vsub.f32 %v1431_v44, %v1428_v48 }
0x12a5   :  { %v1458_v53 = vsub.f32 %v1457_v50, %v1454_v52 }
0x12a6   :  { %v1433_v54 = vsel %vm144_vm2, %v1432_v51, -inf }
0x12a7   :  { %v1434_v55 = vrot.slane %v1433_v54, 4  ;;  %v1459_v56 = vsel %vm144_vm2, %v1458_v53, -inf }
0x12a8   :  { %v1460_v57 = vrot.slane %v1459_v56, 4 }
0x12a9   :  { %v1435_v58 = vmax.f32 %v1433_v54, %v1434_v55  ;;  %v1542_v54 = vld [vmem:[#allocation3 + $0xe] sm:$0xff] }
0x12aa   :  { %v1461_v59 = vmax.f32 %v1459_v56, %v1460_v57 }
0x12ab   :  { %v1436_v60 = vrot.slane %v1435_v58, 2 }
0x12ac   :  { %v1462_v61 = vrot.slane %v1461_v59, 2 }
0x12ad   :  { %v1437_v62 = vmax.f32 %v1435_v58, %v1436_v60 }
0x12ae   :  { %v1463_v63 = vmax.f32 %v1461_v59, %v1462_v61 }
0x12af   :  { %v1438_v0 = vrot.slane %v1437_v62, 1 }
0x12b0   :  { %v1464_v1 = vrot.slane %v1463_v63, 1 }
0x12b1   :  { %v1439_v2 = vmax.f32 %v1437_v62, %v1438_v0 }
0x12b2   :  { %v1465_v3 = vmax.f32 %v1463_v63, %v1464_v1 }
0x12b3   :  { %v1440_v4 = vsub.f32 %v1432_v51, %v1439_v2  ;;  %v1516_v51 = vld [vmem:[#allocation2 + $0xe] sm:$0xff] }
0x12b4   :  { %v1466_v6 = vsub.f32 %v1458_v53, %v1465_v3 }
0x12b5   :  { %v1441_v7 = vmul.f32 1.442695, %v1440_v4 }
0x12b6   :  { %v1467_v8 = vmul.f32 1.442695, %v1466_v6 }
0x12b7   :  { %1957 = vpow2.f32 %v1441_v7 }
0x12b8   :  { %1959 = vpow2.f32 %v1467_v8 }
0x12bd   :  { %v1958_v9 = vpop.eup %1957 }
0x12be   :  { %v1960_v10 = vpop.eup %1959  ;;  %v1443_v11 = vsel %vm144_vm2, %v1958_v9, 0.0 }
0x12bf   :  { %v1444_v12 = vrot.slane %v1443_v11, 4  ;;  %v1469_v13 = vsel %vm144_vm2, %v1960_v10, 0.0 }
0x12c0   :  { %v1470_v14 = vrot.slane %v1469_v13, 4 }
0x12c1   :  { %v1445_v39 = vadd.f32 %v1444_v12, %v1443_v11 }
0x12c2   :  { %v1471_v15 = vadd.f32 %v1470_v14, %v1469_v13 }
0x12c3   :  { %v1446_v45 = vrot.slane %v1445_v39, 2 }
0x12c4   :  { %v1472_v18 = vrot.slane %v1471_v15, 2 }
0x12c5   :  { %v1447_v19 = vadd.f32 %v1446_v45, %v1445_v39 }
0x12c6   :  { %v1473_v20 = vadd.f32 %v1472_v18, %v1471_v15 }
0x12c7   :  { %v1448_v21 = vrot.slane %v1447_v19, 1 }
0x12c8   :  { %v1474_v22 = vrot.slane %v1473_v20, 1 }
0x12c9   :  { %v1449_v23 = vadd.f32 %v1448_v21, %v1447_v19 }
0x12ca   :  { %v1475_v24 = vadd.f32 %v1474_v22, %v1473_v20 }
0x12cb   :  { %1961 = vlog2.f32 %v1449_v23 }
0x12cc   :  { %1963 = vlog2.f32 %v1475_v24 }
0x12d1   :  { %v1962_v25 = vpop.eup %1961 }
0x12d2   :  { %v1964_v26 = vpop.eup %1963  ;;  %v1451_v27 = vmul.f32 0.6931472, %v1962_v25 }
0x12d3   :  { %v1477_v28 = vmul.f32 0.6931472, %v1964_v26 }
0x12d4   :  { %v1452_v33 = vadd.f32 %v1451_v27, %v1439_v2 }
0x12d5   :  { %v1478_v49 = vadd.f32 %v1477_v28, %v1465_v3 }
0x12d7   :  { %v1479_v16 = vsel %vm332_vm4, %v1452_v33, %v1478_v49 }
0x12d8   :  { %v1480_v43 = vsel %vm334_vm5, %v1479_v16, -inf }
0x12d9   :  { %1481 = vmax.xlane.f32.xlu1 %v1480_v43 }
0x134c   :  { %v1482_v34 = vpop.xlane.xlu1 %1481 }
0x134d   :  { %v1483_v40 = vsub.f32 %v1479_v16, %v1482_v34 }
0x134f   :  { %v1484_v35 = vmul.f32 1.442695, %v1483_v40 }
0x1351   :  { %1965 = vpow2.f32 %v1484_v35 }
0x1357   :  { %v1966_v46 = vpop.eup %1965 }
0x1358   :  { %1750 = vmatmul.msk.f32.vlgmr.msrb.gmra.mxu2 %vm144_vm2, %v1966_v46 }
0x13db   :  { %v1506_v36 = vpop.f32.mrf.mxu2 }
0x13dc   :  { %1967 = vlog2.f32 %v1506_v36 }
0x13e2   :  { %v1968_v17 = vpop.eup %1967 }
0x13e3   :  { %v1510_v37 = vmul.f32 0.6931472, %v1968_v17 }
0x13e5   :  { %v1511_v38 = vadd.f32 %v1510_v37, %v1482_v34 }
0x13e7   :  { %v1512_v41 = vadd.f32 %v1511_v38, %v2180_v5 }
0x13e9   :  { %1513 = vst.msk [vmem:[#allocation4 + $0x15] sm:$0x1] %vm273_vm3, %v1512_v41 }
0x13ea   :  { %1514 = vst.msk [vmem:[#allocation5 + $0x14] sm:$0x2] %vm369_vm6, %v1512_v41 }
0x13f0   :  { %v1517_v44 = vld [vmem:[#allocation4 + $0xe] sm:$0xff] }
0x13f1   :  { %v1519_v48 = vadd.f32 %v1785_v42, %v1517_v44  ;;  %v1543_v50 = vld [vmem:[#allocation5 + $0xe] sm:$0xff] }
0x13f2   :  { %v1545_v52 = vadd.f32 %v1786_v47, %v1543_v50  ;;  %v1787_v47 = vld [vmem:[#allocation2 + $0x17] ss:$0 sm:$0xff]  ;;  %v1788_v50 = vld [vmem:[#allocation3 + $0x17] ss:$0 sm:$0xff] }
0x13f3   :  { %v1520_v53 = vsub.f32 %v1519_v48, %v1516_v51 }
0x13f4   :  { %v1546_v55 = vsub.f32 %v1545_v52, %v1542_v54 }
0x13f5   :  { %v1521_v56 = vsel %vm144_vm2, %v1520_v53, -inf }
0x13f6   :  { %v1522_v57 = vrot.slane %v1521_v56, 4  ;;  %v1547_v58 = vsel %vm144_vm2, %v1546_v55, -inf }
0x13f7   :  { %v1548_v59 = vrot.slane %v1547_v58, 4 }
0x13f8   :  { %v1523_v60 = vmax.f32 %v1521_v56, %v1522_v57  ;;  %v1630_v56 = vld [vmem:[#allocation3 + $0xf] sm:$0xff] }
0x13f9   :  { %v1549_v61 = vmax.f32 %v1547_v58, %v1548_v59 }
0x13fa   :  { %v1524_v62 = vrot.slane %v1523_v60, 2 }
0x13fb   :  { %v1550_v63 = vrot.slane %v1549_v61, 2 }
0x13fc   :  { %v1525_v0 = vmax.f32 %v1523_v60, %v1524_v62 }
0x13fd   :  { %v1551_v1 = vmax.f32 %v1549_v61, %v1550_v63 }
0x13fe   :  { %v1526_v2 = vrot.slane %v1525_v0, 1 }
0x13ff   :  { %v1552_v3 = vrot.slane %v1551_v1, 1 }
0x1400   :  { %v1527_v4 = vmax.f32 %v1525_v0, %v1526_v2 }
0x1401   :  { %v1553_v6 = vmax.f32 %v1551_v1, %v1552_v3 }
0x1402   :  { %v1528_v7 = vsub.f32 %v1520_v53, %v1527_v4  ;;  %v1604_v53 = vld [vmem:[#allocation2 + $0xf] sm:$0xff] }
0x1403   :  { %v1554_v8 = vsub.f32 %v1546_v55, %v1553_v6 }
0x1404   :  { %v1529_v9 = vmul.f32 1.442695, %v1528_v7 }
0x1405   :  { %v1555_v10 = vmul.f32 1.442695, %v1554_v8 }
0x1406   :  { %1969 = vpow2.f32 %v1529_v9 }
0x1407   :  { %1971 = vpow2.f32 %v1555_v10 }
0x140c   :  { %v1970_v11 = vpop.eup %1969 }
0x140d   :  { %v1972_v12 = vpop.eup %1971  ;;  %v1531_v13 = vsel %vm144_vm2, %v1970_v11, 0.0 }
0x140e   :  { %v1532_v14 = vrot.slane %v1531_v13, 4  ;;  %v1557_v39 = vsel %vm144_vm2, %v1972_v12, 0.0 }
0x140f   :  { %v1558_v15 = vrot.slane %v1557_v39, 4 }
0x1410   :  { %v1533_v45 = vadd.f32 %v1532_v14, %v1531_v13 }
0x1411   :  { %v1559_v18 = vadd.f32 %v1558_v15, %v1557_v39 }
0x1412   :  { %v1534_v19 = vrot.slane %v1533_v45, 2 }
0x1413   :  { %v1560_v20 = vrot.slane %v1559_v18, 2 }
0x1414   :  { %v1535_v21 = vadd.f32 %v1534_v19, %v1533_v45 }
0x1415   :  { %v1561_v22 = vadd.f32 %v1560_v20, %v1559_v18 }
0x1416   :  { %v1536_v23 = vrot.slane %v1535_v21, 1 }
0x1417   :  { %v1562_v24 = vrot.slane %v1561_v22, 1 }
0x1418   :  { %v1537_v25 = vadd.f32 %v1536_v23, %v1535_v21 }
0x1419   :  { %v1563_v26 = vadd.f32 %v1562_v24, %v1561_v22 }
0x141a   :  { %1973 = vlog2.f32 %v1537_v25 }
0x141b   :  { %1975 = vlog2.f32 %v1563_v26 }
0x1420   :  { %v1974_v27 = vpop.eup %1973 }
0x1421   :  { %v1976_v28 = vpop.eup %1975  ;;  %v1539_v33 = vmul.f32 0.6931472, %v1974_v27 }
0x1422   :  { %v1565_v49 = vmul.f32 0.6931472, %v1976_v28 }
0x1423   :  { %v1540_v16 = vadd.f32 %v1539_v33, %v1527_v4 }
0x1424   :  { %v1566_v43 = vadd.f32 %v1565_v49, %v1553_v6 }
0x1426   :  { %v1567_v34 = vsel %vm332_vm4, %v1540_v16, %v1566_v43 }
0x1427   :  { %v1568_v40 = vsel %vm334_vm5, %v1567_v34, -inf }
0x1428   :  { %1569 = vmax.xlane.f32.xlu2 %v1568_v40 }
0x149b   :  { %v1570_v35 = vpop.xlane.xlu2 %1569 }
0x149c   :  { %v1571_v46 = vsub.f32 %v1567_v34, %v1570_v35 }
0x149e   :  { %v1572_v36 = vmul.f32 1.442695, %v1571_v46 }
0x14a0   :  { %1977 = vpow2.f32 %v1572_v36 }
0x14a6   :  { %v1978_v17 = vpop.eup %1977 }
0x14a7   :  { %1751 = vmatmul.msk.f32.vlgmr.msrb.gmra.mxu3 %vm144_vm2, %v1978_v17  ;;  %v138_v17 = vld [vmem:[%s2491_s7 + $0x10] sm:$0xff] }
0x152a   :  { %v1594_v37 = vpop.f32.mrf.mxu3 }
0x152b   :  { %1979 = vlog2.f32 %v1594_v37  ;;  %v137_v37 = vld [vmem:[%s2491_s7 + $0x8] sm:$0xff] }
0x1531   :  { %v1980_v38 = vpop.eup %1979 }
0x1532   :  { %v1598_v41 = vmul.f32 0.6931472, %v1980_v38  ;;  %v136_v38 = vld [vmem:[%s2491_s7] sm:$0xff] }
0x1534   :  { %v1599_v42 = vadd.f32 %v1598_v41, %v1570_v35  ;;  %v142_v41 = vmul.f32 %v138_v17, %v2093_v30 }
0x1536   :  { %v1600_v44 = vadd.f32 %v1599_v42, %v2180_v5  ;;  %v141_v42 = vmul.f32 %v137_v37, %v2096_v31 }
0x1538   :  { %1601 = vst.msk [vmem:[#allocation4 + $0x16] sm:$0x1] %vm273_vm3, %v1600_v44 }
0x1539   :  { %1602 = vst.msk [vmem:[#allocation5 + $0x15] sm:$0x2] %vm369_vm6, %v1600_v44  ;;  %v140_v44 = vmul.f32 %v136_v38, %v2099_v32 }
0x153f   :  { %v1605_v48 = vld [vmem:[#allocation4 + $0xf] sm:$0xff] }
0x1540   :  { %v1607_v51 = vadd.f32 %v1787_v47, %v1605_v48  ;;  %v1631_v52 = vld [vmem:[#allocation5 + $0xf] sm:$0xff]  ;;  %v158_v47 = vsel %vm144_vm2, %v142_v41, 0.0  ;;  %v148_v48 = vsel %vm144_vm2, %v141_v42, 0.0 }
0x1541   :  { %v1633_v54 = vadd.f32 %v1788_v50, %v1631_v52  ;;  %v145_v50 = vsel %vm144_vm2, %v140_v44, 0.0 }
0x1542   :  { %v1608_v55 = vsub.f32 %v1607_v51, %v1604_v53  ;;  %v139_v51 = vld [vmem:[%s2491_s7 + $0x18] sm:$0xff] }
0x1543   :  { %v1634_v57 = vsub.f32 %v1633_v54, %v1630_v56  ;;  %v143_v52 = vmul.f32 %v139_v51, %v2091_v29 }
0x1544   :  { %v1609_v58 = vsel %vm144_vm2, %v1608_v55, -inf }
0x1545   :  { %v1610_v59 = vrot.slane %v1609_v58, 4  ;;  %v1635_v60 = vsel %vm144_vm2, %v1634_v57, -inf  ;;  %v161_v30 = vsel %vm144_vm2, %v143_v52, 0.0 }
0x1546   :  { %v1636_v5 = vrot.slane %v1635_v60, 4 }
0x1547   :  { %v1611_v61 = vmax.f32 %v1609_v58, %v1610_v59 }
0x1548   :  { %v1637_v62 = vmax.f32 %v1635_v60, %v1636_v5 }
0x1549   :  { %v1612_v63 = vrot.slane %v1611_v61, 2 }
0x154a   :  { %v1638_v0 = vrot.slane %v1637_v62, 2 }
0x154b   :  { %v1613_v1 = vmax.f32 %v1611_v61, %v1612_v63 }
0x154c   :  { %v1639_v2 = vmax.f32 %v1637_v62, %v1638_v0 }
0x154d   :  { %v1614_v3 = vrot.slane %v1613_v1, 1 }
0x154e   :  { %v1640_v4 = vrot.slane %v1639_v2, 1 }
0x154f   :  { %v1615_v6 = vmax.f32 %v1613_v1, %v1614_v3 }
0x1550   :  { %v1641_v7 = vmax.f32 %v1639_v2, %v1640_v4 }
0x1551   :  { %v1616_v8 = vsub.f32 %v1608_v55, %v1615_v6 }
0x1552   :  { %v1642_v9 = vsub.f32 %v1634_v57, %v1641_v7 }
0x1553   :  { %v1617_v10 = vmul.f32 1.442695, %v1616_v8 }
0x1554   :  { %v1643_v11 = vmul.f32 1.442695, %v1642_v9 }
0x1555   :  { %1981 = vpow2.f32 %v1617_v10 }
0x1556   :  { %1983 = vpow2.f32 %v1643_v11 }
0x155b   :  { %v1982_v12 = vpop.eup %1981 }
0x155c   :  { %v1984_v13 = vpop.eup %1983  ;;  %v1619_v14 = vsel %vm144_vm2, %v1982_v12, 0.0 }
0x155d   :  { %v1620_v39 = vrot.slane %v1619_v14, 4  ;;  %v1645_v15 = vsel %vm144_vm2, %v1984_v13, 0.0 }
0x155e   :  { %v1646_v45 = vrot.slane %v1645_v15, 4 }
0x155f   :  { %v1621_v18 = vadd.f32 %v1620_v39, %v1619_v14 }
0x1560   :  { %v1647_v19 = vadd.f32 %v1646_v45, %v1645_v15 }
0x1561   :  { %v1622_v20 = vrot.slane %v1621_v18, 2 }
0x1562   :  { %v1648_v21 = vrot.slane %v1647_v19, 2 }
0x1563   :  { %v1623_v22 = vadd.f32 %v1622_v20, %v1621_v18 }
0x1564   :  { %v1649_v23 = vadd.f32 %v1648_v21, %v1647_v19 }
0x1565   :  { %v1624_v24 = vrot.slane %v1623_v22, 1 }
0x1566   :  { %v1650_v25 = vrot.slane %v1649_v23, 1 }
0x1567   :  { %v1625_v26 = vadd.f32 %v1624_v24, %v1623_v22 }
0x1568   :  { %v1651_v27 = vadd.f32 %v1650_v25, %v1649_v23 }
0x1569   :  { %1985 = vlog2.f32 %v1625_v26 }
0x156a   :  { %1987 = vlog2.f32 %v1651_v27 }
0x156f   :  { %v1986_v28 = vpop.eup %1985 }
0x1570   :  { %v1988_v33 = vpop.eup %1987  ;;  %v1627_v49 = vmul.f32 0.6931472, %v1986_v28 }
0x1571   :  { %v1653_v16 = vmul.f32 0.6931472, %v1988_v33 }
0x1572   :  { %v1628_v43 = vadd.f32 %v1627_v49, %v1615_v6 }
0x1573   :  { %v1654_v34 = vadd.f32 %v1653_v16, %v1641_v7 }
0x1575   :  { %v1655_v40 = vsel %vm332_vm4, %v1628_v43, %v1654_v34 }
0x1576   :  { %v1706_v35 = vsel %vm369_vm6, %v1655_v40, -inf  ;;  %v1691_v46 = vsel %vm273_vm3, %v1655_v40, -inf  ;;  %v1656_v36 = vsel %vm334_vm5, %v1655_v40, -inf }
0x1577   :  { %1707 = vmax.xlane.f32.xlu2 %v1706_v35  ;;  %1692 = vmax.xlane.f32.xlu1 %v1691_v46 }
0x1578   :  { %1657 = vmax.xlane.f32.xlu0 %v1656_v36 }
0x157f   :  { %159 = vadd.xlane.f32.xlu2 %v158_v47  ;;  %149 = vadd.xlane.f32.xlu1 %v148_v48 }
0x1580   :  { %146 = vadd.xlane.f32.xlu0 %v145_v50 }
0x1588   :  { %162 = vadd.xlane.f32.xlu0 %v161_v30 }
0x15ea   :  { %v1708_v31 = vpop.xlane.xlu2 %1707  ;;  %v1693_v32 = vpop.xlane.xlu1 %1692 }
0x15eb   :  { %v1709_v53 = vsub.f32 %v1655_v40, %v1708_v31  ;;  %v1694_v54 = vsub.f32 %v1655_v40, %v1693_v32  ;;  %v1658_v55 = vpop.xlane.xlu0 %1657 }
0x15ec   :  { %v1659_v56 = vsub.f32 %v1655_v40, %v1658_v55 }
0x15ed   :  { %v1710_v57 = vmul.f32 1.442695, %v1709_v53  ;;  %v1695_v58 = vmul.f32 1.442695, %v1694_v54 }
0x15ee   :  { %v1660_v59 = vmul.f32 1.442695, %v1659_v56 }
0x15ef   :  { %1989 = vpow2.f32 %v1710_v57 }
0x15f0   :  { %1991 = vpow2.f32 %v1695_v58 }
0x15f1   :  { %1993 = vpow2.f32 %v1660_v59 }
0x15f2   :  { %v150_v1 = vpop.xlane.xlu1 %149  ;;  %v160_v2 = vpop.xlane.xlu2 %159 }
0x15f3   :  { %v147_v63 = vpop.xlane.xlu0 %146 }
0x15f4   :  { %v151_v4 = vadd.f32 %v150_v1, %v147_v63 }
0x15f5   :  { %v1990_v60 = vpop.eup %1989 }
0x15f6   :  { %v1992_v5 = vpop.eup %1991  ;;  %v1712_v61 = vsel %vm369_vm6, %v1990_v60, 0.0  ;;  %v152_v7 = vrot.slane %v151_v4, 4 }
0x15f7   :  { %v1994_v29 = vpop.eup %1993  ;;  %1713 = vadd.xlane.f32.xlu2 %v1712_v61  ;;  %v1697_v62 = vsel %vm273_vm3, %v1992_v5, 0.0 }
0x15f8   :  { %1752 = vmatmul.msk.f32.vlgmr.msra.gmra.mxu0 %vm144_vm2, %v1994_v29  ;;  %1698 = vadd.xlane.f32.xlu1 %v1697_v62  ;;  %v153_v9 = vadd.f32 %v152_v7, %v151_v4 }
0x15fa   :  { %v154_v11 = vrot.slane %v153_v9, 2 }
0x15fb   :  { %v163_v0 = vpop.xlane.xlu0 %162 }
0x15fc   :  { %v164_v3 = vadd.f32 %v163_v0, %v160_v2  ;;  %v155_v39 = vadd.f32 %v154_v11, %v153_v9 }
0x15fe   :  { %v165_v6 = vrot.slane %v164_v3, 4  ;;  %v156_v18 = vrot.slane %v155_v39, 1 }
0x1600   :  { %v166_v8 = vadd.f32 %v165_v6, %v164_v3  ;;  %v157_v24 = vadd.f32 %v156_v18, %v155_v39 }
0x1602   :  { %v167_v10 = vrot.slane %v166_v8, 2 }
0x1604   :  { %v168_v14 = vadd.f32 %v167_v10, %v166_v8 }
0x1606   :  { %v169_v15 = vrot.slane %v168_v14, 1 }
0x1608   :  { %v170_v22 = vadd.f32 %v169_v15, %v168_v14 }
0x166a   :  { %v1714_v12 = vpop.xlane.xlu2 %1713 }
0x166b   :  { %1995 = vlog2.f32 %v1714_v12  ;;  %v1699_v13 = vpop.xlane.xlu1 %1698 }
0x166c   :  { %1997 = vlog2.f32 %v1699_v13 }
0x1671   :  { %v1996_v45 = vpop.eup %1995 }
0x1672   :  { %v1998_v19 = vpop.eup %1997  ;;  %v1716_v20 = vmul.f32 0.6931472, %v1996_v45 }
0x1673   :  { %v1701_v21 = vmul.f32 0.6931472, %v1998_v19 }
0x1674   :  { %v1717_v23 = vadd.f32 %v1716_v20, %v1708_v31 }
0x1675   :  { %v1702_v25 = vadd.f32 %v1701_v21, %v1693_v32  ;;  %v1682_v26 = vpop.f32.mrf.mxu0 }
0x1676   :  { %v1718_v27 = vsub.f32 %v1717_v23, %v170_v22  ;;  %1999 = vlog2.f32 %v1682_v26 }
0x1677   :  { %v1703_v28 = vsub.f32 %v1702_v25, %v157_v24 }
0x1678   :  { %1720 = vst.msk [vmem:[%s2492_s8] sm:$0x2] %vm1719_vm7, %v1718_v27 }
0x1679   :  { %1705 = vst.msk [vmem:[%s2492_s8] sm:$0x1] %vm1704_vm8, %v1703_v28 }
0x167c   :  { %v2000_v33 = vpop.eup %1999 }

</bundles_post_ra>
